<compile_context>
chip_gen: v7x
topology: tpu7x:2x2x1
jax: 0.10.0
libtpu: 0.0.40
codegen_flags: <defaults>
</compile_context>

<pallas_src>
import math
import functools

import jax
import jax.numpy as jnp
from jax.experimental import pallas as pl
from jax.experimental.pallas import tpu as pltpu


# --------------------------------------------------------------------------
# small in-kernel helpers (traced inline, no extra ops beyond the math)
# --------------------------------------------------------------------------

def _leaky_relu(x):
    # nn.LeakyReLU default negative_slope = 0.01
    return jnp.where(x >= 0, x, 0.01 * x)


def _layer_norm(x, g, b, eps=1e-5):
    mu = jnp.mean(x, axis=-1, keepdims=True)
    var = jnp.mean((x - mu) ** 2, axis=-1, keepdims=True)
    return (x - mu) * jax.lax.rsqrt(var + eps) * g + b


# --------------------------------------------------------------------------
# Fully fused forward kernel: one grid step == one batch sample end-to-end.
# --------------------------------------------------------------------------

def _fused_forward_kernel(*refs, T1, T2, fs, nhead, n_gru, n_att, n_dec_hidden,
                          F, ffn_chunk):
    # ---- parse the flat ref list -----------------------------------------
    idx = 0
    src1_ref = refs[idx]; idx += 1                    # (T1, din)
    src2_ref = refs[idx]; idx += 1                    # (T2, d2)
    gru_refs = [refs[idx + 4 * l: idx + 4 * (l + 1)] for l in range(n_gru)]
    idx += 4 * n_gru
    enc_refs = refs[idx: idx + 4]; idx += 4
    att_refs = [refs[idx + 16 * l: idx + 16 * (l + 1)] for l in range(n_att)]
    idx += 16 * n_att
    n_dec_layers = n_dec_hidden + 1
    dec_refs = [refs[idx + 2 * l: idx + 2 * (l + 1)] for l in range(n_dec_layers)]
    idx += 2 * n_dec_layers
    out_ref = refs[idx]                               # (1, num_labels)

    H = fs
    hd = fs // nhead
    S = T1 + T2 + 1

    # ---- GRU stack (gates packed [r|z|n]; PyTorch semantics) --------------
    #   r = sigmoid(x W_ir + b_ir + h W_hr + b_hr)
    #   z = sigmoid(x W_iz + b_iz + h W_hz + b_hz)
    #   n = tanh  (x W_in + b_in + r * (h W_hn + b_hn))
    #   h = (1 - z) * n + z * h
    # b_ir+b_hr and b_iz+b_hz are pre-summed into bi by parameter prep.
    x = src1_ref[...]                                 # (T1, din)
    for (wih_ref, whh_ref, bi_ref, bhn_ref) in gru_refs:
        # Input projection hoisted off the serial recurrence: one matmul for
        # all T1 steps and all 3 gates.
        gi = jnp.dot(x, wih_ref[...], preferred_element_type=jnp.float32) + bi_ref[...]
        gi_r, gi_z, gi_n = gi[:, 0:H], gi[:, H:2 * H], gi[:, 2 * H:3 * H]
        whh = whh_ref[...]                            # (H, 3H) packed
        bhn = bhn_ref[...]                            # (1, H)
        h = jnp.zeros((1, H), jnp.float32)
        rows = []
        for t in range(T1):                           # static unroll (T1 small)
            gh = jnp.dot(h, whh, preferred_element_type=jnp.float32)  # 1 MXU op/step
            r = jax.nn.sigmoid(gi_r[t:t + 1, :] + gh[:, 0:H])
            z = jax.nn.sigmoid(gi_z[t:t + 1, :] + gh[:, H:2 * H])
            n = jnp.tanh(gi_n[t:t + 1, :] + r * (gh[:, 2 * H:3 * H] + bhn))
            h = (1.0 - z) * n + z * h
            rows.append(h)
        x = jnp.concatenate(rows, axis=0)             # (T1, H)
    out1 = x                                          # (T1, fs)

    # ---- second-input MLP encoder (LeakyReLU x2) ---------------------------
    w1e_ref, b1e_ref, w2e_ref, b2e_ref = enc_refs
    y2 = _leaky_relu(jnp.dot(src2_ref[...], w1e_ref[...],
                             preferred_element_type=jnp.float32) + b1e_ref[...])
    out2 = _leaky_relu(jnp.dot(y2, w2e_ref[...],
                               preferred_element_type=jnp.float32) + b2e_ref[...])

    # ---- concat GRU seq, encoded seq, zero token (use_token=True) ----------
    seq = jnp.concatenate([out1, out2, jnp.zeros((1, fs), jnp.float32)], axis=0)

    # ---- TransformerEncoder stack (post-norm, ReLU FFN, eval dropout) ------
    for (wq_ref, bq_ref, wk_ref, bk_ref, wv_ref, bv_ref, wo_ref, bo_ref,
         g1_ref, be1_ref, w1_ref, b1_ref, w2_ref, b2_ref,
         g2_ref, be2_ref) in att_refs:
        xs = seq
        # 1/sqrt(hd) already folded into wq/bq at parameter-prep time.
        q = jnp.dot(xs, wq_ref[...], preferred_element_type=jnp.float32) + bq_ref[...]
        k = jnp.dot(xs, wk_ref[...], preferred_element_type=jnp.float32) + bk_ref[...]
        v = jnp.dot(xs, wv_ref[...], preferred_element_type=jnp.float32) + bv_ref[...]
        wo = wo_ref[...]

        # Per-head attention, statically unrolled; the output projection is
        # folded into the head loop so no head concat is needed.
        attn = jnp.zeros((S, fs), jnp.float32)
        for hh in range(nhead):
            sl = slice(hh * hd, (hh + 1) * hd)
            s = jnp.dot(q[:, sl], k[:, sl].T, preferred_element_type=jnp.float32)
            s = s - jnp.max(s, axis=-1, keepdims=True)
            p = jnp.exp(s)
            p = p * pl.reciprocal(jnp.sum(p, axis=-1, keepdims=True), approx=True)
            ctx = jnp.dot(p, v[:, sl], preferred_element_type=jnp.float32)
            attn = attn + jnp.dot(ctx, wo[sl, :], preferred_element_type=jnp.float32)
        attn = attn + bo_ref[...]

        # residual + LayerNorm1 (eps=1e-5, biased variance)
        y = _layer_norm(xs + attn, g1_ref[...], be1_ref[...])

        # feed-forward (ReLU), chunked over the F-wide hidden dim to cap the
        # live intermediate at ~(S, ffn_chunk); static ref slices are free.
        ff = jnp.zeros((S, fs), jnp.float32)
        for c in range(F // ffn_chunk):
            lo, hi = c * ffn_chunk, (c + 1) * ffn_chunk
            h1 = jnp.maximum(
                jnp.dot(y, w1_ref[:, lo:hi], preferred_element_type=jnp.float32)
                + b1_ref[:, lo:hi], 0.0)
            ff = ff + jnp.dot(h1, w2_ref[lo:hi, :], preferred_element_type=jnp.float32)
        ff = ff + b2_ref[...]

        # residual + LayerNorm2
        seq = _layer_norm(y + ff, g2_ref[...], be2_ref[...])

    # ---- take last (token) position, decoder MLP ---------------------------
    d = seq[S - 1:S, :]                               # (1, fs)
    for li, (wd_ref, bd_ref) in enumerate(dec_refs):
        d = jnp.dot(d, wd_ref[...], preferred_element_type=jnp.float32) + bd_ref[...]
        if li < n_dec_layers - 1:
            # act_func='ReLu' -> the reference appends nn.LeakyReLU()
            d = _leaky_relu(d)
    out_ref[...] = d.astype(out_ref.dtype)


# --------------------------------------------------------------------------
# Wrapper: one pallas_call per forward, grid over batch ("parallel" -> v7x
# shards the two samples across its 2 TensorCores; on v5e/v6e it is a cheap
# 2-step serial loop).
# --------------------------------------------------------------------------

def transam_forward(params, src1, src2, cfg):
    B, T1, din = src1.shape
    _, T2, d2 = src2.shape
    fs = cfg["feature_size"]
    nhead = cfg["nhead"]
    F = cfg["dim_feedforward"]
    n_gru = len(params["gru"])
    n_att = len(params["att"])
    n_dec_hidden = cfg["n_layers_deco"]
    num_labels = cfg["num_labels"]
    ffn_chunk = 512 if F % 512 == 0 else F

    weights = []
    for lp in params["gru"]:
        weights += [lp["wih"], lp["whh"], lp["bi"], lp["bhn"]]
    for (w, b) in params["enc"]:
        weights += [w, b]
    for lp in params["att"]:
        weights += [lp["wq"], lp["bq"], lp["wk"], lp["bk"], lp["wv"], lp["bv"],
                    lp["wo"], lp["bo"], lp["ln1_g"], lp["ln1_b"],
                    lp["w1"], lp["b1"], lp["w2"], lp["b2"],
                    lp["ln2_g"], lp["ln2_b"]]
    for (w, b) in params["dec"]:
        weights += [w, b]

    in_specs = [pl.BlockSpec((None, T1, din), lambda b: (b, 0, 0)),
                pl.BlockSpec((None, T2, d2), lambda b: (b, 0, 0))]
    # Weights are grid-invariant: same block index every step -> fetched once.
    in_specs += [pl.BlockSpec(w.shape, lambda b: (0, 0)) for w in weights]

    out = pl.pallas_call(
        functools.partial(_fused_forward_kernel,
                          T1=T1, T2=T2, fs=fs, nhead=nhead,
                          n_gru=n_gru, n_att=n_att, n_dec_hidden=n_dec_hidden,
                          F=F, ffn_chunk=ffn_chunk),
        out_shape=jax.ShapeDtypeStruct((B, 1, num_labels), jnp.float32),
        grid=(B,),
        in_specs=in_specs,
        out_specs=pl.BlockSpec((None, 1, num_labels), lambda b: (b, 0, 0)),
        compiler_params=pltpu.CompilerParams(
            dimension_semantics=("parallel",)),
    )(src1, src2, *weights)
    return out.reshape(B, num_labels)


# --------------------------------------------------------------------------
# Parameter construction (already in the kernel's packed/folded layout)
# --------------------------------------------------------------------------

def init_params(key, cfg):
    fs = cfg["feature_size"]
    din = cfg["input_size"]
    d2 = cfg["second_input_size"]
    F = cfg["dim_feedforward"]
    hd = fs // cfg["nhead"]
    scale = 1.0 / math.sqrt(hd)
    keys = iter(jax.random.split(key, 256))

    def w(shape, s=0.1):
        return (s * jax.random.normal(next(keys), shape)).astype(jnp.float32)

    params = {"gru": [], "att": [], "dec": []}

    # GRU: gates packed [r|z|n]; bi = [b_ir+b_hr, b_iz+b_hz, b_in]; bhn kept
    # separate because it sits inside the r * (...) term.
    in_d = din
    for _ in range(cfg["n_layers_gru"]):
        bih = w((1, 3 * fs))
        bhh = w((1, 3 * fs))
        bi = jnp.concatenate([bih[:, 0:fs] + bhh[:, 0:fs],
                              bih[:, fs:2 * fs] + bhh[:, fs:2 * fs],
                              bih[:, 2 * fs:3 * fs]], axis=1)
        params["gru"].append({
            "wih": w((in_d, 3 * fs)),
            "whh": w((fs, 3 * fs)),
            "bi": bi,
            "bhn": bhh[:, 2 * fs:3 * fs],
        })
        in_d = fs

    # second-input encoder: Linear(d2, fs//2) -> LeakyReLU -> Linear(fs//2, fs) -> LeakyReLU
    params["enc"] = [(w((d2, fs // 2)), w((1, fs // 2))),
                     (w((fs // 2, fs)), w((1, fs)))]

    # TransformerEncoderLayer params (attention scale folded into Q projection)
    for _ in range(cfg["n_layers_att"]):
        params["att"].append({
            "wq": w((fs, fs)) * scale, "bq": w((1, fs)) * scale,
            "wk": w((fs, fs)), "bk": w((1, fs)),
            "wv": w((fs, fs)), "bv": w((1, fs)),
            "wo": w((fs, fs)), "bo": w((1, fs)),
            "ln1_g": jnp.ones((1, fs), jnp.float32),
            "ln1_b": jnp.zeros((1, fs), jnp.float32),
            "w1": w((fs, F)), "b1": w((1, F)),
            "w2": w((F, fs)), "b2": w((1, fs)),
            "ln2_g": jnp.ones((1, fs), jnp.float32),
            "ln2_b": jnp.zeros((1, fs), jnp.float32),
        })

    # decoder: n_layers_deco halving Linear+LeakyReLU layers, then Linear->num_labels
    d = fs
    for _ in range(cfg["n_layers_deco"]):
        params["dec"].append((w((d, d // 2)), w((1, d // 2))))
        d = d // 2
    params["dec"].append((w((d, cfg["num_labels"])), w((1, cfg["num_labels"]))))
    return params


# --------------------------------------------------------------------------

if __name__ == "__main__":
    cfg = dict(
        n_layers_gru=1,
        n_layers_att=1,
        feature_size=32,
        nhead=4,
        input_size=3,
        second_input_size=2,
        n_layers_deco=2,
        num_labels=1,
        dim_feedforward=2048,   # PyTorch TransformerEncoderLayer default
    )

    key = jax.random.PRNGKey(0)
    kp, k1, k2 = jax.random.split(key, 3)

    B, T1, T2 = 2, 8, 4
    src1 = jax.random.normal(k1, (B, T1, cfg["input_size"]), jnp.float32)
    src2 = jax.random.normal(k2, (B, T2, cfg["second_input_size"]), jnp.float32)

    params = init_params(kp, cfg)

    fwd = jax.jit(functools.partial(transam_forward, cfg=cfg))
    out = fwd(params, src1, src2)
    jax.block_until_ready(out)

    assert out.shape == (B, cfg["num_labels"]), out.shape
    assert bool(jnp.all(jnp.isfinite(out)))
    print("KERNEL_OK")
</pallas_src>

<mosaic_0001>
module attributes {stable_mosaic.version = 11 : i64} {
  func.func @_fused_forward_kernel(%arg0: i32, %arg1: memref<1x8x3xf32, #tpu.memory_space<vmem>>, %arg2: memref<1x4x2xf32, #tpu.memory_space<vmem>>, %arg3: memref<3x96xf32, #tpu.memory_space<vmem>>, %arg4: memref<32x96xf32, #tpu.memory_space<vmem>>, %arg5: memref<1x96xf32, #tpu.memory_space<vmem>>, %arg6: memref<1x32xf32, #tpu.memory_space<vmem>>, %arg7: memref<2x16xf32, #tpu.memory_space<vmem>>, %arg8: memref<1x16xf32, #tpu.memory_space<vmem>>, %arg9: memref<16x32xf32, #tpu.memory_space<vmem>>, %arg10: memref<1x32xf32, #tpu.memory_space<vmem>>, %arg11: memref<32x32xf32, #tpu.memory_space<vmem>>, %arg12: memref<1x32xf32, #tpu.memory_space<vmem>>, %arg13: memref<32x32xf32, #tpu.memory_space<vmem>>, %arg14: memref<1x32xf32, #tpu.memory_space<vmem>>, %arg15: memref<32x32xf32, #tpu.memory_space<vmem>>, %arg16: memref<1x32xf32, #tpu.memory_space<vmem>>, %arg17: memref<32x32xf32, #tpu.memory_space<vmem>>, %arg18: memref<1x32xf32, #tpu.memory_space<vmem>>, %arg19: memref<1x32xf32, #tpu.memory_space<vmem>>, %arg20: memref<1x32xf32, #tpu.memory_space<vmem>>, %arg21: memref<32x2048xf32, #tpu.memory_space<vmem>>, %arg22: memref<1x2048xf32, #tpu.memory_space<vmem>>, %arg23: memref<2048x32xf32, #tpu.memory_space<vmem>>, %arg24: memref<1x32xf32, #tpu.memory_space<vmem>>, %arg25: memref<1x32xf32, #tpu.memory_space<vmem>>, %arg26: memref<1x32xf32, #tpu.memory_space<vmem>>, %arg27: memref<32x16xf32, #tpu.memory_space<vmem>>, %arg28: memref<1x16xf32, #tpu.memory_space<vmem>>, %arg29: memref<16x8xf32, #tpu.memory_space<vmem>>, %arg30: memref<1x8xf32, #tpu.memory_space<vmem>>, %arg31: memref<8x1xf32, #tpu.memory_space<vmem>>, %arg32: memref<1x1xf32, #tpu.memory_space<vmem>>, %arg33: memref<1x1x1xf32, #tpu.memory_space<vmem>>) attributes {dimension_semantics = [#tpu.dimension_semantics<parallel>], iteration_bounds = array<i64: 2>, scalar_prefetch = 0 : i64, scratch_operands = 0 : i64, tpu.core_type = #tpu.core_type<tc>, window_params = [{transform_indices = @transform_0, window_bounds = array<i64: 1, 8, 3>}, {transform_indices = @transform_1, window_bounds = array<i64: 1, 4, 2>}, {pipeline_mode = #tpu.pipeline_mode<synchronous>, transform_indices = @transform_2, window_bounds = array<i64: 3, 96>}, {pipeline_mode = #tpu.pipeline_mode<synchronous>, transform_indices = @transform_3, window_bounds = array<i64: 32, 96>}, {pipeline_mode = #tpu.pipeline_mode<synchronous>, transform_indices = @transform_4, window_bounds = array<i64: 1, 96>}, {pipeline_mode = #tpu.pipeline_mode<synchronous>, transform_indices = @transform_5, window_bounds = array<i64: 1, 32>}, {pipeline_mode = #tpu.pipeline_mode<synchronous>, transform_indices = @transform_6, window_bounds = array<i64: 2, 16>}, {pipeline_mode = #tpu.pipeline_mode<synchronous>, transform_indices = @transform_7, window_bounds = array<i64: 1, 16>}, {pipeline_mode = #tpu.pipeline_mode<synchronous>, transform_indices = @transform_8, window_bounds = array<i64: 16, 32>}, {pipeline_mode = #tpu.pipeline_mode<synchronous>, transform_indices = @transform_9, window_bounds = array<i64: 1, 32>}, {pipeline_mode = #tpu.pipeline_mode<synchronous>, transform_indices = @transform_10, window_bounds = array<i64: 32, 32>}, {pipeline_mode = #tpu.pipeline_mode<synchronous>, transform_indices = @transform_11, window_bounds = array<i64: 1, 32>}, {pipeline_mode = #tpu.pipeline_mode<synchronous>, transform_indices = @transform_12, window_bounds = array<i64: 32, 32>}, {pipeline_mode = #tpu.pipeline_mode<synchronous>, transform_indices = @transform_13, window_bounds = array<i64: 1, 32>}, {pipeline_mode = #tpu.pipeline_mode<synchronous>, transform_indices = @transform_14, window_bounds = array<i64: 32, 32>}, {pipeline_mode = #tpu.pipeline_mode<synchronous>, transform_indices = @transform_15, window_bounds = array<i64: 1, 32>}, {pipeline_mode = #tpu.pipeline_mode<synchronous>, transform_indices = @transform_16, window_bounds = array<i64: 32, 32>}, {pipeline_mode = #tpu.pipeline_mode<synchronous>, transform_indices = @transform_17, window_bounds = array<i64: 1, 32>}, {pipeline_mode = #tpu.pipeline_mode<synchronous>, transform_indices = @transform_18, window_bounds = array<i64: 1, 32>}, {pipeline_mode = #tpu.pipeline_mode<synchronous>, transform_indices = @transform_19, window_bounds = array<i64: 1, 32>}, {pipeline_mode = #tpu.pipeline_mode<synchronous>, transform_indices = @transform_20, window_bounds = array<i64: 32, 2048>}, {pipeline_mode = #tpu.pipeline_mode<synchronous>, transform_indices = @transform_21, window_bounds = array<i64: 1, 2048>}, {pipeline_mode = #tpu.pipeline_mode<synchronous>, transform_indices = @transform_22, window_bounds = array<i64: 2048, 32>}, {pipeline_mode = #tpu.pipeline_mode<synchronous>, transform_indices = @transform_23, window_bounds = array<i64: 1, 32>}, {pipeline_mode = #tpu.pipeline_mode<synchronous>, transform_indices = @transform_24, window_bounds = array<i64: 1, 32>}, {pipeline_mode = #tpu.pipeline_mode<synchronous>, transform_indices = @transform_25, window_bounds = array<i64: 1, 32>}, {pipeline_mode = #tpu.pipeline_mode<synchronous>, transform_indices = @transform_26, window_bounds = array<i64: 32, 16>}, {pipeline_mode = #tpu.pipeline_mode<synchronous>, transform_indices = @transform_27, window_bounds = array<i64: 1, 16>}, {pipeline_mode = #tpu.pipeline_mode<synchronous>, transform_indices = @transform_28, window_bounds = array<i64: 16, 8>}, {pipeline_mode = #tpu.pipeline_mode<synchronous>, transform_indices = @transform_29, window_bounds = array<i64: 1, 8>}, {pipeline_mode = #tpu.pipeline_mode<synchronous>, transform_indices = @transform_30, window_bounds = array<i64: 8, 1>}, {pipeline_mode = #tpu.pipeline_mode<synchronous>, transform_indices = @transform_31, window_bounds = array<i64: 1, 1>}, {transform_indices = @transform_32, window_bounds = array<i64: 1, 1, 1>}]} {
    %c0 = arith.constant 0 : index
    %c0_0 = arith.constant 0 : index
    %c0_1 = arith.constant 0 : index
    %0 = vector.load %arg1[%c0, %c0_0, %c0_1] : memref<1x8x3xf32, #tpu.memory_space<vmem>>, vector<1x8x3xf32>
    %1 = vector.shape_cast %0 : vector<1x8x3xf32> to vector<8x3xf32>
    %c0_2 = arith.constant 0 : index
    %c0_3 = arith.constant 0 : index
    %2 = vector.load %arg3[%c0_2, %c0_3] : memref<3x96xf32, #tpu.memory_space<vmem>>, vector<3x96xf32>
    %cst = arith.constant dense<0.000000e+00> : vector<8x96xf32>
    %3 = tpu.matmul %1, %2, %cst {dimension_numbers = #tpu.dot_dimension_numbers<[1], [0], [0], [1], [0, 0, 1, 1], [], []>} : vector<8x3xf32>, vector<3x96xf32>, vector<8x96xf32> -> vector<8x96xf32>
    %c0_4 = arith.constant 0 : index
    %c0_5 = arith.constant 0 : index
    %4 = vector.load %arg5[%c0_4, %c0_5] : memref<1x96xf32, #tpu.memory_space<vmem>>, vector<1x96xf32>
    %5 = vector.broadcast %4 : vector<1x96xf32> to vector<8x96xf32>
    %6 = arith.addf %3, %5 : vector<8x96xf32>
    %7 = vector.extract_strided_slice %6 {offsets = [0, 0], sizes = [8, 32], strides = [1, 1]} : vector<8x96xf32> to vector<8x32xf32>
    %8 = vector.extract_strided_slice %6 {offsets = [0, 32], sizes = [8, 32], strides = [1, 1]} : vector<8x96xf32> to vector<8x32xf32>
    %9 = vector.extract_strided_slice %6 {offsets = [0, 64], sizes = [8, 32], strides = [1, 1]} : vector<8x96xf32> to vector<8x32xf32>
    %c0_6 = arith.constant 0 : index
    %c0_7 = arith.constant 0 : index
    %10 = vector.load %arg4[%c0_6, %c0_7] : memref<32x96xf32, #tpu.memory_space<vmem>>, vector<32x96xf32>
    %c0_8 = arith.constant 0 : index
    %c0_9 = arith.constant 0 : index
    %11 = vector.load %arg6[%c0_8, %c0_9] : memref<1x32xf32, #tpu.memory_space<vmem>>, vector<1x32xf32>
    %cst_10 = arith.constant 0.000000e+00 : f32
    %12 = vector.broadcast %cst_10 : f32 to vector<1x32xf32>
    %cst_11 = arith.constant dense<0.000000e+00> : vector<1x96xf32>
    %13 = tpu.matmul %12, %10, %cst_11 {dimension_numbers = #tpu.dot_dimension_numbers<[1], [0], [0], [1], [0, 0, 1, 1], [], []>} : vector<1x32xf32>, vector<32x96xf32>, vector<1x96xf32> -> vector<1x96xf32>
    %14 = vector.extract_strided_slice %7 {offsets = [0, 0], sizes = [1, 32], strides = [1, 1]} : vector<8x32xf32> to vector<1x32xf32>
    %15 = vector.extract_strided_slice %13 {offsets = [0, 0], sizes = [1, 32], strides = [1, 1]} : vector<1x96xf32> to vector<1x32xf32>
    %16 = arith.addf %14, %15 : vector<1x32xf32>
    %17 = arith.negf %16 : vector<1x32xf32>
    %18 = math.exp %17 : vector<1x32xf32>
    %cst_12 = arith.constant 1.000000e+00 : f32
    %19 = vector.broadcast %cst_12 : f32 to vector<1x32xf32>
    %20 = arith.addf %19, %18 : vector<1x32xf32>
    %21 = arith.divf %19, %20 : vector<1x32xf32>
    %22 = vector.extract_strided_slice %8 {offsets = [0, 0], sizes = [1, 32], strides = [1, 1]} : vector<8x32xf32> to vector<1x32xf32>
    %23 = vector.extract_strided_slice %13 {offsets = [0, 32], sizes = [1, 32], strides = [1, 1]} : vector<1x96xf32> to vector<1x32xf32>
    %24 = arith.addf %22, %23 : vector<1x32xf32>
    %25 = arith.negf %24 : vector<1x32xf32>
    %26 = math.exp %25 : vector<1x32xf32>
    %cst_13 = arith.constant 1.000000e+00 : f32
    %27 = vector.broadcast %cst_13 : f32 to vector<1x32xf32>
    %28 = arith.addf %27, %26 : vector<1x32xf32>
    %29 = arith.divf %27, %28 : vector<1x32xf32>
    %30 = vector.extract_strided_slice %9 {offsets = [0, 0], sizes = [1, 32], strides = [1, 1]} : vector<8x32xf32> to vector<1x32xf32>
    %31 = vector.extract_strided_slice %13 {offsets = [0, 64], sizes = [1, 32], strides = [1, 1]} : vector<1x96xf32> to vector<1x32xf32>
    %32 = arith.addf %31, %11 : vector<1x32xf32>
    %33 = arith.mulf %21, %32 : vector<1x32xf32>
    %34 = arith.addf %30, %33 : vector<1x32xf32>
    %35 = math.tanh %34 : vector<1x32xf32>
    %cst_14 = arith.constant 1.000000e+00 : f32
    %36 = vector.broadcast %cst_14 : f32 to vector<1x32xf32>
    %37 = arith.subf %36, %29 : vector<1x32xf32>
    %38 = arith.mulf %37, %35 : vector<1x32xf32>
    %39 = arith.mulf %29, %12 : vector<1x32xf32>
    %40 = arith.addf %38, %39 : vector<1x32xf32>
    %cst_15 = arith.constant dense<0.000000e+00> : vector<1x96xf32>
    %41 = tpu.matmul %40, %10, %cst_15 {dimension_numbers = #tpu.dot_dimension_numbers<[1], [0], [0], [1], [0, 0, 1, 1], [], []>} : vector<1x32xf32>, vector<32x96xf32>, vector<1x96xf32> -> vector<1x96xf32>
    %42 = vector.extract_strided_slice %7 {offsets = [1, 0], sizes = [1, 32], strides = [1, 1]} : vector<8x32xf32> to vector<1x32xf32>
    %43 = vector.extract_strided_slice %41 {offsets = [0, 0], sizes = [1, 32], strides = [1, 1]} : vector<1x96xf32> to vector<1x32xf32>
    %44 = arith.addf %42, %43 : vector<1x32xf32>
    %45 = arith.negf %44 : vector<1x32xf32>
    %46 = math.exp %45 : vector<1x32xf32>
    %cst_16 = arith.constant 1.000000e+00 : f32
    %47 = vector.broadcast %cst_16 : f32 to vector<1x32xf32>
    %48 = arith.addf %47, %46 : vector<1x32xf32>
    %49 = arith.divf %47, %48 : vector<1x32xf32>
    %50 = vector.extract_strided_slice %8 {offsets = [1, 0], sizes = [1, 32], strides = [1, 1]} : vector<8x32xf32> to vector<1x32xf32>
    %51 = vector.extract_strided_slice %41 {offsets = [0, 32], sizes = [1, 32], strides = [1, 1]} : vector<1x96xf32> to vector<1x32xf32>
    %52 = arith.addf %50, %51 : vector<1x32xf32>
    %53 = arith.negf %52 : vector<1x32xf32>
    %54 = math.exp %53 : vector<1x32xf32>
    %cst_17 = arith.constant 1.000000e+00 : f32
    %55 = vector.broadcast %cst_17 : f32 to vector<1x32xf32>
    %56 = arith.addf %55, %54 : vector<1x32xf32>
    %57 = arith.divf %55, %56 : vector<1x32xf32>
    %58 = vector.extract_strided_slice %9 {offsets = [1, 0], sizes = [1, 32], strides = [1, 1]} : vector<8x32xf32> to vector<1x32xf32>
    %59 = vector.extract_strided_slice %41 {offsets = [0, 64], sizes = [1, 32], strides = [1, 1]} : vector<1x96xf32> to vector<1x32xf32>
    %60 = arith.addf %59, %11 : vector<1x32xf32>
    %61 = arith.mulf %49, %60 : vector<1x32xf32>
    %62 = arith.addf %58, %61 : vector<1x32xf32>
    %63 = math.tanh %62 : vector<1x32xf32>
    %cst_18 = arith.constant 1.000000e+00 : f32
    %64 = vector.broadcast %cst_18 : f32 to vector<1x32xf32>
    %65 = arith.subf %64, %57 : vector<1x32xf32>
    %66 = arith.mulf %65, %63 : vector<1x32xf32>
    %67 = arith.mulf %57, %40 : vector<1x32xf32>
    %68 = arith.addf %66, %67 : vector<1x32xf32>
    %cst_19 = arith.constant dense<0.000000e+00> : vector<1x96xf32>
    %69 = tpu.matmul %68, %10, %cst_19 {dimension_numbers = #tpu.dot_dimension_numbers<[1], [0], [0], [1], [0, 0, 1, 1], [], []>} : vector<1x32xf32>, vector<32x96xf32>, vector<1x96xf32> -> vector<1x96xf32>
    %70 = vector.extract_strided_slice %7 {offsets = [2, 0], sizes = [1, 32], strides = [1, 1]} : vector<8x32xf32> to vector<1x32xf32>
    %71 = vector.extract_strided_slice %69 {offsets = [0, 0], sizes = [1, 32], strides = [1, 1]} : vector<1x96xf32> to vector<1x32xf32>
    %72 = arith.addf %70, %71 : vector<1x32xf32>
    %73 = arith.negf %72 : vector<1x32xf32>
    %74 = math.exp %73 : vector<1x32xf32>
    %cst_20 = arith.constant 1.000000e+00 : f32
    %75 = vector.broadcast %cst_20 : f32 to vector<1x32xf32>
    %76 = arith.addf %75, %74 : vector<1x32xf32>
    %77 = arith.divf %75, %76 : vector<1x32xf32>
    %78 = vector.extract_strided_slice %8 {offsets = [2, 0], sizes = [1, 32], strides = [1, 1]} : vector<8x32xf32> to vector<1x32xf32>
    %79 = vector.extract_strided_slice %69 {offsets = [0, 32], sizes = [1, 32], strides = [1, 1]} : vector<1x96xf32> to vector<1x32xf32>
    %80 = arith.addf %78, %79 : vector<1x32xf32>
    %81 = arith.negf %80 : vector<1x32xf32>
    %82 = math.exp %81 : vector<1x32xf32>
    %cst_21 = arith.constant 1.000000e+00 : f32
    %83 = vector.broadcast %cst_21 : f32 to vector<1x32xf32>
    %84 = arith.addf %83, %82 : vector<1x32xf32>
    %85 = arith.divf %83, %84 : vector<1x32xf32>
    %86 = vector.extract_strided_slice %9 {offsets = [2, 0], sizes = [1, 32], strides = [1, 1]} : vector<8x32xf32> to vector<1x32xf32>
    %87 = vector.extract_strided_slice %69 {offsets = [0, 64], sizes = [1, 32], strides = [1, 1]} : vector<1x96xf32> to vector<1x32xf32>
    %88 = arith.addf %87, %11 : vector<1x32xf32>
    %89 = arith.mulf %77, %88 : vector<1x32xf32>
    %90 = arith.addf %86, %89 : vector<1x32xf32>
    %91 = math.tanh %90 : vector<1x32xf32>
    %cst_22 = arith.constant 1.000000e+00 : f32
    %92 = vector.broadcast %cst_22 : f32 to vector<1x32xf32>
    %93 = arith.subf %92, %85 : vector<1x32xf32>
    %94 = arith.mulf %93, %91 : vector<1x32xf32>
    %95 = arith.mulf %85, %68 : vector<1x32xf32>
    %96 = arith.addf %94, %95 : vector<1x32xf32>
    %cst_23 = arith.constant dense<0.000000e+00> : vector<1x96xf32>
    %97 = tpu.matmul %96, %10, %cst_23 {dimension_numbers = #tpu.dot_dimension_numbers<[1], [0], [0], [1], [0, 0, 1, 1], [], []>} : vector<1x32xf32>, vector<32x96xf32>, vector<1x96xf32> -> vector<1x96xf32>
    %98 = vector.extract_strided_slice %7 {offsets = [3, 0], sizes = [1, 32], strides = [1, 1]} : vector<8x32xf32> to vector<1x32xf32>
    %99 = vector.extract_strided_slice %97 {offsets = [0, 0], sizes = [1, 32], strides = [1, 1]} : vector<1x96xf32> to vector<1x32xf32>
    %100 = arith.addf %98, %99 : vector<1x32xf32>
    %101 = arith.negf %100 : vector<1x32xf32>
    %102 = math.exp %101 : vector<1x32xf32>
    %cst_24 = arith.constant 1.000000e+00 : f32
    %103 = vector.broadcast %cst_24 : f32 to vector<1x32xf32>
    %104 = arith.addf %103, %102 : vector<1x32xf32>
    %105 = arith.divf %103, %104 : vector<1x32xf32>
    %106 = vector.extract_strided_slice %8 {offsets = [3, 0], sizes = [1, 32], strides = [1, 1]} : vector<8x32xf32> to vector<1x32xf32>
    %107 = vector.extract_strided_slice %97 {offsets = [0, 32], sizes = [1, 32], strides = [1, 1]} : vector<1x96xf32> to vector<1x32xf32>
    %108 = arith.addf %106, %107 : vector<1x32xf32>
    %109 = arith.negf %108 : vector<1x32xf32>
    %110 = math.exp %109 : vector<1x32xf32>
    %cst_25 = arith.constant 1.000000e+00 : f32
    %111 = vector.broadcast %cst_25 : f32 to vector<1x32xf32>
    %112 = arith.addf %111, %110 : vector<1x32xf32>
    %113 = arith.divf %111, %112 : vector<1x32xf32>
    %114 = vector.extract_strided_slice %9 {offsets = [3, 0], sizes = [1, 32], strides = [1, 1]} : vector<8x32xf32> to vector<1x32xf32>
    %115 = vector.extract_strided_slice %97 {offsets = [0, 64], sizes = [1, 32], strides = [1, 1]} : vector<1x96xf32> to vector<1x32xf32>
    %116 = arith.addf %115, %11 : vector<1x32xf32>
    %117 = arith.mulf %105, %116 : vector<1x32xf32>
    %118 = arith.addf %114, %117 : vector<1x32xf32>
    %119 = math.tanh %118 : vector<1x32xf32>
    %cst_26 = arith.constant 1.000000e+00 : f32
    %120 = vector.broadcast %cst_26 : f32 to vector<1x32xf32>
    %121 = arith.subf %120, %113 : vector<1x32xf32>
    %122 = arith.mulf %121, %119 : vector<1x32xf32>
    %123 = arith.mulf %113, %96 : vector<1x32xf32>
    %124 = arith.addf %122, %123 : vector<1x32xf32>
    %cst_27 = arith.constant dense<0.000000e+00> : vector<1x96xf32>
    %125 = tpu.matmul %124, %10, %cst_27 {dimension_numbers = #tpu.dot_dimension_numbers<[1], [0], [0], [1], [0, 0, 1, 1], [], []>} : vector<1x32xf32>, vector<32x96xf32>, vector<1x96xf32> -> vector<1x96xf32>
    %126 = vector.extract_strided_slice %7 {offsets = [4, 0], sizes = [1, 32], strides = [1, 1]} : vector<8x32xf32> to vector<1x32xf32>
    %127 = vector.extract_strided_slice %125 {offsets = [0, 0], sizes = [1, 32], strides = [1, 1]} : vector<1x96xf32> to vector<1x32xf32>
    %128 = arith.addf %126, %127 : vector<1x32xf32>
    %129 = arith.negf %128 : vector<1x32xf32>
    %130 = math.exp %129 : vector<1x32xf32>
    %cst_28 = arith.constant 1.000000e+00 : f32
    %131 = vector.broadcast %cst_28 : f32 to vector<1x32xf32>
    %132 = arith.addf %131, %130 : vector<1x32xf32>
    %133 = arith.divf %131, %132 : vector<1x32xf32>
    %134 = vector.extract_strided_slice %8 {offsets = [4, 0], sizes = [1, 32], strides = [1, 1]} : vector<8x32xf32> to vector<1x32xf32>
    %135 = vector.extract_strided_slice %125 {offsets = [0, 32], sizes = [1, 32], strides = [1, 1]} : vector<1x96xf32> to vector<1x32xf32>
    %136 = arith.addf %134, %135 : vector<1x32xf32>
    %137 = arith.negf %136 : vector<1x32xf32>
    %138 = math.exp %137 : vector<1x32xf32>
    %cst_29 = arith.constant 1.000000e+00 : f32
    %139 = vector.broadcast %cst_29 : f32 to vector<1x32xf32>
    %140 = arith.addf %139, %138 : vector<1x32xf32>
    %141 = arith.divf %139, %140 : vector<1x32xf32>
    %142 = vector.extract_strided_slice %9 {offsets = [4, 0], sizes = [1, 32], strides = [1, 1]} : vector<8x32xf32> to vector<1x32xf32>
    %143 = vector.extract_strided_slice %125 {offsets = [0, 64], sizes = [1, 32], strides = [1, 1]} : vector<1x96xf32> to vector<1x32xf32>
    %144 = arith.addf %143, %11 : vector<1x32xf32>
    %145 = arith.mulf %133, %144 : vector<1x32xf32>
    %146 = arith.addf %142, %145 : vector<1x32xf32>
    %147 = math.tanh %146 : vector<1x32xf32>
    %cst_30 = arith.constant 1.000000e+00 : f32
    %148 = vector.broadcast %cst_30 : f32 to vector<1x32xf32>
    %149 = arith.subf %148, %141 : vector<1x32xf32>
    %150 = arith.mulf %149, %147 : vector<1x32xf32>
    %151 = arith.mulf %141, %124 : vector<1x32xf32>
    %152 = arith.addf %150, %151 : vector<1x32xf32>
    %cst_31 = arith.constant dense<0.000000e+00> : vector<1x96xf32>
    %153 = tpu.matmul %152, %10, %cst_31 {dimension_numbers = #tpu.dot_dimension_numbers<[1], [0], [0], [1], [0, 0, 1, 1], [], []>} : vector<1x32xf32>, vector<32x96xf32>, vector<1x96xf32> -> vector<1x96xf32>
    %154 = vector.extract_strided_slice %7 {offsets = [5, 0], sizes = [1, 32], strides = [1, 1]} : vector<8x32xf32> to vector<1x32xf32>
    %155 = vector.extract_strided_slice %153 {offsets = [0, 0], sizes = [1, 32], strides = [1, 1]} : vector<1x96xf32> to vector<1x32xf32>
    %156 = arith.addf %154, %155 : vector<1x32xf32>
    %157 = arith.negf %156 : vector<1x32xf32>
    %158 = math.exp %157 : vector<1x32xf32>
    %cst_32 = arith.constant 1.000000e+00 : f32
    %159 = vector.broadcast %cst_32 : f32 to vector<1x32xf32>
    %160 = arith.addf %159, %158 : vector<1x32xf32>
    %161 = arith.divf %159, %160 : vector<1x32xf32>
    %162 = vector.extract_strided_slice %8 {offsets = [5, 0], sizes = [1, 32], strides = [1, 1]} : vector<8x32xf32> to vector<1x32xf32>
    %163 = vector.extract_strided_slice %153 {offsets = [0, 32], sizes = [1, 32], strides = [1, 1]} : vector<1x96xf32> to vector<1x32xf32>
    %164 = arith.addf %162, %163 : vector<1x32xf32>
    %165 = arith.negf %164 : vector<1x32xf32>
    %166 = math.exp %165 : vector<1x32xf32>
    %cst_33 = arith.constant 1.000000e+00 : f32
    %167 = vector.broadcast %cst_33 : f32 to vector<1x32xf32>
    %168 = arith.addf %167, %166 : vector<1x32xf32>
    %169 = arith.divf %167, %168 : vector<1x32xf32>
    %170 = vector.extract_strided_slice %9 {offsets = [5, 0], sizes = [1, 32], strides = [1, 1]} : vector<8x32xf32> to vector<1x32xf32>
    %171 = vector.extract_strided_slice %153 {offsets = [0, 64], sizes = [1, 32], strides = [1, 1]} : vector<1x96xf32> to vector<1x32xf32>
    %172 = arith.addf %171, %11 : vector<1x32xf32>
    %173 = arith.mulf %161, %172 : vector<1x32xf32>
    %174 = arith.addf %170, %173 : vector<1x32xf32>
    %175 = math.tanh %174 : vector<1x32xf32>
    %cst_34 = arith.constant 1.000000e+00 : f32
    %176 = vector.broadcast %cst_34 : f32 to vector<1x32xf32>
    %177 = arith.subf %176, %169 : vector<1x32xf32>
    %178 = arith.mulf %177, %175 : vector<1x32xf32>
    %179 = arith.mulf %169, %152 : vector<1x32xf32>
    %180 = arith.addf %178, %179 : vector<1x32xf32>
    %cst_35 = arith.constant dense<0.000000e+00> : vector<1x96xf32>
    %181 = tpu.matmul %180, %10, %cst_35 {dimension_numbers = #tpu.dot_dimension_numbers<[1], [0], [0], [1], [0, 0, 1, 1], [], []>} : vector<1x32xf32>, vector<32x96xf32>, vector<1x96xf32> -> vector<1x96xf32>
    %182 = vector.extract_strided_slice %7 {offsets = [6, 0], sizes = [1, 32], strides = [1, 1]} : vector<8x32xf32> to vector<1x32xf32>
    %183 = vector.extract_strided_slice %181 {offsets = [0, 0], sizes = [1, 32], strides = [1, 1]} : vector<1x96xf32> to vector<1x32xf32>
    %184 = arith.addf %182, %183 : vector<1x32xf32>
    %185 = arith.negf %184 : vector<1x32xf32>
    %186 = math.exp %185 : vector<1x32xf32>
    %cst_36 = arith.constant 1.000000e+00 : f32
    %187 = vector.broadcast %cst_36 : f32 to vector<1x32xf32>
    %188 = arith.addf %187, %186 : vector<1x32xf32>
    %189 = arith.divf %187, %188 : vector<1x32xf32>
    %190 = vector.extract_strided_slice %8 {offsets = [6, 0], sizes = [1, 32], strides = [1, 1]} : vector<8x32xf32> to vector<1x32xf32>
    %191 = vector.extract_strided_slice %181 {offsets = [0, 32], sizes = [1, 32], strides = [1, 1]} : vector<1x96xf32> to vector<1x32xf32>
    %192 = arith.addf %190, %191 : vector<1x32xf32>
    %193 = arith.negf %192 : vector<1x32xf32>
    %194 = math.exp %193 : vector<1x32xf32>
    %cst_37 = arith.constant 1.000000e+00 : f32
    %195 = vector.broadcast %cst_37 : f32 to vector<1x32xf32>
    %196 = arith.addf %195, %194 : vector<1x32xf32>
    %197 = arith.divf %195, %196 : vector<1x32xf32>
    %198 = vector.extract_strided_slice %9 {offsets = [6, 0], sizes = [1, 32], strides = [1, 1]} : vector<8x32xf32> to vector<1x32xf32>
    %199 = vector.extract_strided_slice %181 {offsets = [0, 64], sizes = [1, 32], strides = [1, 1]} : vector<1x96xf32> to vector<1x32xf32>
    %200 = arith.addf %199, %11 : vector<1x32xf32>
    %201 = arith.mulf %189, %200 : vector<1x32xf32>
    %202 = arith.addf %198, %201 : vector<1x32xf32>
    %203 = math.tanh %202 : vector<1x32xf32>
    %cst_38 = arith.constant 1.000000e+00 : f32
    %204 = vector.broadcast %cst_38 : f32 to vector<1x32xf32>
    %205 = arith.subf %204, %197 : vector<1x32xf32>
    %206 = arith.mulf %205, %203 : vector<1x32xf32>
    %207 = arith.mulf %197, %180 : vector<1x32xf32>
    %208 = arith.addf %206, %207 : vector<1x32xf32>
    %cst_39 = arith.constant dense<0.000000e+00> : vector<1x96xf32>
    %209 = tpu.matmul %208, %10, %cst_39 {dimension_numbers = #tpu.dot_dimension_numbers<[1], [0], [0], [1], [0, 0, 1, 1], [], []>} : vector<1x32xf32>, vector<32x96xf32>, vector<1x96xf32> -> vector<1x96xf32>
    %210 = vector.extract_strided_slice %7 {offsets = [7, 0], sizes = [1, 32], strides = [1, 1]} : vector<8x32xf32> to vector<1x32xf32>
    %211 = vector.extract_strided_slice %209 {offsets = [0, 0], sizes = [1, 32], strides = [1, 1]} : vector<1x96xf32> to vector<1x32xf32>
    %212 = arith.addf %210, %211 : vector<1x32xf32>
    %213 = arith.negf %212 : vector<1x32xf32>
    %214 = math.exp %213 : vector<1x32xf32>
    %cst_40 = arith.constant 1.000000e+00 : f32
    %215 = vector.broadcast %cst_40 : f32 to vector<1x32xf32>
    %216 = arith.addf %215, %214 : vector<1x32xf32>
    %217 = arith.divf %215, %216 : vector<1x32xf32>
    %218 = vector.extract_strided_slice %8 {offsets = [7, 0], sizes = [1, 32], strides = [1, 1]} : vector<8x32xf32> to vector<1x32xf32>
    %219 = vector.extract_strided_slice %209 {offsets = [0, 32], sizes = [1, 32], strides = [1, 1]} : vector<1x96xf32> to vector<1x32xf32>
    %220 = arith.addf %218, %219 : vector<1x32xf32>
    %221 = arith.negf %220 : vector<1x32xf32>
    %222 = math.exp %221 : vector<1x32xf32>
    %cst_41 = arith.constant 1.000000e+00 : f32
    %223 = vector.broadcast %cst_41 : f32 to vector<1x32xf32>
    %224 = arith.addf %223, %222 : vector<1x32xf32>
    %225 = arith.divf %223, %224 : vector<1x32xf32>
    %226 = vector.extract_strided_slice %9 {offsets = [7, 0], sizes = [1, 32], strides = [1, 1]} : vector<8x32xf32> to vector<1x32xf32>
    %227 = vector.extract_strided_slice %209 {offsets = [0, 64], sizes = [1, 32], strides = [1, 1]} : vector<1x96xf32> to vector<1x32xf32>
    %228 = arith.addf %227, %11 : vector<1x32xf32>
    %229 = arith.mulf %217, %228 : vector<1x32xf32>
    %230 = arith.addf %226, %229 : vector<1x32xf32>
    %231 = math.tanh %230 : vector<1x32xf32>
    %cst_42 = arith.constant 1.000000e+00 : f32
    %232 = vector.broadcast %cst_42 : f32 to vector<1x32xf32>
    %233 = arith.subf %232, %225 : vector<1x32xf32>
    %234 = arith.mulf %233, %231 : vector<1x32xf32>
    %235 = arith.mulf %225, %208 : vector<1x32xf32>
    %236 = arith.addf %234, %235 : vector<1x32xf32>
    %237 = tpu.concatenate %40, %68, %96, %124, %152, %180, %208, %236 in 0 : vector<1x32xf32>, vector<1x32xf32>, vector<1x32xf32>, vector<1x32xf32>, vector<1x32xf32>, vector<1x32xf32>, vector<1x32xf32>, vector<1x32xf32> -> vector<8x32xf32>
    %c0_43 = arith.constant 0 : index
    %c0_44 = arith.constant 0 : index
    %c0_45 = arith.constant 0 : index
    %238 = vector.load %arg2[%c0_43, %c0_44, %c0_45] : memref<1x4x2xf32, #tpu.memory_space<vmem>>, vector<1x4x2xf32>
    %239 = vector.shape_cast %238 : vector<1x4x2xf32> to vector<4x2xf32>
    %c0_46 = arith.constant 0 : index
    %c0_47 = arith.constant 0 : index
    %240 = vector.load %arg7[%c0_46, %c0_47] : memref<2x16xf32, #tpu.memory_space<vmem>>, vector<2x16xf32>
    %cst_48 = arith.constant dense<0.000000e+00> : vector<4x16xf32>
    %241 = tpu.matmul %239, %240, %cst_48 {dimension_numbers = #tpu.dot_dimension_numbers<[1], [0], [0], [1], [0, 0, 1, 1], [], []>} : vector<4x2xf32>, vector<2x16xf32>, vector<4x16xf32> -> vector<4x16xf32>
    %c0_49 = arith.constant 0 : index
    %c0_50 = arith.constant 0 : index
    %242 = vector.load %arg8[%c0_49, %c0_50] : memref<1x16xf32, #tpu.memory_space<vmem>>, vector<1x16xf32>
    %243 = vector.broadcast %242 : vector<1x16xf32> to vector<4x16xf32>
    %244 = arith.addf %241, %243 : vector<4x16xf32>
    %cst_51 = arith.constant 0.000000e+00 : f32
    %245 = vector.broadcast %cst_51 : f32 to vector<4x16xf32>
    %246 = arith.cmpf oge, %244, %245 : vector<4x16xf32>
    %cst_52 = arith.constant 0.00999999977 : f32
    %247 = vector.broadcast %cst_52 : f32 to vector<4x16xf32>
    %248 = arith.mulf %247, %244 : vector<4x16xf32>
    %249 = arith.select %246, %244, %248 : vector<4x16xi1>, vector<4x16xf32>
    %c0_53 = arith.constant 0 : index
    %c0_54 = arith.constant 0 : index
    %250 = vector.load %arg9[%c0_53, %c0_54] : memref<16x32xf32, #tpu.memory_space<vmem>>, vector<16x32xf32>
    %cst_55 = arith.constant dense<0.000000e+00> : vector<4x32xf32>
    %251 = tpu.matmul %249, %250, %cst_55 {dimension_numbers = #tpu.dot_dimension_numbers<[1], [0], [0], [1], [0, 0, 1, 1], [], []>} : vector<4x16xf32>, vector<16x32xf32>, vector<4x32xf32> -> vector<4x32xf32>
    %c0_56 = arith.constant 0 : index
    %c0_57 = arith.constant 0 : index
    %252 = vector.load %arg10[%c0_56, %c0_57] : memref<1x32xf32, #tpu.memory_space<vmem>>, vector<1x32xf32>
    %253 = vector.broadcast %252 : vector<1x32xf32> to vector<4x32xf32>
    %254 = arith.addf %251, %253 : vector<4x32xf32>
    %cst_58 = arith.constant 0.000000e+00 : f32
    %255 = vector.broadcast %cst_58 : f32 to vector<4x32xf32>
    %256 = arith.cmpf oge, %254, %255 : vector<4x32xf32>
    %cst_59 = arith.constant 0.00999999977 : f32
    %257 = vector.broadcast %cst_59 : f32 to vector<4x32xf32>
    %258 = arith.mulf %257, %254 : vector<4x32xf32>
    %259 = arith.select %256, %254, %258 : vector<4x32xi1>, vector<4x32xf32>
    %cst_60 = arith.constant 0.000000e+00 : f32
    %260 = vector.broadcast %cst_60 : f32 to vector<1x32xf32>
    %261 = tpu.concatenate %237, %259, %260 in 0 : vector<8x32xf32>, vector<4x32xf32>, vector<1x32xf32> -> vector<13x32xf32>
    %c0_61 = arith.constant 0 : index
    %c0_62 = arith.constant 0 : index
    %262 = vector.load %arg11[%c0_61, %c0_62] : memref<32x32xf32, #tpu.memory_space<vmem>>, vector<32x32xf32>
    %cst_63 = arith.constant dense<0.000000e+00> : vector<13x32xf32>
    %263 = tpu.matmul %261, %262, %cst_63 {dimension_numbers = #tpu.dot_dimension_numbers<[1], [0], [0], [1], [0, 0, 1, 1], [], []>} : vector<13x32xf32>, vector<32x32xf32>, vector<13x32xf32> -> vector<13x32xf32>
    %c0_64 = arith.constant 0 : index
    %c0_65 = arith.constant 0 : index
    %264 = vector.load %arg12[%c0_64, %c0_65] : memref<1x32xf32, #tpu.memory_space<vmem>>, vector<1x32xf32>
    %265 = vector.broadcast %264 : vector<1x32xf32> to vector<13x32xf32>
    %266 = arith.addf %263, %265 : vector<13x32xf32>
    %c0_66 = arith.constant 0 : index
    %c0_67 = arith.constant 0 : index
    %267 = vector.load %arg13[%c0_66, %c0_67] : memref<32x32xf32, #tpu.memory_space<vmem>>, vector<32x32xf32>
    %cst_68 = arith.constant dense<0.000000e+00> : vector<13x32xf32>
    %268 = tpu.matmul %261, %267, %cst_68 {dimension_numbers = #tpu.dot_dimension_numbers<[1], [0], [0], [1], [0, 0, 1, 1], [], []>} : vector<13x32xf32>, vector<32x32xf32>, vector<13x32xf32> -> vector<13x32xf32>
    %c0_69 = arith.constant 0 : index
    %c0_70 = arith.constant 0 : index
    %269 = vector.load %arg14[%c0_69, %c0_70] : memref<1x32xf32, #tpu.memory_space<vmem>>, vector<1x32xf32>
    %270 = vector.broadcast %269 : vector<1x32xf32> to vector<13x32xf32>
    %271 = arith.addf %268, %270 : vector<13x32xf32>
    %c0_71 = arith.constant 0 : index
    %c0_72 = arith.constant 0 : index
    %272 = vector.load %arg15[%c0_71, %c0_72] : memref<32x32xf32, #tpu.memory_space<vmem>>, vector<32x32xf32>
    %cst_73 = arith.constant dense<0.000000e+00> : vector<13x32xf32>
    %273 = tpu.matmul %261, %272, %cst_73 {dimension_numbers = #tpu.dot_dimension_numbers<[1], [0], [0], [1], [0, 0, 1, 1], [], []>} : vector<13x32xf32>, vector<32x32xf32>, vector<13x32xf32> -> vector<13x32xf32>
    %c0_74 = arith.constant 0 : index
    %c0_75 = arith.constant 0 : index
    %274 = vector.load %arg16[%c0_74, %c0_75] : memref<1x32xf32, #tpu.memory_space<vmem>>, vector<1x32xf32>
    %275 = vector.broadcast %274 : vector<1x32xf32> to vector<13x32xf32>
    %276 = arith.addf %273, %275 : vector<13x32xf32>
    %c0_76 = arith.constant 0 : index
    %c0_77 = arith.constant 0 : index
    %277 = vector.load %arg17[%c0_76, %c0_77] : memref<32x32xf32, #tpu.memory_space<vmem>>, vector<32x32xf32>
    %cst_78 = arith.constant 0.000000e+00 : f32
    %278 = vector.broadcast %cst_78 : f32 to vector<13x32xf32>
    %279 = vector.extract_strided_slice %266 {offsets = [0, 0], sizes = [13, 8], strides = [1, 1]} : vector<13x32xf32> to vector<13x8xf32>
    %280 = vector.extract_strided_slice %271 {offsets = [0, 0], sizes = [13, 8], strides = [1, 1]} : vector<13x32xf32> to vector<13x8xf32>
    %281 = tpu.transpose %280, [1, 0] : vector<13x8xf32> -> vector<8x13xf32>
    %cst_79 = arith.constant dense<0.000000e+00> : vector<13x13xf32>
    %282 = tpu.matmul %279, %281, %cst_79 {dimension_numbers = #tpu.dot_dimension_numbers<[1], [0], [0], [1], [0, 0, 1, 1], [], []>} : vector<13x8xf32>, vector<8x13xf32>, vector<13x13xf32> -> vector<13x13xf32>
    %cst_80 = arith.constant dense<0xFF800000> : vector<13xf32>
    %283 = vector.multi_reduction <maximumf>, %282, %cst_80 [1] : vector<13x13xf32> to vector<13xf32>
    %284 = vector.shape_cast %283 : vector<13xf32> to vector<13x1xf32>
    %285 = vector.broadcast %284 : vector<13x1xf32> to vector<13x13xf32>
    %286 = arith.subf %282, %285 : vector<13x13xf32>
    %287 = math.exp %286 : vector<13x13xf32>
    %cst_81 = arith.constant dense<0.000000e+00> : vector<13xf32>
    %288 = vector.multi_reduction <add>, %287, %cst_81 [1] : vector<13x13xf32> to vector<13xf32>
    %289 = vector.shape_cast %288 : vector<13xf32> to vector<13x1xf32>
    %290 = tpu.reciprocal %289 {approx = true} : vector<13x1xf32> -> vector<13x1xf32>
    %291 = vector.broadcast %290 : vector<13x1xf32> to vector<13x13xf32>
    %292 = arith.mulf %287, %291 : vector<13x13xf32>
    %293 = vector.extract_strided_slice %276 {offsets = [0, 0], sizes = [13, 8], strides = [1, 1]} : vector<13x32xf32> to vector<13x8xf32>
    %cst_82 = arith.constant dense<0.000000e+00> : vector<13x8xf32>
    %294 = tpu.matmul %292, %293, %cst_82 {dimension_numbers = #tpu.dot_dimension_numbers<[1], [0], [0], [1], [0, 0, 1, 1], [], []>} : vector<13x13xf32>, vector<13x8xf32>, vector<13x8xf32> -> vector<13x8xf32>
    %295 = vector.extract_strided_slice %277 {offsets = [0, 0], sizes = [8, 32], strides = [1, 1]} : vector<32x32xf32> to vector<8x32xf32>
    %cst_83 = arith.constant dense<0.000000e+00> : vector<13x32xf32>
    %296 = tpu.matmul %294, %295, %cst_83 {dimension_numbers = #tpu.dot_dimension_numbers<[1], [0], [0], [1], [0, 0, 1, 1], [], []>} : vector<13x8xf32>, vector<8x32xf32>, vector<13x32xf32> -> vector<13x32xf32>
    %297 = arith.addf %278, %296 : vector<13x32xf32>
    %298 = vector.extract_strided_slice %266 {offsets = [0, 8], sizes = [13, 8], strides = [1, 1]} : vector<13x32xf32> to vector<13x8xf32>
    %299 = vector.extract_strided_slice %271 {offsets = [0, 8], sizes = [13, 8], strides = [1, 1]} : vector<13x32xf32> to vector<13x8xf32>
    %300 = tpu.transpose %299, [1, 0] : vector<13x8xf32> -> vector<8x13xf32>
    %cst_84 = arith.constant dense<0.000000e+00> : vector<13x13xf32>
    %301 = tpu.matmul %298, %300, %cst_84 {dimension_numbers = #tpu.dot_dimension_numbers<[1], [0], [0], [1], [0, 0, 1, 1], [], []>} : vector<13x8xf32>, vector<8x13xf32>, vector<13x13xf32> -> vector<13x13xf32>
    %cst_85 = arith.constant dense<0xFF800000> : vector<13xf32>
    %302 = vector.multi_reduction <maximumf>, %301, %cst_85 [1] : vector<13x13xf32> to vector<13xf32>
    %303 = vector.shape_cast %302 : vector<13xf32> to vector<13x1xf32>
    %304 = vector.broadcast %303 : vector<13x1xf32> to vector<13x13xf32>
    %305 = arith.subf %301, %304 : vector<13x13xf32>
    %306 = math.exp %305 : vector<13x13xf32>
    %cst_86 = arith.constant dense<0.000000e+00> : vector<13xf32>
    %307 = vector.multi_reduction <add>, %306, %cst_86 [1] : vector<13x13xf32> to vector<13xf32>
    %308 = vector.shape_cast %307 : vector<13xf32> to vector<13x1xf32>
    %309 = tpu.reciprocal %308 {approx = true} : vector<13x1xf32> -> vector<13x1xf32>
    %310 = vector.broadcast %309 : vector<13x1xf32> to vector<13x13xf32>
    %311 = arith.mulf %306, %310 : vector<13x13xf32>
    %312 = vector.extract_strided_slice %276 {offsets = [0, 8], sizes = [13, 8], strides = [1, 1]} : vector<13x32xf32> to vector<13x8xf32>
    %cst_87 = arith.constant dense<0.000000e+00> : vector<13x8xf32>
    %313 = tpu.matmul %311, %312, %cst_87 {dimension_numbers = #tpu.dot_dimension_numbers<[1], [0], [0], [1], [0, 0, 1, 1], [], []>} : vector<13x13xf32>, vector<13x8xf32>, vector<13x8xf32> -> vector<13x8xf32>
    %314 = vector.extract_strided_slice %277 {offsets = [8, 0], sizes = [8, 32], strides = [1, 1]} : vector<32x32xf32> to vector<8x32xf32>
    %cst_88 = arith.constant dense<0.000000e+00> : vector<13x32xf32>
    %315 = tpu.matmul %313, %314, %cst_88 {dimension_numbers = #tpu.dot_dimension_numbers<[1], [0], [0], [1], [0, 0, 1, 1], [], []>} : vector<13x8xf32>, vector<8x32xf32>, vector<13x32xf32> -> vector<13x32xf32>
    %316 = arith.addf %297, %315 : vector<13x32xf32>
    %317 = vector.extract_strided_slice %266 {offsets = [0, 16], sizes = [13, 8], strides = [1, 1]} : vector<13x32xf32> to vector<13x8xf32>
    %318 = vector.extract_strided_slice %271 {offsets = [0, 16], sizes = [13, 8], strides = [1, 1]} : vector<13x32xf32> to vector<13x8xf32>
    %319 = tpu.transpose %318, [1, 0] : vector<13x8xf32> -> vector<8x13xf32>
    %cst_89 = arith.constant dense<0.000000e+00> : vector<13x13xf32>
    %320 = tpu.matmul %317, %319, %cst_89 {dimension_numbers = #tpu.dot_dimension_numbers<[1], [0], [0], [1], [0, 0, 1, 1], [], []>} : vector<13x8xf32>, vector<8x13xf32>, vector<13x13xf32> -> vector<13x13xf32>
    %cst_90 = arith.constant dense<0xFF800000> : vector<13xf32>
    %321 = vector.multi_reduction <maximumf>, %320, %cst_90 [1] : vector<13x13xf32> to vector<13xf32>
    %322 = vector.shape_cast %321 : vector<13xf32> to vector<13x1xf32>
    %323 = vector.broadcast %322 : vector<13x1xf32> to vector<13x13xf32>
    %324 = arith.subf %320, %323 : vector<13x13xf32>
    %325 = math.exp %324 : vector<13x13xf32>
    %cst_91 = arith.constant dense<0.000000e+00> : vector<13xf32>
    %326 = vector.multi_reduction <add>, %325, %cst_91 [1] : vector<13x13xf32> to vector<13xf32>
    %327 = vector.shape_cast %326 : vector<13xf32> to vector<13x1xf32>
    %328 = tpu.reciprocal %327 {approx = true} : vector<13x1xf32> -> vector<13x1xf32>
    %329 = vector.broadcast %328 : vector<13x1xf32> to vector<13x13xf32>
    %330 = arith.mulf %325, %329 : vector<13x13xf32>
    %331 = vector.extract_strided_slice %276 {offsets = [0, 16], sizes = [13, 8], strides = [1, 1]} : vector<13x32xf32> to vector<13x8xf32>
    %cst_92 = arith.constant dense<0.000000e+00> : vector<13x8xf32>
    %332 = tpu.matmul %330, %331, %cst_92 {dimension_numbers = #tpu.dot_dimension_numbers<[1], [0], [0], [1], [0, 0, 1, 1], [], []>} : vector<13x13xf32>, vector<13x8xf32>, vector<13x8xf32> -> vector<13x8xf32>
    %333 = vector.extract_strided_slice %277 {offsets = [16, 0], sizes = [8, 32], strides = [1, 1]} : vector<32x32xf32> to vector<8x32xf32>
    %cst_93 = arith.constant dense<0.000000e+00> : vector<13x32xf32>
    %334 = tpu.matmul %332, %333, %cst_93 {dimension_numbers = #tpu.dot_dimension_numbers<[1], [0], [0], [1], [0, 0, 1, 1], [], []>} : vector<13x8xf32>, vector<8x32xf32>, vector<13x32xf32> -> vector<13x32xf32>
    %335 = arith.addf %316, %334 : vector<13x32xf32>
    %336 = vector.extract_strided_slice %266 {offsets = [0, 24], sizes = [13, 8], strides = [1, 1]} : vector<13x32xf32> to vector<13x8xf32>
    %337 = vector.extract_strided_slice %271 {offsets = [0, 24], sizes = [13, 8], strides = [1, 1]} : vector<13x32xf32> to vector<13x8xf32>
    %338 = tpu.transpose %337, [1, 0] : vector<13x8xf32> -> vector<8x13xf32>
    %cst_94 = arith.constant dense<0.000000e+00> : vector<13x13xf32>
    %339 = tpu.matmul %336, %338, %cst_94 {dimension_numbers = #tpu.dot_dimension_numbers<[1], [0], [0], [1], [0, 0, 1, 1], [], []>} : vector<13x8xf32>, vector<8x13xf32>, vector<13x13xf32> -> vector<13x13xf32>
    %cst_95 = arith.constant dense<0xFF800000> : vector<13xf32>
    %340 = vector.multi_reduction <maximumf>, %339, %cst_95 [1] : vector<13x13xf32> to vector<13xf32>
    %341 = vector.shape_cast %340 : vector<13xf32> to vector<13x1xf32>
    %342 = vector.broadcast %341 : vector<13x1xf32> to vector<13x13xf32>
    %343 = arith.subf %339, %342 : vector<13x13xf32>
    %344 = math.exp %343 : vector<13x13xf32>
    %cst_96 = arith.constant dense<0.000000e+00> : vector<13xf32>
    %345 = vector.multi_reduction <add>, %344, %cst_96 [1] : vector<13x13xf32> to vector<13xf32>
    %346 = vector.shape_cast %345 : vector<13xf32> to vector<13x1xf32>
    %347 = tpu.reciprocal %346 {approx = true} : vector<13x1xf32> -> vector<13x1xf32>
    %348 = vector.broadcast %347 : vector<13x1xf32> to vector<13x13xf32>
    %349 = arith.mulf %344, %348 : vector<13x13xf32>
    %350 = vector.extract_strided_slice %276 {offsets = [0, 24], sizes = [13, 8], strides = [1, 1]} : vector<13x32xf32> to vector<13x8xf32>
    %cst_97 = arith.constant dense<0.000000e+00> : vector<13x8xf32>
    %351 = tpu.matmul %349, %350, %cst_97 {dimension_numbers = #tpu.dot_dimension_numbers<[1], [0], [0], [1], [0, 0, 1, 1], [], []>} : vector<13x13xf32>, vector<13x8xf32>, vector<13x8xf32> -> vector<13x8xf32>
    %352 = vector.extract_strided_slice %277 {offsets = [24, 0], sizes = [8, 32], strides = [1, 1]} : vector<32x32xf32> to vector<8x32xf32>
    %cst_98 = arith.constant dense<0.000000e+00> : vector<13x32xf32>
    %353 = tpu.matmul %351, %352, %cst_98 {dimension_numbers = #tpu.dot_dimension_numbers<[1], [0], [0], [1], [0, 0, 1, 1], [], []>} : vector<13x8xf32>, vector<8x32xf32>, vector<13x32xf32> -> vector<13x32xf32>
    %354 = arith.addf %335, %353 : vector<13x32xf32>
    %c0_99 = arith.constant 0 : index
    %c0_100 = arith.constant 0 : index
    %355 = vector.load %arg18[%c0_99, %c0_100] : memref<1x32xf32, #tpu.memory_space<vmem>>, vector<1x32xf32>
    %356 = vector.broadcast %355 : vector<1x32xf32> to vector<13x32xf32>
    %357 = arith.addf %354, %356 : vector<13x32xf32>
    %358 = arith.addf %261, %357 : vector<13x32xf32>
    %c0_101 = arith.constant 0 : index
    %c0_102 = arith.constant 0 : index
    %359 = vector.load %arg19[%c0_101, %c0_102] : memref<1x32xf32, #tpu.memory_space<vmem>>, vector<1x32xf32>
    %c0_103 = arith.constant 0 : index
    %c0_104 = arith.constant 0 : index
    %360 = vector.load %arg20[%c0_103, %c0_104] : memref<1x32xf32, #tpu.memory_space<vmem>>, vector<1x32xf32>
    %cst_105 = arith.constant dense<0.000000e+00> : vector<13xf32>
    %361 = vector.multi_reduction <add>, %358, %cst_105 [1] : vector<13x32xf32> to vector<13xf32>
    %362 = vector.shape_cast %361 : vector<13xf32> to vector<13x1xf32>
    %cst_106 = arith.constant 3.200000e+01 : f32
    %363 = vector.broadcast %cst_106 : f32 to vector<13x1xf32>
    %364 = arith.divf %362, %363 : vector<13x1xf32>
    %365 = vector.broadcast %364 : vector<13x1xf32> to vector<13x32xf32>
    %366 = arith.subf %358, %365 : vector<13x32xf32>
    %367 = arith.mulf %366, %366 : vector<13x32xf32>
    %cst_107 = arith.constant dense<0.000000e+00> : vector<13xf32>
    %368 = vector.multi_reduction <add>, %367, %cst_107 [1] : vector<13x32xf32> to vector<13xf32>
    %369 = vector.shape_cast %368 : vector<13xf32> to vector<13x1xf32>
    %cst_108 = arith.constant 3.200000e+01 : f32
    %370 = vector.broadcast %cst_108 : f32 to vector<13x1xf32>
    %371 = arith.divf %369, %370 : vector<13x1xf32>
    %372 = vector.broadcast %364 : vector<13x1xf32> to vector<13x32xf32>
    %373 = arith.subf %358, %372 : vector<13x32xf32>
    %cst_109 = arith.constant 9.99999974E-6 : f32
    %374 = vector.broadcast %cst_109 : f32 to vector<13x1xf32>
    %375 = arith.addf %371, %374 : vector<13x1xf32>
    %376 = math.rsqrt %375 : vector<13x1xf32>
    %377 = vector.broadcast %376 : vector<13x1xf32> to vector<13x32xf32>
    %378 = arith.mulf %373, %377 : vector<13x32xf32>
    %379 = vector.broadcast %359 : vector<1x32xf32> to vector<13x32xf32>
    %380 = arith.mulf %378, %379 : vector<13x32xf32>
    %381 = vector.broadcast %360 : vector<1x32xf32> to vector<13x32xf32>
    %382 = arith.addf %380, %381 : vector<13x32xf32>
    %cst_110 = arith.constant 0.000000e+00 : f32
    %383 = vector.broadcast %cst_110 : f32 to vector<13x32xf32>
    %c0_111 = arith.constant 0 : index
    %c0_112 = arith.constant 0 : index
    %384 = vector.load %arg21[%c0_111, %c0_112] : memref<32x2048xf32, #tpu.memory_space<vmem>>, vector<32x512xf32>
    %cst_113 = arith.constant dense<0.000000e+00> : vector<13x512xf32>
    %385 = tpu.matmul %382, %384, %cst_113 {dimension_numbers = #tpu.dot_dimension_numbers<[1], [0], [0], [1], [0, 0, 1, 1], [], []>} : vector<13x32xf32>, vector<32x512xf32>, vector<13x512xf32> -> vector<13x512xf32>
    %c0_114 = arith.constant 0 : index
    %c0_115 = arith.constant 0 : index
    %386 = vector.load %arg22[%c0_114, %c0_115] : memref<1x2048xf32, #tpu.memory_space<vmem>>, vector<1x512xf32>
    %387 = vector.broadcast %386 : vector<1x512xf32> to vector<13x512xf32>
    %388 = arith.addf %385, %387 : vector<13x512xf32>
    %cst_116 = arith.constant 0.000000e+00 : f32
    %389 = vector.broadcast %cst_116 : f32 to vector<13x512xf32>
    %390 = arith.maximumf %388, %389 : vector<13x512xf32>
    %c0_117 = arith.constant 0 : index
    %c0_118 = arith.constant 0 : index
    %391 = vector.load %arg23[%c0_117, %c0_118] : memref<2048x32xf32, #tpu.memory_space<vmem>>, vector<512x32xf32>
    %cst_119 = arith.constant dense<0.000000e+00> : vector<13x32xf32>
    %392 = tpu.matmul %390, %391, %cst_119 {dimension_numbers = #tpu.dot_dimension_numbers<[1], [0], [0], [1], [0, 0, 1, 1], [], []>} : vector<13x512xf32>, vector<512x32xf32>, vector<13x32xf32> -> vector<13x32xf32>
    %393 = arith.addf %383, %392 : vector<13x32xf32>
    %c0_120 = arith.constant 0 : index
    %c512 = arith.constant 512 : index
    %394 = vector.load %arg21[%c0_120, %c512] : memref<32x2048xf32, #tpu.memory_space<vmem>>, vector<32x512xf32>
    %cst_121 = arith.constant dense<0.000000e+00> : vector<13x512xf32>
    %395 = tpu.matmul %382, %394, %cst_121 {dimension_numbers = #tpu.dot_dimension_numbers<[1], [0], [0], [1], [0, 0, 1, 1], [], []>} : vector<13x32xf32>, vector<32x512xf32>, vector<13x512xf32> -> vector<13x512xf32>
    %c0_122 = arith.constant 0 : index
    %c512_123 = arith.constant 512 : index
    %396 = vector.load %arg22[%c0_122, %c512_123] : memref<1x2048xf32, #tpu.memory_space<vmem>>, vector<1x512xf32>
    %397 = vector.broadcast %396 : vector<1x512xf32> to vector<13x512xf32>
    %398 = arith.addf %395, %397 : vector<13x512xf32>
    %cst_124 = arith.constant 0.000000e+00 : f32
    %399 = vector.broadcast %cst_124 : f32 to vector<13x512xf32>
    %400 = arith.maximumf %398, %399 : vector<13x512xf32>
    %c512_125 = arith.constant 512 : index
    %c0_126 = arith.constant 0 : index
    %401 = vector.load %arg23[%c512_125, %c0_126] : memref<2048x32xf32, #tpu.memory_space<vmem>>, vector<512x32xf32>
    %cst_127 = arith.constant dense<0.000000e+00> : vector<13x32xf32>
    %402 = tpu.matmul %400, %401, %cst_127 {dimension_numbers = #tpu.dot_dimension_numbers<[1], [0], [0], [1], [0, 0, 1, 1], [], []>} : vector<13x512xf32>, vector<512x32xf32>, vector<13x32xf32> -> vector<13x32xf32>
    %403 = arith.addf %393, %402 : vector<13x32xf32>
    %c0_128 = arith.constant 0 : index
    %c1024 = arith.constant 1024 : index
    %404 = vector.load %arg21[%c0_128, %c1024] : memref<32x2048xf32, #tpu.memory_space<vmem>>, vector<32x512xf32>
    %cst_129 = arith.constant dense<0.000000e+00> : vector<13x512xf32>
    %405 = tpu.matmul %382, %404, %cst_129 {dimension_numbers = #tpu.dot_dimension_numbers<[1], [0], [0], [1], [0, 0, 1, 1], [], []>} : vector<13x32xf32>, vector<32x512xf32>, vector<13x512xf32> -> vector<13x512xf32>
    %c0_130 = arith.constant 0 : index
    %c1024_131 = arith.constant 1024 : index
    %406 = vector.load %arg22[%c0_130, %c1024_131] : memref<1x2048xf32, #tpu.memory_space<vmem>>, vector<1x512xf32>
    %407 = vector.broadcast %406 : vector<1x512xf32> to vector<13x512xf32>
    %408 = arith.addf %405, %407 : vector<13x512xf32>
    %cst_132 = arith.constant 0.000000e+00 : f32
    %409 = vector.broadcast %cst_132 : f32 to vector<13x512xf32>
    %410 = arith.maximumf %408, %409 : vector<13x512xf32>
    %c1024_133 = arith.constant 1024 : index
    %c0_134 = arith.constant 0 : index
    %411 = vector.load %arg23[%c1024_133, %c0_134] : memref<2048x32xf32, #tpu.memory_space<vmem>>, vector<512x32xf32>
    %cst_135 = arith.constant dense<0.000000e+00> : vector<13x32xf32>
    %412 = tpu.matmul %410, %411, %cst_135 {dimension_numbers = #tpu.dot_dimension_numbers<[1], [0], [0], [1], [0, 0, 1, 1], [], []>} : vector<13x512xf32>, vector<512x32xf32>, vector<13x32xf32> -> vector<13x32xf32>
    %413 = arith.addf %403, %412 : vector<13x32xf32>
    %c0_136 = arith.constant 0 : index
    %c1536 = arith.constant 1536 : index
    %414 = vector.load %arg21[%c0_136, %c1536] : memref<32x2048xf32, #tpu.memory_space<vmem>>, vector<32x512xf32>
    %cst_137 = arith.constant dense<0.000000e+00> : vector<13x512xf32>
    %415 = tpu.matmul %382, %414, %cst_137 {dimension_numbers = #tpu.dot_dimension_numbers<[1], [0], [0], [1], [0, 0, 1, 1], [], []>} : vector<13x32xf32>, vector<32x512xf32>, vector<13x512xf32> -> vector<13x512xf32>
    %c0_138 = arith.constant 0 : index
    %c1536_139 = arith.constant 1536 : index
    %416 = vector.load %arg22[%c0_138, %c1536_139] : memref<1x2048xf32, #tpu.memory_space<vmem>>, vector<1x512xf32>
    %417 = vector.broadcast %416 : vector<1x512xf32> to vector<13x512xf32>
    %418 = arith.addf %415, %417 : vector<13x512xf32>
    %cst_140 = arith.constant 0.000000e+00 : f32
    %419 = vector.broadcast %cst_140 : f32 to vector<13x512xf32>
    %420 = arith.maximumf %418, %419 : vector<13x512xf32>
    %c1536_141 = arith.constant 1536 : index
    %c0_142 = arith.constant 0 : index
    %421 = vector.load %arg23[%c1536_141, %c0_142] : memref<2048x32xf32, #tpu.memory_space<vmem>>, vector<512x32xf32>
    %cst_143 = arith.constant dense<0.000000e+00> : vector<13x32xf32>
    %422 = tpu.matmul %420, %421, %cst_143 {dimension_numbers = #tpu.dot_dimension_numbers<[1], [0], [0], [1], [0, 0, 1, 1], [], []>} : vector<13x512xf32>, vector<512x32xf32>, vector<13x32xf32> -> vector<13x32xf32>
    %423 = arith.addf %413, %422 : vector<13x32xf32>
    %c0_144 = arith.constant 0 : index
    %c0_145 = arith.constant 0 : index
    %424 = vector.load %arg24[%c0_144, %c0_145] : memref<1x32xf32, #tpu.memory_space<vmem>>, vector<1x32xf32>
    %425 = vector.broadcast %424 : vector<1x32xf32> to vector<13x32xf32>
    %426 = arith.addf %423, %425 : vector<13x32xf32>
    %427 = arith.addf %382, %426 : vector<13x32xf32>
    %c0_146 = arith.constant 0 : index
    %c0_147 = arith.constant 0 : index
    %428 = vector.load %arg25[%c0_146, %c0_147] : memref<1x32xf32, #tpu.memory_space<vmem>>, vector<1x32xf32>
    %c0_148 = arith.constant 0 : index
    %c0_149 = arith.constant 0 : index
    %429 = vector.load %arg26[%c0_148, %c0_149] : memref<1x32xf32, #tpu.memory_space<vmem>>, vector<1x32xf32>
    %cst_150 = arith.constant dense<0.000000e+00> : vector<13xf32>
    %430 = vector.multi_reduction <add>, %427, %cst_150 [1] : vector<13x32xf32> to vector<13xf32>
    %431 = vector.shape_cast %430 : vector<13xf32> to vector<13x1xf32>
    %cst_151 = arith.constant 3.200000e+01 : f32
    %432 = vector.broadcast %cst_151 : f32 to vector<13x1xf32>
    %433 = arith.divf %431, %432 : vector<13x1xf32>
    %434 = vector.broadcast %433 : vector<13x1xf32> to vector<13x32xf32>
    %435 = arith.subf %427, %434 : vector<13x32xf32>
    %436 = arith.mulf %435, %435 : vector<13x32xf32>
    %cst_152 = arith.constant dense<0.000000e+00> : vector<13xf32>
    %437 = vector.multi_reduction <add>, %436, %cst_152 [1] : vector<13x32xf32> to vector<13xf32>
    %438 = vector.shape_cast %437 : vector<13xf32> to vector<13x1xf32>
    %cst_153 = arith.constant 3.200000e+01 : f32
    %439 = vector.broadcast %cst_153 : f32 to vector<13x1xf32>
    %440 = arith.divf %438, %439 : vector<13x1xf32>
    %441 = vector.broadcast %433 : vector<13x1xf32> to vector<13x32xf32>
    %442 = arith.subf %427, %441 : vector<13x32xf32>
    %cst_154 = arith.constant 9.99999974E-6 : f32
    %443 = vector.broadcast %cst_154 : f32 to vector<13x1xf32>
    %444 = arith.addf %440, %443 : vector<13x1xf32>
    %445 = math.rsqrt %444 : vector<13x1xf32>
    %446 = vector.broadcast %445 : vector<13x1xf32> to vector<13x32xf32>
    %447 = arith.mulf %442, %446 : vector<13x32xf32>
    %448 = vector.broadcast %428 : vector<1x32xf32> to vector<13x32xf32>
    %449 = arith.mulf %447, %448 : vector<13x32xf32>
    %450 = vector.broadcast %429 : vector<1x32xf32> to vector<13x32xf32>
    %451 = arith.addf %449, %450 : vector<13x32xf32>
    %452 = vector.extract_strided_slice %451 {offsets = [12, 0], sizes = [1, 32], strides = [1, 1]} : vector<13x32xf32> to vector<1x32xf32>
    %c0_155 = arith.constant 0 : index
    %c0_156 = arith.constant 0 : index
    %453 = vector.load %arg27[%c0_155, %c0_156] : memref<32x16xf32, #tpu.memory_space<vmem>>, vector<32x16xf32>
    %cst_157 = arith.constant dense<0.000000e+00> : vector<1x16xf32>
    %454 = tpu.matmul %452, %453, %cst_157 {dimension_numbers = #tpu.dot_dimension_numbers<[1], [0], [0], [1], [0, 0, 1, 1], [], []>} : vector<1x32xf32>, vector<32x16xf32>, vector<1x16xf32> -> vector<1x16xf32>
    %c0_158 = arith.constant 0 : index
    %c0_159 = arith.constant 0 : index
    %455 = vector.load %arg28[%c0_158, %c0_159] : memref<1x16xf32, #tpu.memory_space<vmem>>, vector<1x16xf32>
    %456 = arith.addf %454, %455 : vector<1x16xf32>
    %cst_160 = arith.constant 0.000000e+00 : f32
    %457 = vector.broadcast %cst_160 : f32 to vector<1x16xf32>
    %458 = arith.cmpf oge, %456, %457 : vector<1x16xf32>
    %cst_161 = arith.constant 0.00999999977 : f32
    %459 = vector.broadcast %cst_161 : f32 to vector<1x16xf32>
    %460 = arith.mulf %459, %456 : vector<1x16xf32>
    %461 = arith.select %458, %456, %460 : vector<1x16xi1>, vector<1x16xf32>
    %c0_162 = arith.constant 0 : index
    %c0_163 = arith.constant 0 : index
    %462 = vector.load %arg29[%c0_162, %c0_163] : memref<16x8xf32, #tpu.memory_space<vmem>>, vector<16x8xf32>
    %cst_164 = arith.constant dense<0.000000e+00> : vector<1x8xf32>
    %463 = tpu.matmul %461, %462, %cst_164 {dimension_numbers = #tpu.dot_dimension_numbers<[1], [0], [0], [1], [0, 0, 1, 1], [], []>} : vector<1x16xf32>, vector<16x8xf32>, vector<1x8xf32> -> vector<1x8xf32>
    %c0_165 = arith.constant 0 : index
    %c0_166 = arith.constant 0 : index
    %464 = vector.load %arg30[%c0_165, %c0_166] : memref<1x8xf32, #tpu.memory_space<vmem>>, vector<1x8xf32>
    %465 = arith.addf %463, %464 : vector<1x8xf32>
    %cst_167 = arith.constant 0.000000e+00 : f32
    %466 = vector.broadcast %cst_167 : f32 to vector<1x8xf32>
    %467 = arith.cmpf oge, %465, %466 : vector<1x8xf32>
    %cst_168 = arith.constant 0.00999999977 : f32
    %468 = vector.broadcast %cst_168 : f32 to vector<1x8xf32>
    %469 = arith.mulf %468, %465 : vector<1x8xf32>
    %470 = arith.select %467, %465, %469 : vector<1x8xi1>, vector<1x8xf32>
    %c0_169 = arith.constant 0 : index
    %c0_170 = arith.constant 0 : index
    %471 = vector.load %arg31[%c0_169, %c0_170] : memref<8x1xf32, #tpu.memory_space<vmem>>, vector<8x1xf32>
    %cst_171 = arith.constant dense<0.000000e+00> : vector<1x1xf32>
    %472 = tpu.matmul %470, %471, %cst_171 {dimension_numbers = #tpu.dot_dimension_numbers<[1], [0], [0], [1], [0, 0, 1, 1], [], []>} : vector<1x8xf32>, vector<8x1xf32>, vector<1x1xf32> -> vector<1x1xf32>
    %c0_172 = arith.constant 0 : index
    %c0_173 = arith.constant 0 : index
    %473 = vector.load %arg32[%c0_172, %c0_173] : memref<1x1xf32, #tpu.memory_space<vmem>>, vector<1x1xf32>
    %474 = arith.addf %472, %473 : vector<1x1xf32>
    %c0_174 = arith.constant 0 : index
    %c0_175 = arith.constant 0 : index
    %c0_176 = arith.constant 0 : index
    %475 = vector.load %arg33[%c0_174, %c0_175, %c0_176] : memref<1x1x1xf32, #tpu.memory_space<vmem>>, vector<1x1x1xf32>
    %476 = vector.shape_cast %475 : vector<1x1x1xf32> to vector<1x1xf32>
    %477 = vector.shape_cast %474 : vector<1x1xf32> to vector<1x1x1xf32>
    tpu.vector_store %arg33[%c0_174, %c0_175, %c0_176], %477 {strides = array<i32>} : memref<1x1x1xf32, #tpu.memory_space<vmem>>, vector<1x1x1xf32>,
    return
  }
  func.func @transform_0(%arg0: i32) -> (i32, i32, i32) {
    %c0_i32 = arith.constant 0 : i32
    %c0_i32_0 = arith.constant 0 : i32
    %c0_i32_1 = arith.constant 0 : i32
    return %arg0, %c0_i32, %c0_i32_0 : i32, i32, i32
  }
  func.func @transform_1(%arg0: i32) -> (i32, i32, i32) {
    %c0_i32 = arith.constant 0 : i32
    %c0_i32_0 = arith.constant 0 : i32
    %c0_i32_1 = arith.constant 0 : i32
    return %arg0, %c0_i32, %c0_i32_0 : i32, i32, i32
  }
  func.func @transform_2(%arg0: i32) -> (i32, i32) {
    %c0_i32 = arith.constant 0 : i32
    %c0_i32_0 = arith.constant 0 : i32
    %c0_i32_1 = arith.constant 0 : i32
    return %c0_i32, %c0_i32_0 : i32, i32
  }
  func.func @transform_3(%arg0: i32) -> (i32, i32) {
    %c0_i32 = arith.constant 0 : i32
    %c0_i32_0 = arith.constant 0 : i32
    %c0_i32_1 = arith.constant 0 : i32
    return %c0_i32, %c0_i32_0 : i32, i32
  }
  func.func @transform_4(%arg0: i32) -> (i32, i32) {
    %c0_i32 = arith.constant 0 : i32
    %c0_i32_0 = arith.constant 0 : i32
    %c0_i32_1 = arith.constant 0 : i32
    return %c0_i32, %c0_i32_0 : i32, i32
  }
  func.func @transform_5(%arg0: i32) -> (i32, i32) {
    %c0_i32 = arith.constant 0 : i32
    %c0_i32_0 = arith.constant 0 : i32
    %c0_i32_1 = arith.constant 0 : i32
    return %c0_i32, %c0_i32_0 : i32, i32
  }
  func.func @transform_6(%arg0: i32) -> (i32, i32) {
    %c0_i32 = arith.constant 0 : i32
    %c0_i32_0 = arith.constant 0 : i32
    %c0_i32_1 = arith.constant 0 : i32
    return %c0_i32, %c0_i32_0 : i32, i32
  }
  func.func @transform_7(%arg0: i32) -> (i32, i32) {
    %c0_i32 = arith.constant 0 : i32
    %c0_i32_0 = arith.constant 0 : i32
    %c0_i32_1 = arith.constant 0 : i32
    return %c0_i32, %c0_i32_0 : i32, i32
  }
  func.func @transform_8(%arg0: i32) -> (i32, i32) {
    %c0_i32 = arith.constant 0 : i32
    %c0_i32_0 = arith.constant 0 : i32
    %c0_i32_1 = arith.constant 0 : i32
    return %c0_i32, %c0_i32_0 : i32, i32
  }
  func.func @transform_9(%arg0: i32) -> (i32, i32) {
    %c0_i32 = arith.constant 0 : i32
    %c0_i32_0 = arith.constant 0 : i32
    %c0_i32_1 = arith.constant 0 : i32
    return %c0_i32, %c0_i32_0 : i32, i32
  }
  func.func @transform_10(%arg0: i32) -> (i32, i32) {
    %c0_i32 = arith.constant 0 : i32
    %c0_i32_0 = arith.constant 0 : i32
    %c0_i32_1 = arith.constant 0 : i32
    return %c0_i32, %c0_i32_0 : i32, i32
  }
  func.func @transform_11(%arg0: i32) -> (i32, i32) {
    %c0_i32 = arith.constant 0 : i32
    %c0_i32_0 = arith.constant 0 : i32
    %c0_i32_1 = arith.constant 0 : i32
    return %c0_i32, %c0_i32_0 : i32, i32
  }
  func.func @transform_12(%arg0: i32) -> (i32, i32) {
    %c0_i32 = arith.constant 0 : i32
    %c0_i32_0 = arith.constant 0 : i32
    %c0_i32_1 = arith.constant 0 : i32
    return %c0_i32, %c0_i32_0 : i32, i32
  }
  func.func @transform_13(%arg0: i32) -> (i32, i32) {
    %c0_i32 = arith.constant 0 : i32
    %c0_i32_0 = arith.constant 0 : i32
    %c0_i32_1 = arith.constant 0 : i32
    return %c0_i32, %c0_i32_0 : i32, i32
  }
  func.func @transform_14(%arg0: i32) -> (i32, i32) {
    %c0_i32 = arith.constant 0 : i32
    %c0_i32_0 = arith.constant 0 : i32
    %c0_i32_1 = arith.constant 0 : i32
    return %c0_i32, %c0_i32_0 : i32, i32
  }
  func.func @transform_15(%arg0: i32) -> (i32, i32) {
    %c0_i32 = arith.constant 0 : i32
    %c0_i32_0 = arith.constant 0 : i32
    %c0_i32_1 = arith.constant 0 : i32
    return %c0_i32, %c0_i32_0 : i32, i32
  }
  func.func @transform_16(%arg0: i32) -> (i32, i32) {
    %c0_i32 = arith.constant 0 : i32
    %c0_i32_0 = arith.constant 0 : i32
    %c0_i32_1 = arith.constant 0 : i32
    return %c0_i32, %c0_i32_0 : i32, i32
  }
  func.func @transform_17(%arg0: i32) -> (i32, i32) {
    %c0_i32 = arith.constant 0 : i32
    %c0_i32_0 = arith.constant 0 : i32
    %c0_i32_1 = arith.constant 0 : i32
    return %c0_i32, %c0_i32_0 : i32, i32
  }
  func.func @transform_18(%arg0: i32) -> (i32, i32) {
    %c0_i32 = arith.constant 0 : i32
    %c0_i32_0 = arith.constant 0 : i32
    %c0_i32_1 = arith.constant 0 : i32
    return %c0_i32, %c0_i32_0 : i32, i32
  }
  func.func @transform_19(%arg0: i32) -> (i32, i32) {
    %c0_i32 = arith.constant 0 : i32
    %c0_i32_0 = arith.constant 0 : i32
    %c0_i32_1 = arith.constant 0 : i32
    return %c0_i32, %c0_i32_0 : i32, i32
  }
  func.func @transform_20(%arg0: i32) -> (i32, i32) {
    %c0_i32 = arith.constant 0 : i32
    %c0_i32_0 = arith.constant 0 : i32
    %c0_i32_1 = arith.constant 0 : i32
    return %c0_i32, %c0_i32_0 : i32, i32
  }
  func.func @transform_21(%arg0: i32) -> (i32, i32) {
    %c0_i32 = arith.constant 0 : i32
    %c0_i32_0 = arith.constant 0 : i32
    %c0_i32_1 = arith.constant 0 : i32
    return %c0_i32, %c0_i32_0 : i32, i32
  }
  func.func @transform_22(%arg0: i32) -> (i32, i32) {
    %c0_i32 = arith.constant 0 : i32
    %c0_i32_0 = arith.constant 0 : i32
    %c0_i32_1 = arith.constant 0 : i32
    return %c0_i32, %c0_i32_0 : i32, i32
  }
  func.func @transform_23(%arg0: i32) -> (i32, i32) {
    %c0_i32 = arith.constant 0 : i32
    %c0_i32_0 = arith.constant 0 : i32
    %c0_i32_1 = arith.constant 0 : i32
    return %c0_i32, %c0_i32_0 : i32, i32
  }
  func.func @transform_24(%arg0: i32) -> (i32, i32) {
    %c0_i32 = arith.constant 0 : i32
    %c0_i32_0 = arith.constant 0 : i32
    %c0_i32_1 = arith.constant 0 : i32
    return %c0_i32, %c0_i32_0 : i32, i32
  }
  func.func @transform_25(%arg0: i32) -> (i32, i32) {
    %c0_i32 = arith.constant 0 : i32
    %c0_i32_0 = arith.constant 0 : i32
    %c0_i32_1 = arith.constant 0 : i32
    return %c0_i32, %c0_i32_0 : i32, i32
  }
  func.func @transform_26(%arg0: i32) -> (i32, i32) {
    %c0_i32 = arith.constant 0 : i32
    %c0_i32_0 = arith.constant 0 : i32
    %c0_i32_1 = arith.constant 0 : i32
    return %c0_i32, %c0_i32_0 : i32, i32
  }
  func.func @transform_27(%arg0: i32) -> (i32, i32) {
    %c0_i32 = arith.constant 0 : i32
    %c0_i32_0 = arith.constant 0 : i32
    %c0_i32_1 = arith.constant 0 : i32
    return %c0_i32, %c0_i32_0 : i32, i32
  }
  func.func @transform_28(%arg0: i32) -> (i32, i32) {
    %c0_i32 = arith.constant 0 : i32
    %c0_i32_0 = arith.constant 0 : i32
    %c0_i32_1 = arith.constant 0 : i32
    return %c0_i32, %c0_i32_0 : i32, i32
  }
  func.func @transform_29(%arg0: i32) -> (i32, i32) {
    %c0_i32 = arith.constant 0 : i32
    %c0_i32_0 = arith.constant 0 : i32
    %c0_i32_1 = arith.constant 0 : i32
    return %c0_i32, %c0_i32_0 : i32, i32
  }
  func.func @transform_30(%arg0: i32) -> (i32, i32) {
    %c0_i32 = arith.constant 0 : i32
    %c0_i32_0 = arith.constant 0 : i32
    %c0_i32_1 = arith.constant 0 : i32
    return %c0_i32, %c0_i32_0 : i32, i32
  }
  func.func @transform_31(%arg0: i32) -> (i32, i32) {
    %c0_i32 = arith.constant 0 : i32
    %c0_i32_0 = arith.constant 0 : i32
    %c0_i32_1 = arith.constant 0 : i32
    return %c0_i32, %c0_i32_0 : i32, i32
  }
  func.func @transform_32(%arg0: i32) -> (i32, i32, i32) {
    %c0_i32 = arith.constant 0 : i32
    %c0_i32_0 = arith.constant 0 : i32
    %c0_i32_1 = arith.constant 0 : i32
    return %arg0, %c0_i32, %c0_i32_0 : i32, i32, i32
  }
}

</mosaic_0001>

<bundles_post_ra>
// kernel: transam_forward.1
= control target key start
LH: loop header
LB: loop body
LE: loop exit
PB: predicated region body
PF: predicated region fallthrough
CT: control target
= control target key end

     0   :  { %s7080_s6 = smov 1   ;;  %s7081_s10 = smov 2   ;;  %s8131_s0 = inlined_call_operand.smem [shape: u32[33], index: -1, kind: input, shape index: {}] }
   0x1   :  { %s7130_s5 = sld [smem:[%s8131_s0]]   ;;  %s7082_s14 = smov 3  }
   0x2   :  { %s7135_s9 = sld [smem:[%s8131_s0 + %s7080_s6]]   ;;  %s7083_s18 = smov 4  }
   0x3   :  { %s7140_s13 = sld [smem:[%s8131_s0 + %s7081_s10]]   ;;  %s7084_s22 = smov 5  }
   0x4   :  { %s7145_s17 = sld [smem:[%s8131_s0 + %s7082_s14]]   ;;  %s7085_s26 = smov 6  }
   0x5   :  { %s7150_s21 = sld [smem:[%s8131_s0 + %s7083_s18]]   ;;  %s7086_s30 = smov 7  }
   0x6   :  { %s7155_s25 = sld [smem:[%s8131_s0 + %s7084_s22]]   ;;  %s7087_s4 = smov 8  }
   0x7   :  { %s7160_s29 = sld [smem:[%s8131_s0 + %s7085_s26]]   ;;  %s7088_s10 = smov 9  }
   0x8   :  { %s7165_s3 = sld [smem:[%s8131_s0 + %s7086_s30]]   ;;  %s7089_s15 = smov 10  }
   0x9   :  { %s7170_s8 = sld [smem:[%s8131_s0 + %s7087_s4]]   ;;  %s7090_s20 = smov 11  }
   0xa   :  { %s7175_s14 = sld [smem:[%s8131_s0 + %s7088_s10]]   ;;  %s7091_s26 = smov 12  }
   0xb   :  { %s7180_s19 = sld [smem:[%s8131_s0 + %s7089_s15]]   ;;  %s7092_s1 = smov 13  }
   0xc   :  { %s7185_s24 = sld [smem:[%s8131_s0 + %s7090_s20]]   ;;  %s7093_s7 = smov 14  }
   0xd   :  { %s7190_s30 = sld [smem:[%s8131_s0 + %s7091_s26]]   ;;  %s7094_s15 = smov 15  }
   0xe   :  { %s7195_s6 = sld [smem:[%s8131_s0 + %s7092_s1]]   ;;  %s7095_s22 = smov 16  }
   0xf   :  { %s7200_s12 = sld [smem:[%s8131_s0 + %s7093_s7]]   ;;  %s7096_s28 = smov 17  }
  0x10   :  { %s7205_s20 = sld [smem:[%s8131_s0 + %s7094_s15]]   ;;  %s7097_s7 = smov 18  }
  0x11   :  { %s7210_s27 = sld [smem:[%s8131_s0 + %s7095_s22]]   ;;  %s7098_s15 = smov 19  }
  0x12   :  { %8138 = sst [smem:[#allocation3_spill]] %s7185_s24  ;;  %s7099_s22 = smov 20  }
  0x13   :  { %s7215_s4 = sld [smem:[%s8131_s0 + %s7096_s28]]   ;;  %s7100_s28 = smov 21  }
  0x14   :  { %s7220_s24 = sld [smem:[%s8131_s0 + %s7097_s7]]   ;;  %s7101_s7 = smov 22  }
  0x15   :  { %s7111_s23 = smov 32  }
  0x16   :  { %8139 = sst [smem:[#allocation4_spill]] %s7205_s20 }
  0x17   :  { %8140 = sst [smem:[#allocation5_spill]] %s7210_s27 }
  0x18   :  { %s7225_s20 = sld [smem:[%s8131_s0 + %s7098_s15]]   ;;  %s7102_s15 = smov 23  }
  0x19   :  { %8141 = sst [smem:[#allocation6_spill]] %s7215_s4 }
  0x1a   :  { %8142 = sst [smem:[#allocation7_spill]] %s7220_s24 }
  0x1b   :  { %s7230_s27 = sld [smem:[%s8131_s0 + %s7099_s22]]   ;;  %s7103_s22 = smov 24  }
  0x1c   :  { %s7235_s4 = sld [smem:[%s8131_s0 + %s7100_s28]]   ;;  %s7104_s28 = smov 25  }
  0x1d   :  { %s7240_s24 = sld [smem:[%s8131_s0 + %s7101_s7]]   ;;  %s7105_s7 = smov 26  }
  0x1e   :  { %8143 = sst [smem:[#allocation8_spill]] %s7225_s20 }
  0x1f   :  { %s7245_s20 = sld [smem:[%s8131_s0 + %s7102_s15]]   ;;  %s7106_s15 = smov 27  }
  0x21   :  { %8144 = sst [smem:[#allocation9_spill]] %s7230_s27 }
  0x22   :  { %8145 = sst [smem:[#allocation10_spill]] %s7235_s4 }
  0x23   :  { %8146 = sst [smem:[#allocation11_spill]] %s7240_s24 }
  0x24   :  { %s7250_s27 = sld [smem:[%s8131_s0 + %s7103_s22]]   ;;  %s7107_s22 = smov 28  }
  0x25   :  { %8147 = sst [smem:[#allocation12_spill]] %s7245_s20 }
  0x26   :  { %s7255_s4 = sld [smem:[%s8131_s0 + %s7104_s28]]   ;;  %s7108_s28 = smov 29  }
  0x27   :  { %s7260_s24 = sld [smem:[%s8131_s0 + %s7105_s7]]   ;;  %s7109_s7 = smov 30  }
  0x28   :  { %s7265_s20 = sld [smem:[%s8131_s0 + %s7106_s15]]   ;;  %s7110_s15 = smov 31  }
  0x2a   :  { %8148 = sst [smem:[#allocation13_spill]] %s7250_s27 }
  0x2b   :  { %s7270_s27 = sld [smem:[%s8131_s0 + %s7107_s22]]  }
  0x2c   :  { %8149 = sst [smem:[#allocation14_spill]] %s7255_s4 }
  0x2d   :  { %8150 = sst [smem:[#allocation15_spill]] %s7260_s24 }
  0x2e   :  { %8151 = sst [smem:[#allocation16_spill]] %s7265_s20 }
  0x2f   :  { %s7275_s4 = sld [smem:[%s8131_s0 + %s7108_s28]]   ;;  %s7290_s28 = smov 0  }
  0x30   :  { %s7280_s24 = sld [smem:[%s8131_s0 + %s7109_s7]]  }
  0x31   :  { %8152 = sst [smem:[#allocation17_spill]] %s7270_s27 }
  0x32   :  { %s5683_s20 = sld [smem:[%s8131_s0 + %s7110_s15]]  }
  0x33   :  { %s7288_s27 = sld [smem:[%s8131_s0 + %s7111_s23]]  }
  0x38   :  { %v70_v0 = vstv %s5683_s20 }
  0x39   :  { %71 = vst [vmem:[#allocation2] sm:$0x1] %v70_v0 }
  0x3a LB: > { %s5685_s1 = sadd.s32 4294967295, %s7078_s28   ;;  %p5689_p0 = scmp.ge.s32.totalorder %s7078_s28, 1  ;;  %s7078_s28 = sphi %s7290_s28, %s77_s28  }
  0x3b   : > { %p905_p1 = scmp.lt.s32.totalorder %s7078_s28, 3 }
  0x3d   : > { %p906_p2 = pnand %p5689_p0, %p905_p1 }
  0x3e   : > { %v1086_v1 = vld [vmem:[%s7145_s17] sm:$0xff] (!%p906_p2)  ;;  %v1087_v2 = vld [vmem:[%s7145_s17 + $0x8] sm:$0xff] (!%p906_p2)  ;;  %v7112_v4 = vmov (!%p906_p2), 0.0|0.0   ;;  %v7113_v6 = vmov (!%p906_p2), 0.0   ;;  %vm1012_vm0 = vcmask (!%p906_p2), 1042432   ;;  %v1088_v7 = vld [vmem:[%s7145_s17 + $0x10] sm:$0xff] (!%p906_p2) }
  0x3f   : > { %909 = sbr.rel (%p906_p2) target bundleno = 10620 (0x297c), region = 148  ;;  %v1000_v3 = vld [vmem:[%s7140_s13] sm:$0x7] (!%p906_p2)  ;;  %6448 = vmatprep.subr.bf16.mxu1 (!%p906_p2), %v7112_v4  ;;  %v7302_v5 = vpack.c.bf16 (!%p906_p2), %v1087_v2, %v1086_v1  ;;  %6211 = vmatprep.subr.mxu0 (!%p906_p2), %v7113_v6  ;;  %v1089_v8 = vld [vmem:[%s7145_s17 + $0x18] sm:$0xff] (!%p906_p2)  ;;  %p988_p3 = scmp.lt.s32.totalorder (!%p906_p2), %s5685_s1, 1  ;;  %vm7114_vm1 = vmmov (!%p906_p2), 0  }
  0x40   : > { %6212 = vmatpush3.msk.msra.mxu0 (!%p906_p2), %vm1012_vm0, %v1000_v3  ;;  %6213 = vmatprep.mubr.msk.f32.mxu0 (!%p906_p2), %vm7114_vm1, %v7113_v6  ;;  %v5696_v9 = vld [vmem:[%s7155_s25] ss:$0 sm:$0xff] (!%p906_p2)  ;;  %v7312_v10 = vpack.c.bf16 (!%p906_p2), %v1089_v8, %v1088_v7  ;;  %s7115_s0 = smov (!%p906_p2), 64   ;;  %vm1008_vm2 = vcmask (!%p906_p2), 23552   ;;  %s7116_s7 = smov (!%p906_p2), 96   ;;  %vm1091_vm3 = vcmask (!%p906_p2), 261120  }
  0x41   : > { %6450 = vmatpush3.bf16.msra.mxu1 (!%p906_p2), %v7302_v5  ;;  %6224 = vmatprep.mubr.msk.f32.mxu1 (!%p906_p2), %vm7114_vm1, %v7113_v6  ;;  %v5692_v18 = vld [vmem:[%s7150_s21] ss:$0 sm:$0xff] (!%p906_p2)  ;;  %vm1962_vm4 = vcmask (!%p906_p2), 1040384   ;;  %vm1964_vm5 = vcmask (!%p906_p2), 1041408   ;;  %vm1967_vm6 = vcmask (!%p906_p2), 1043456   ;;  %vm1969_vm7 = vcmask (!%p906_p2), 1044480  }
  0x42   : > { %6451 = vmatprep.subr.bf16.mxu1 (!%p906_p2), %v7112_v4  ;;  %1177 = vrot.lane.b32.xlu0 (!%p906_p2), %v5696_v9, %s7115_s0  ;;  %vm1984_vm8 = vcmask (!%p906_p2), 15360   ;;  %vm1971_vm9 = vcmask (!%p906_p2), 1045504   ;;  %vm2073_vm11 = vcmask (!%p906_p2), 130048   ;;  %s7117_s15 = smov (!%p906_p2), 32   ;;  %vm1973_vm13 = vcmask (!%p906_p2), 1046528   ;;  %s8153_s16 = sld [smem:[#allocation3_spill]] (!%p906_p2) }
  0x43   : > { %6454 = vmatprep.subr.bf16.mxu0 (!%p906_p2), %v7112_v4  ;;  %s8154_s18 = sld [smem:[#allocation4_spill]] (!%p906_p2)  ;;  %vm2427_vm14 = vcmask (!%p906_p2), 64512   ;;  %s7118_s23 = smov (!%p906_p2), 120  }
  0x44   : > { %vm7499_vm15 = vmpackc.low (!%p906_p2), %vm2427_vm14, %vm2427_vm14  ;;  %s7119_s22 = smov (!%p906_p2), 112   ;;  %s7121_s26 = smov (!%p906_p2), 104  }
  0x45   : > { %6453 = vmatpush3.bf16.msra.mxu1 (!%p906_p2), %v7312_v10 }
  0x46   : > { %s8173_s1 = smov (!%p988_p3, %s5685_s1), 1  ;;  %6460 = vmatprep.subr.bf16.mxu1 %v7112_v4 }
  0x47   : > { %s5690_s20 = sshll.u32 %s8173_s1, 3  ;;  %s5691_s10 = sshll.u32 %s8173_s1, 2 }
  0x48   : > { %s991_s2 = scalar_lea.vmem %s7130_s5, %s5690_s20  ;;  %6225 = vmatmul.mubr.f32.vlgmr.msra.gmra.mrb[0].mxu1 %v7113_v6  ;;  %s995_s11 = scalar_lea.vmem %s7135_s9, %s5691_s10 }
  0x49   : > { %v999_v11 = vld [vmem:[%s991_s2] sm:$0xff]  ;;  %6462 = vmatpush3.bf16.msra.mxu1 %v7302_v5  ;;  %6246 = vmatprep.mubr.msk.f32.mxu1 %vm7114_vm1, %v7113_v6  ;;  %s8160_s20 = sld [smem:[#allocation6_spill]]  ;;  %s8161_s2 = sld [smem:[#allocation8_spill]] }
  0x4a   : > { %6214 = vmatmul.mubr.msk.f32.vlgmr.msra.gmra.mrb[0].mxu0 %vm1008_vm2, %v999_v11  ;;  %6463 = vmatprep.subr.bf16.mxu1 %v7112_v4  ;;  %s8162_s10 = sld [smem:[#allocation7_spill]] }
  0x4b   : > { %6456 = vmatpush3.bf16.msra.mxu0 %v7302_v5  ;;  %6235 = vmatprep.mubr.msk.f32.mxu0 %vm7114_vm1, %v7113_v6 }
  0x4c   : > { %6457 = vmatprep.subr.bf16.mxu0 %v7112_v4 }
  0x4d   : > { %6465 = vmatpush3.bf16.msra.mxu1 %v7312_v10 }
  0x4e   : > { %6472 = vmatprep.subr.bf16.mxu1 %v7112_v4 }
  0x4f   : > { %6459 = vmatpush3.bf16.msra.mxu0 %v7312_v10 }
  0x50   : > { %6466 = vmatprep.subr.bf16.mxu0 %v7112_v4 }
  0xb4   : > { %v7338_v13 = vpop.permute.xlu0 %1177 }
 0x11b   : > { %v1161_v15 = vpop.f32.mrb[0].mxu1 }
 0x11c   : > { %v1180_v16 = vadd.f32 %v7338_v13, %v1161_v15  ;;  %v6226_v17 = vpop.f32.mrb[1].mxu1 }
 0x11d   : > { %v1082_v12 = vpop.f32.mrb[0].mxu0 }
 0x11e   : > { %v6215_v14 = vpop.f32.mrb[1].mxu0  ;;  %1182 = vrot.lane.b32.xlu0 %v1180_v16, %s7115_s0  ;;  %v7343_v19 = vadd.f32 %v5692_v18, %v1082_v12 }
 0x120   : > { %v1165_v20 = vadd.f32 %v1161_v15, %v7343_v19 }
 0x122   : > { %v5695_v21 = vmul.f32 -1.442695, %v1165_v20 }
 0x124   : > { %6986 = vpow2.f32 %v5695_v21 }
 0x12e   : > { %v6987_v22 = vpop.eup %6986 }
 0x12f   : > { %v1169_v23 = vadd.f32 1.0, %v6987_v22 }
 0x131   : > { %6988 = vrcp.f32 %v1169_v23 }
 0x13b   : > { %v6989_v24 = vpop.eup %6988 }
 0x13c   : > { %v1192_v30 = vsub.f32 1.0, %v6989_v24  ;;  %v1198_v32 = vmul.f32 0.0, %v6989_v24 }
 0x190   : > { %v1183_v25 = vpop.permute.xlu0 %1182 }
 0x191   : > { %v1185_v26 = vmul.f32 %v6989_v24, %v1183_v25 }
 0x193   : > { %1187 = vrot.lane.b32.xlu1 %v1185_v26, %s7115_s0 }
 0x205   : > { %v1188_v27 = vpop.permute.xlu1 %1187 }
 0x206   : > { %v1190_v28 = vadd.f32 %v1188_v27, %v7343_v19 }
 0x208   : > { %6990 = vtanh.f32 %v1190_v28 }
 0x212   : > { %v6991_v29 = vpop.eup %6990 }
 0x213   : > { %1194 = vrot.lane.b32.xlu1 %v6991_v29, %s7116_s7 }
 0x285   : > { %v1195_v31 = vpop.permute.xlu1 %1194 }
 0x286   : > { %v1197_v33 = vmul.f32 %v1195_v31, %v1192_v30 }
 0x288   : > { %v7349_v34 = vadd.f32 %v1198_v32, %v1197_v33 }
 0x28a   : > { %1201 = vrot.lane.b32.xlu0 %v7349_v34, %s7116_s7  ;;  %v1304_v52 = vrot.slane %v7349_v34, 7 }
 0x2fc   : > { %v1202_v35 = vpop.permute.xlu0 %1201 }
 0x2fd   : > { %6236 = vmatmul.mubr.msk.f32.vlgmr.msra.gmra.mrb[2].mxu0 %vm1091_vm3, %v1202_v35 }
 0x2fe   : > { %6468 = vmatpush3.bf16.msra.mxu0 %v7302_v5  ;;  %6257 = vmatprep.mubr.msk.f32.mxu0 %vm7114_vm1, %v7113_v6 }
 0x2ff   : > { %6469 = vmatprep.subr.bf16.mxu0 %v7112_v4 }
 0x302   : > { %6471 = vmatpush3.bf16.msra.mxu0 %v7312_v10 }
 0x303   : > { %6478 = vmatprep.subr.bf16.mxu0 %v7112_v4 }
 0x3d0   : > { %v1271_v36 = vpop.f32.mrb[2].mxu0 }
 0x3d1   : > { %v1285_v37 = vadd.f32 %v1271_v36, %v7338_v13  ;;  %v6237_v38 = vpop.f32.mrb[3].mxu0  ;;  %v1276_v40 = vrot.slane %v1271_v36, 7 }
 0x3d3   : > { %v1287_v39 = vrot.slane %v1285_v37, 7  ;;  %v1278_v41 = vadd.f32 %v1276_v40, %v7343_v19 }
 0x3d5   : > { %1288 = vrot.lane.b32.xlu1 %v1287_v39, %s7115_s0  ;;  %v5698_v42 = vmul.f32 -1.442695, %v1278_v41 }
 0x3d7   : > { %6992 = vpow2.f32 %v5698_v42 }
 0x3e1   : > { %v6993_v43 = vpop.eup %6992 }
 0x3e2   : > { %v1282_v44 = vadd.f32 1.0, %v6993_v43 }
 0x3e4   : > { %6994 = vrcp.f32 %v1282_v44 }
 0x3ee   : > { %v6995_v45 = vpop.eup %6994 }
 0x3ef   : > { %v1298_v51 = vsub.f32 1.0, %v6995_v45  ;;  %v1306_v54 = vmul.f32 %v6995_v45, %v1304_v52 }
 0x447   : > { %v1289_v46 = vpop.permute.xlu1 %1288 }
 0x448   : > { %v1291_v47 = vmul.f32 %v6995_v45, %v1289_v46 }
 0x44a   : > { %1293 = vrot.lane.b32.xlu0 %v1291_v47, %s7115_s0 }
 0x4bc   : > { %v1294_v48 = vpop.permute.xlu0 %1293 }
 0x4bd   : > { %v1296_v49 = vadd.f32 %v1294_v48, %v7343_v19 }
 0x4bf   : > { %6996 = vtanh.f32 %v1296_v49 }
 0x4c9   : > { %v6997_v50 = vpop.eup %6996 }
 0x4ca   : > { %1300 = vrot.lane.b32.xlu1 %v6997_v50, %s7116_s7 }
 0x53c   : > { %v1301_v53 = vpop.permute.xlu1 %1300 }
 0x53d   : > { %v1303_v55 = vmul.f32 %v1301_v53, %v1298_v51 }
 0x53f   : > { %v1307_v56 = vadd.f32 %v1306_v54, %v1303_v55 }
 0x541   : > { %v1309_v57 = vrot.slane %v1307_v56, 1  ;;  %v1413_v16 = vrot.slane %v1307_v56, 7  ;;  %v1963_v22 = vsel %vm1962_vm4, %v7349_v34, %v1307_v56  ;;  %vm2519_vm4 = vcmask 102400  }
 0x543   : > { %1310 = vrot.lane.b32.xlu0 %v1309_v57, %s7116_s7 }
 0x5b5   : > { %v1311_v58 = vpop.permute.xlu0 %1310 }
 0x5b6   : > { %6247 = vmatmul.mubr.msk.f32.vlgmr.msra.gmra.mrb[2].mxu1 %vm1091_vm3, %v1311_v58 }
 0x5b7   : > { %6474 = vmatpush3.bf16.msra.mxu1 %v7302_v5  ;;  %6268 = vmatprep.mubr.msk.f32.mxu1 %vm7114_vm1, %v7113_v6 }
 0x5b8   : > { %6475 = vmatprep.subr.bf16.mxu1 %v7112_v4 }
 0x5bb   : > { %6477 = vmatpush3.bf16.msra.mxu1 %v7312_v10 }
 0x5bc   : > { %6484 = vmatprep.subr.bf16.mxu1 %v7112_v4 }
 0x689   : > { %v1380_v59 = vpop.f32.mrb[2].mxu1 }
 0x68a   : > { %v1394_v60 = vadd.f32 %v1380_v59, %v7338_v13  ;;  %v6248_v61 = vpop.f32.mrb[3].mxu1  ;;  %v1385_v63 = vrot.slane %v1380_v59, 6 }
 0x68c   : > { %v1396_v62 = vrot.slane %v1394_v60, 6  ;;  %v1387_v0 = vadd.f32 %v1385_v63, %v7343_v19 }
 0x68e   : > { %1397 = vrot.lane.b32.xlu1 %v1396_v62, %s7115_s0  ;;  %v5700_v1 = vmul.f32 -1.442695, %v1387_v0 }
 0x690   : > { %6998 = vpow2.f32 %v5700_v1 }
 0x69a   : > { %v6999_v2 = vpop.eup %6998 }
 0x69b   : > { %v1391_v3 = vadd.f32 1.0, %v6999_v2 }
 0x69d   : > { %7000 = vrcp.f32 %v1391_v3 }
 0x6a7   : > { %v7001_v7 = vpop.eup %7000 }
 0x6a8   : > { %v1407_v15 = vsub.f32 1.0, %v7001_v7  ;;  %v1415_v18 = vmul.f32 %v7001_v7, %v1413_v16 }
 0x700   : > { %v1398_v8 = vpop.permute.xlu1 %1397 }
 0x701   : > { %v1400_v9 = vmul.f32 %v7001_v7, %v1398_v8 }
 0x703   : > { %1402 = vrot.lane.b32.xlu0 %v1400_v9, %s7115_s0 }
 0x775   : > { %v1403_v11 = vpop.permute.xlu0 %1402 }
 0x776   : > { %v1405_v12 = vadd.f32 %v1403_v11, %v7343_v19 }
 0x778   : > { %7002 = vtanh.f32 %v1405_v12 }
 0x782   : > { %v7003_v14 = vpop.eup %7002 }
 0x783   : > { %1409 = vrot.lane.b32.xlu1 %v7003_v14, %s7116_s7 }
 0x7f5   : > { %v1410_v17 = vpop.permute.xlu1 %1409 }
 0x7f6   : > { %v1412_v20 = vmul.f32 %v1410_v17, %v1407_v15 }
 0x7f8   : > { %v1416_v21 = vadd.f32 %v1415_v18, %v1412_v20 }
 0x7fa   : > { %v1418_v23 = vrot.slane %v1416_v21, 2  ;;  %v1965_v24 = vsel %vm1964_vm5, %v1963_v22, %v1416_v21  ;;  %v1522_v42 = vrot.slane %v1416_v21, 7 }
 0x7fc   : > { %1419 = vrot.lane.b32.xlu0 %v1418_v23, %s7116_s7 }
 0x86e   : > { %v1420_v25 = vpop.permute.xlu0 %1419 }
 0x86f   : > { %6258 = vmatmul.mubr.msk.f32.vlgmr.msra.gmra.mrb[4].mxu0 %vm1091_vm3, %v1420_v25 }
 0x870   : > { %6480 = vmatpush3.bf16.msra.mxu0 %v7302_v5  ;;  %6279 = vmatprep.mubr.msk.f32.mxu0 %vm7114_vm1, %v7113_v6 }
 0x871   : > { %6481 = vmatprep.subr.bf16.mxu0 %v7112_v4 }
 0x874   : > { %6483 = vmatpush3.bf16.msra.mxu0 %v7312_v10 }
 0x875   : > { %6490 = vmatprep.subr.bf16.mxu0 %v7112_v4 }
 0x942   : > { %v1489_v26 = vpop.f32.mrb[4].mxu0 }
 0x943   : > { %v1503_v27 = vadd.f32 %v1489_v26, %v7338_v13  ;;  %v6259_v28 = vpop.f32.mrb[5].mxu0  ;;  %v1494_v30 = vrot.slane %v1489_v26, 5 }
 0x945   : > { %v1505_v29 = vrot.slane %v1503_v27, 5  ;;  %v1496_v31 = vadd.f32 %v1494_v30, %v7343_v19 }
 0x947   : > { %1506 = vrot.lane.b32.xlu1 %v1505_v29, %s7115_s0  ;;  %v5702_v32 = vmul.f32 -1.442695, %v1496_v31 }
 0x949   : > { %7004 = vpow2.f32 %v5702_v32 }
 0x953   : > { %v7005_v33 = vpop.eup %7004 }
 0x954   : > { %v1500_v34 = vadd.f32 1.0, %v7005_v33 }
 0x956   : > { %7006 = vrcp.f32 %v1500_v34 }
 0x960   : > { %v7007_v35 = vpop.eup %7006 }
 0x961   : > { %v1516_v41 = vsub.f32 1.0, %v7007_v35  ;;  %v1524_v44 = vmul.f32 %v7007_v35, %v1522_v42 }
 0x9b9   : > { %v1507_v36 = vpop.permute.xlu1 %1506 }
 0x9ba   : > { %v1509_v37 = vmul.f32 %v7007_v35, %v1507_v36 }
 0x9bc   : > { %1511 = vrot.lane.b32.xlu0 %v1509_v37, %s7115_s0 }
 0xa2e   : > { %v1512_v38 = vpop.permute.xlu0 %1511 }
 0xa2f   : > { %v1514_v39 = vadd.f32 %v1512_v38, %v7343_v19 }
 0xa31   : > { %7008 = vtanh.f32 %v1514_v39 }
 0xa3b   : > { %v7009_v40 = vpop.eup %7008 }
 0xa3c   : > { %1518 = vrot.lane.b32.xlu1 %v7009_v40, %s7116_s7 }
 0xaae   : > { %v1519_v43 = vpop.permute.xlu1 %1518 }
 0xaaf   : > { %v1521_v45 = vmul.f32 %v1519_v43, %v1516_v41 }
 0xab1   : > { %v1525_v46 = vadd.f32 %v1524_v44, %v1521_v45 }
 0xab3   : > { %v1527_v47 = vrot.slane %v1525_v46, 3  ;;  %v1966_v48 = vsel %vm1012_vm0, %v1965_v24, %v1525_v46  ;;  %v1631_v2 = vrot.slane %v1525_v46, 7  ;;  %vm7120_vm0 = vmmov 1  }
 0xab4   : > { %vm7523_vm2 = vmpackc.low %vm1969_vm7, %vm7120_vm0 }
 0xab5   : > { %1528 = vrot.lane.b32.xlu0 %v1527_v47, %s7116_s7 }
 0xb27   : > { %v1529_v49 = vpop.permute.xlu0 %1528 }
 0xb28   : > { %6269 = vmatmul.mubr.msk.f32.vlgmr.msra.gmra.mrb[4].mxu1 %vm1091_vm3, %v1529_v49 }
 0xb29   : > { %6486 = vmatpush3.bf16.msra.mxu1 %v7302_v5  ;;  %6290 = vmatprep.mubr.msk.f32.mxu1 %vm7114_vm1, %v7113_v6 }
 0xb2a   : > { %6487 = vmatprep.subr.bf16.mxu1 %v7112_v4 }
 0xb2d   : > { %6489 = vmatpush3.bf16.msra.mxu1 %v7312_v10 }
 0xb2e   : > { %6304 = vmatprep.subr.mxu1 %v7113_v6 }
 0xbfb   : > { %v1598_v50 = vpop.f32.mrb[4].mxu1 }
 0xbfc   : > { %v1612_v51 = vadd.f32 %v1598_v50, %v7338_v13  ;;  %v6270_v52 = vpop.f32.mrb[5].mxu1  ;;  %v1603_v54 = vrot.slane %v1598_v50, 4 }
 0xbfe   : > { %v1614_v53 = vrot.slane %v1612_v51, 4  ;;  %v1605_v55 = vadd.f32 %v1603_v54, %v7343_v19  ;;  %v1975_v54 = vld [vmem:[%s995_s11] sm:$0xf]  ;;  %s8163_s11 = sld [smem:[#allocation9_spill]] }
 0xc00   : > { %1615 = vrot.lane.b32.xlu1 %v1614_v53, %s7115_s0  ;;  %v5704_v56 = vmul.f32 -1.442695, %v1605_v55  ;;  %v1976_v53 = vld [vmem:[%s7160_s29] sm:$0x3] }
 0xc02   : > { %7010 = vpow2.f32 %v5704_v56 }
 0xc0c   : > { %v7011_v57 = vpop.eup %7010 }
 0xc0d   : > { %v1609_v58 = vadd.f32 1.0, %v7011_v57 }
 0xc0f   : > { %7012 = vrcp.f32 %v1609_v58 }
 0xc19   : > { %v7013_v59 = vpop.eup %7012 }
 0xc1a   : > { %v1625_v1 = vsub.f32 1.0, %v7013_v59  ;;  %v1633_v7 = vmul.f32 %v7013_v59, %v1631_v2  ;;  %v2064_v2 = vld [vmem:[%s7170_s8] sm:$0xff] }
 0xc72   : > { %v1616_v60 = vpop.permute.xlu1 %1615 }
 0xc73   : > { %v1618_v61 = vmul.f32 %v7013_v59, %v1616_v60 }
 0xc75   : > { %1620 = vrot.lane.b32.xlu0 %v1618_v61, %s7115_s0 }
 0xce7   : > { %v1621_v62 = vpop.permute.xlu0 %1620 }
 0xce8   : > { %v1623_v63 = vadd.f32 %v1621_v62, %v7343_v19 }
 0xcea   : > { %7014 = vtanh.f32 %v1623_v63 }
 0xcf4   : > { %v7015_v0 = vpop.eup %7014 }
 0xcf5   : > { %1627 = vrot.lane.b32.xlu1 %v7015_v0, %s7116_s7  ;;  %v5711_v0 = vld [vmem:[%s7165_s3] ss:$0 sm:$0xff] }
 0xd67   : > { %v1628_v3 = vpop.permute.xlu1 %1627 }
 0xd68   : > { %v1630_v8 = vmul.f32 %v1628_v3, %v1625_v1  ;;  %v2065_v3 = vld [vmem:[%s7170_s8 + $0x8] sm:$0xff] }
 0xd6a   : > { %v1634_v9 = vadd.f32 %v1633_v7, %v1630_v8  ;;  %v6497_v8 = vpack.c.bf16 %v2065_v3, %v2064_v2 }
 0xd6c   : > { %v1636_v11 = vrot.slane %v1634_v9, 4  ;;  %v1968_v12 = vsel %vm1967_vm6, %v1966_v48, %v1634_v9  ;;  %v1740_v30 = vrot.slane %v1634_v9, 7 }
 0xd6e   : > { %1637 = vrot.lane.b32.xlu0 %v1636_v11, %s7116_s7 }
 0xde0   : > { %v1638_v14 = vpop.permute.xlu0 %1637 }
 0xde1   : > { %6280 = vmatmul.mubr.msk.f32.vlgmr.msra.gmra.mrb[6].mxu0 %vm1091_vm3, %v1638_v14 }
 0xde2   : > { %6492 = vmatpush3.bf16.msra.mxu0 %v7302_v5  ;;  %6301 = vmatprep.mubr.msk.f32.mxu0 %vm7114_vm1, %v7113_v6 }
 0xde3   : > { %6493 = vmatprep.subr.bf16.mxu0 %v7112_v4 }
 0xde6   : > { %6495 = vmatpush3.bf16.msra.mxu0 %v7312_v10 }
 0xde7   : > { %6496 = vmatprep.subr.bf16.mxu0 %v7112_v4 }
 0xeb4   : > { %v1707_v15 = vpop.f32.mrb[6].mxu0 }
 0xeb5   : > { %v1721_v16 = vadd.f32 %v1707_v15, %v7338_v13  ;;  %v6281_v17 = vpop.f32.mrb[7].mxu0  ;;  %v1712_v20 = vrot.slane %v1707_v15, 3 }
 0xeb7   : > { %v1723_v18 = vrot.slane %v1721_v16, 3  ;;  %v1714_v21 = vadd.f32 %v1712_v20, %v7343_v19 }
 0xeb9   : > { %1724 = vrot.lane.b32.xlu1 %v1723_v18, %s7115_s0  ;;  %v5706_v5 = vmul.f32 -1.442695, %v1714_v21 }
 0xebb   : > { %7016 = vpow2.f32 %v5706_v5 }
 0xec5   : > { %v7017_v22 = vpop.eup %7016 }
 0xec6   : > { %v1718_v23 = vadd.f32 1.0, %v7017_v22 }
 0xec8   : > { %7018 = vrcp.f32 %v1718_v23 }
 0xed2   : > { %v7019_v24 = vpop.eup %7018 }
 0xed3   : > { %v1734_v29 = vsub.f32 1.0, %v7019_v24  ;;  %v1742_v32 = vmul.f32 %v7019_v24, %v1740_v30 }
 0xf2b   : > { %v1725_v25 = vpop.permute.xlu1 %1724 }
 0xf2c   : > { %v1727_v10 = vmul.f32 %v7019_v24, %v1725_v25  ;;  %v5714_v24 = vld [vmem:[%s7175_s14] ss:$0 sm:$0xff] }
 0xf2e   : > { %1729 = vrot.lane.b32.xlu0 %v1727_v10, %s7115_s0 }
 0xfa0   : > { %v1730_v26 = vpop.permute.xlu0 %1729 }
 0xfa1   : > { %v1732_v27 = vadd.f32 %v1730_v26, %v7343_v19 }
 0xfa3   : > { %7020 = vtanh.f32 %v1732_v27 }
 0xfad   : > { %v7021_v28 = vpop.eup %7020 }
 0xfae   : > { %1736 = vrot.lane.b32.xlu1 %v7021_v28, %s7116_s7 }
0x1020   : > { %v1737_v31 = vpop.permute.xlu1 %1736 }
0x1021   : > { %v1739_v33 = vmul.f32 %v1737_v31, %v1734_v29 }
0x1023   : > { %v1743_v34 = vadd.f32 %v1742_v32, %v1739_v33 }
0x1025   : > { %v1745_v35 = vrot.slane %v1743_v34, 5  ;;  %v1970_v36 = vsel %vm1969_vm7, %v1968_v12, %v1743_v34  ;;  %v1849_v56 = vrot.slane %v1743_v34, 7  ;;  %v2155_v34 = vld [vmem:[%s7180_s19] sm:$0xff] }
0x1027   : > { %1746 = vrot.lane.b32.xlu0 %v1745_v35, %s7116_s7  ;;  %v2156_v35 = vld [vmem:[%s7180_s19 + $0x8] sm:$0xff] }
0x1099   : > { %v1747_v37 = vpop.permute.xlu0 %1746 }
0x109a   : > { %6291 = vmatmul.mubr.msk.f32.vlgmr.msra.gmra.mrb[6].mxu1 %vm1091_vm3, %v1747_v37  ;;  %v6499_v37 = vpack.c.bf16 %v2156_v35, %v2155_v34 }
0x109b   : > { %6306 = vmatprep.mubr.msk.f32.mxu1 %vm7114_vm1, %v7113_v6  ;;  %6305 = vmatpush3.msk.msra.mxu1 %vm1964_vm5, %v1976_v53  ;;  %vm2515_vm5 = vcmask 105472  }
0x109c   : > { %6500 = vmatprep.subr.bf16.mxu1 %v6499_v37 }
0x109e   : > { %6307 = vmatmul.mubr.msk.f32.vlgmr.msra.gmra.mrb[8].mxu1 %vm1984_vm8, %v1975_v54 }
0x109f   : > { %6502 = vmatpush3.bf16.msra.mxu1 %v6499_v37 }
0x116d   : > { %v1816_v38 = vpop.f32.mrb[6].mxu1 }
0x116e   : > { %v1830_v39 = vadd.f32 %v1816_v38, %v7338_v13  ;;  %v6292_v40 = vpop.f32.mrb[7].mxu1  ;;  %v1821_v42 = vrot.slane %v1816_v38, 2  ;;  %v2252_v38 = vld [vmem:[%s7190_s30 + $0x8] sm:$0xff] }
0x116f   : > { %v2158_v40 = vld [vmem:[%s7180_s19 + $0x18] sm:$0xff] }
0x1170   : > { %v1832_v41 = vrot.slane %v1830_v39, 2  ;;  %v1823_v43 = vadd.f32 %v1821_v42, %v7343_v19  ;;  %v2157_v39 = vld [vmem:[%s7180_s19 + $0x10] sm:$0xff] }
0x1171   : > { %v2057_v1 = vpop.f32.mrb[8].mxu1  ;;  %v6503_v42 = vpack.c.bf16 %v2158_v40, %v2157_v39 }
0x1172   : > { %1833 = vrot.lane.b32.xlu1 %v1832_v41, %s7115_s0  ;;  %v5708_v44 = vmul.f32 -1.442695, %v1823_v43  ;;  %v2058_v7 = vadd.f32 %v5711_v0, %v2057_v1  ;;  %v6308_v9 = vpop.f32.mrb[9].mxu1  ;;  %v2254_v43 = vld [vmem:[%s7190_s30 + $0x18] sm:$0xff] }
0x1173   : > { %6504 = vmatprep.subr.bf16.mxu1 %v6503_v42 }
0x1174   : > { %7022 = vpow2.f32 %v5708_v44  ;;  %vm2061_vm10 = vcmp.ge.f32.partialorder %v2058_v7, 0.0  ;;  %v2062_v11 = vmul.f32 0.01, %v2058_v7  ;;  %6506 = vmatpush3.bf16.msra.mxu1 %v6503_v42 }
0x1176   : > { %v2063_v12 = vsel %vm2061_vm10, %v2058_v7, %v2062_v11 }
0x117e   : > { %v7023_v45 = vpop.eup %7022 }
0x117f   : > { %v1827_v46 = vadd.f32 1.0, %v7023_v45 }
0x1181   : > { %7024 = vrcp.f32 %v1827_v46  ;;  %v2337_v46 = vld [vmem:[%s7200_s12] sm:$0xff] }
0x118b   : > { %v7025_v47 = vpop.eup %7024 }
0x118c   : > { %v1843_v55 = vsub.f32 1.0, %v7025_v47  ;;  %v1851_v58 = vmul.f32 %v7025_v47, %v1849_v56  ;;  %v2339_v56 = vld [vmem:[%s7200_s12 + $0x10] sm:$0xff] }
0x11e4   : > { %v1834_v48 = vpop.permute.xlu1 %1833 }
0x11e5   : > { %v1836_v49 = vmul.f32 %v7025_v47, %v1834_v48  ;;  %v2338_v47 = vld [vmem:[%s7200_s12 + $0x8] sm:$0xff] }
0x11e6   : > { %v6515_v48 = vpack.c.bf16 %v2338_v47, %v2337_v46 }
0x11e7   : > { %1838 = vrot.lane.b32.xlu0 %v1836_v49, %s7115_s0 }
0x11e8   : > { %6516 = vmatprep.subr.bf16.mxu1 %v6515_v48 }
0x1259   : > { %v1839_v50 = vpop.permute.xlu0 %1838 }
0x125a   : > { %v1841_v51 = vadd.f32 %v1839_v50, %v7343_v19 }
0x125c   : > { %7026 = vtanh.f32 %v1841_v51 }
0x1266   : > { %v7027_v52 = vpop.eup %7026 }
0x1267   : > { %1845 = vrot.lane.b32.xlu1 %v7027_v52, %s7116_s7 }
0x12d9   : > { %v1846_v57 = vpop.permute.xlu1 %1845 }
0x12da   : > { %v1848_v59 = vmul.f32 %v1846_v57, %v1843_v55  ;;  %v2340_v57 = vld [vmem:[%s7200_s12 + $0x18] sm:$0xff] }
0x12dc   : > { %v7442_v60 = vadd.f32 %v1851_v58, %v1848_v59  ;;  %v6519_v59 = vpack.c.bf16 %v2340_v57, %v2339_v56 }
0x12de   : > { %v1854_v61 = vrot.slane %v7442_v60, 6  ;;  %v7446_v62 = vsel %vm1971_vm9, %v1970_v36, %v7442_v60  ;;  %v2251_v36 = vld [vmem:[%s7190_s30] sm:$0xff]  ;;  %v1958_v50 = vrot.slane %v7442_v60, 7 }
0x12df   : > { %v6507_v41 = vpack.c.bf16 %v2252_v38, %v2251_v36  ;;  %v5719_v60 = vld [vmem:[%s7195_s6] ss:$0 sm:$0xff] }
0x12e0   : > { %1855 = vrot.lane.b32.xlu0 %v1854_v61, %s7116_s7 }
0x1352   : > { %v1856_v63 = vpop.permute.xlu0 %1855 }
0x1353   : > { %6302 = vmatmul.mubr.msk.f32.vlgmr.msra.gmra.mrb[8].mxu0 %vm1091_vm3, %v1856_v63 }
0x1354   : > { %6313 = vmatprep.mubr.msk.f32.mxu0 %vm7114_vm1, %v7113_v6  ;;  %6498 = vmatpush3.bf16.msra.mxu0 %v6497_v8 }
0x1355   : > { %6508 = vmatprep.subr.bf16.mxu0 %v6507_v41 }
0x1357   : > { %6314 = vmatmul.mubr.msk.f32.vlgmr.msra.gmra.mrb[10].mxu0 %vm2073_vm11, %v2063_v12 }
0x1358   : > { %6510 = vmatpush3.bf16.msra.mxu0 %v6507_v41 }
0x1426   : > { %v1925_v14 = vpop.f32.mrb[8].mxu0 }
0x1427   : > { %v1939_v15 = vadd.f32 %v1925_v14, %v7338_v13  ;;  %v6303_v16 = vpop.f32.mrb[9].mxu0  ;;  %v1930_v18 = vrot.slane %v1925_v14, 1  ;;  %v5722_v14 = vld [vmem:[%s8154_s18] ss:$0 sm:$0xff]  ;;  %s8165_s18 = sld [smem:[#allocation10_spill]] }
0x1429   : > { %v1941_v17 = vrot.slane %v1939_v15, 1  ;;  %v1932_v20 = vadd.f32 %v1930_v18, %v7343_v19 }
0x142a   : > { %v2143_v23 = vpop.f32.mrb[10].mxu0 }
0x142b   : > { %1942 = vrot.lane.b32.xlu1 %v1941_v17, %s7115_s0  ;;  %v5710_v21 = vmul.f32 -1.442695, %v1932_v20  ;;  %v6315_v25 = vpop.f32.mrb[11].mxu0  ;;  %v2144_v10 = vadd.f32 %v5714_v24, %v2143_v23 }
0x142d   : > { %7028 = vpow2.f32 %v5710_v21  ;;  %v2148_v27 = vmul.f32 0.01, %v2144_v10  ;;  %vm2147_vm12 = vcmp.ge.f32.partialorder %v2144_v10, 0.0 }
0x142f   : > { %v2149_v29 = vsel %vm2147_vm12, %v2144_v10, %v2148_v27 }
0x1437   : > { %v7029_v5 = vpop.eup %7028 }
0x1438   : > { %v1936_v22 = vadd.f32 1.0, %v7029_v5 }
0x143a   : > { %7030 = vrcp.f32 %v1936_v22 }
0x1444   : > { %v7031_v26 = vpop.eup %7030 }
0x1445   : > { %v1952_v49 = vsub.f32 1.0, %v7031_v26  ;;  %v1960_v52 = vmul.f32 %v7031_v26, %v1958_v50 }
0x149d   : > { %v1943_v13 = vpop.permute.xlu1 %1942 }
0x149e   : > { %v1945_v28 = vmul.f32 %v7031_v26, %v1943_v13 }
0x14a0   : > { %1947 = vrot.lane.b32.xlu0 %v1945_v28, %s7115_s0  ;;  %s8159_s0 = sld [smem:[#allocation5_spill]] }
0x14a4   : > { %2151 = vrot.lane.b32.xlu0 %v2149_v29, %s7117_s15 }
0x1512   : > { %v1948_v30 = vpop.permute.xlu0 %1947 }
0x1513   : > { %v1950_v31 = vadd.f32 %v1948_v30, %v7343_v19  ;;  %v2253_v19 = vld [vmem:[%s7190_s30 + $0x10] sm:$0xff] }
0x1514   : > { %v6511_v44 = vpack.c.bf16 %v2254_v43, %v2253_v19 }
0x1515   : > { %7032 = vtanh.f32 %v1950_v31 }
0x1516   : > { %v2152_v32 = vpop.permute.xlu0 %2151  ;;  %6512 = vmatprep.subr.bf16.mxu0 %v6511_v44 }
0x1517   : > { %v7464_v33 = vsel %vm1967_vm6, %v2152_v32, 0.0  ;;  %6514 = vmatpush3.bf16.msra.mxu0 %v6511_v44  ;;  %vm3587_vm6 = vcmask 258048  }
0x1518   : > { %2170 = vrot.lane.b32.xlu0 %v7464_v33, %s7116_s7 }
0x151f   : > { %v7033_v45 = vpop.eup %7032 }
0x1520   : > { %1954 = vrot.lane.b32.xlu1 %v7033_v45, %s7116_s7 }
0x158a   : > { %v2171_v61 = vpop.permute.xlu0 %2170 }
0x1592   : > { %v1955_v51 = vpop.permute.xlu1 %1954 }
0x1593   : > { %v1957_v53 = vmul.f32 %v1955_v51, %v1952_v49 }
0x1595   : > { %v1961_v54 = vadd.f32 %v1960_v52, %v1957_v53 }
0x1597   : > { %v7481_v55 = vsel %vm1973_vm13, %v7446_v62, %v1961_v54  ;;  %v5716_v62 = vld [vmem:[%s8153_s16] ss:$0 sm:$0xff]  ;;  %s8164_s16 = sld [smem:[#allocation11_spill]] }
0x1598   : > { %2168 = vrot.lane.b32.xlu1 %v7481_v55, %s7116_s7 }
0x160a   : > { %v2169_v58 = vpop.permute.xlu1 %2168 }
0x160b   : > { %6324 = vmatprep.mubr.msk.f32.mxu1 %vm1091_vm3, %v2169_v58  ;;  %6335 = vmatprep.mubr.msk.f32.mxu0 %vm1091_vm3, %v2169_v58 }
0x160c   : > { %6325 = vmatmul.mubr.msk.f32.vlgmr.msra.gmra.mrb[10].mxu1 %vm1091_vm3, %v2171_v61  ;;  %6336 = vmatmul.mubr.msk.f32.vlgmr.msra.gmra.mrb[12].mxu0 %vm1091_vm3, %v2171_v61 }
0x160d   : > { %6518 = vmatpush3.bf16.msra.mxu1 %v6515_v48  ;;  %6346 = vmatprep.mubr.msk.f32.mxu1 %vm1091_vm3, %v2169_v58 }
0x160e   : > { %6520 = vmatprep.subr.bf16.mxu1 %v6519_v59 }
0x1611   : > { %6522 = vmatpush3.bf16.msra.mxu1 %v6519_v59 }
0x1614   : > { %6347 = vmatmul.mubr.msk.f32.vlgmr.msra.gmra.mrb[12].mxu1 %vm1091_vm3, %v2171_v61 }
0x16df   : > { %v6326_v63 = vpop.f32.mrb[10].mxu1  ;;  %v6337_v0 = vpop.f32.mrb[12].mxu0 }
0x16e0   : > { %v2334_v1 = vadd.f32 %v6337_v0, %v5719_v60  ;;  %v2242_v2 = vpop.f32.mrb[11].mxu1  ;;  %v2328_v3 = vpop.f32.mrb[13].mxu0  ;;  %v7516_v15 = vadd.f32 %v6326_v63, %v5716_v62 }
0x16e1   : > { %v7495_v7 = vadd.f32 %v5716_v62, %v2242_v2  ;;  %v2329_v8 = vadd.f32 %v5719_v60, %v2328_v3 }
0x16e3   : > { %2623 = vrot.lane.b32.xlu0 %v7495_v7, %s7118_s23  ;;  %6353 = vmatprep.mubr.msk.f32.mxu0 %vm2427_vm14, %v7495_v7  ;;  %v7507_v11 = vpack.i.bf16 %v2334_v1, %v2329_v8  ;;  %v6523_v12 = vpack.c.bf16 %v2334_v1, %v2329_v8 }
0x16e5   : > { %6957 = vrot.lane.b32.xlu1 %v7507_v11, %s7118_s23  ;;  %6525 = vmatprep.subr.msk.bf16.mxu0 %vm7499_vm15, %v6523_v12 }
0x16e6   : > { %6528 = vmatpush3.bf16.xpose.msk.msra.mxu0 %vm7499_vm15, %v6523_v12 }
0x16e7   : > { %v6348_v16 = vpop.f32.mrb[12].mxu1  ;;  %6962 = vrot.lane.b32.xlu0 %v7507_v11, %s7119_s22 }
0x16e8   : > { %v2420_v17 = vadd.f32 %v6348_v16, %v5722_v14  ;;  %v2414_v18 = vpop.f32.mrb[13].mxu1 }
0x16e9   : > { %v2415_v20 = vadd.f32 %v5722_v14, %v2414_v18  ;;  %2625 = vrot.lane.b32.xlu1 %v7516_v15, %s7118_s23 }
0x16eb   : > { %2989 = vrot.lane.b32.xlu0 %v7516_v15, %s7119_s22  ;;  %v6529_v5 = vpack.c.bf16 %v2420_v17, %v2415_v20  ;;  %v7529_v22 = vpack.i.bf16 %v2420_v17, %v2415_v20 }
0x16ed   : > { %6531 = vmatprep.subr.msk.bf16.mxu1 %vm7523_vm2, %v6529_v5  ;;  %2987 = vrot.lane.b32.xlu1 %v7495_v7, %s7119_s22 }
0x16ee   : > { %6534 = vmatpush3.bf16.msk.msra.mxu1 %vm7523_vm2, %v6529_v5  ;;  %6354 = vmatmul.mubr.msk.f32.vlgmr.msra.gmra.mrb[14].mxu0 %vm2427_vm14, %v7516_v15 }
0x1755   : > { %v2624_v23 = vpop.permute.xlu0 %2623 }
0x1756   : > { %6367 = vmatprep.mubr.msk.f32.mxu0 %vm2427_vm14, %v2624_v23 }
0x1757   : > { %v6958_v24 = vpop.permute.xlu1 %6957 }
0x1758   : > { %v6960_v25 = vunpack.i.h.bf16 %v6958_v24  ;;  %v6959_v10 = vunpack.i.l.bf16 %v6958_v24 }
0x1759   : > { %v6963_v26 = vpop.permute.xlu0 %6962 }
0x175a   : > { %v6535_v13 = vpack.c.bf16 %v6960_v25, %v6959_v10  ;;  %v6965_v27 = vunpack.i.h.bf16 %v6963_v26  ;;  %v6964_v28 = vunpack.i.l.bf16 %v6963_v26 }
0x175b   : > { %v2626_v30 = vpop.permute.xlu1 %2625 }
0x175c   : > { %v6547_v29 = vpack.c.bf16 %v6965_v27, %v6964_v28  ;;  %6537 = vmatprep.subr.msk.bf16.mxu0 %vm7499_vm15, %v6535_v13 }
0x175d   : > { %6540 = vmatpush3.bf16.xpose.msk.msra.mxu0 %vm7499_vm15, %v6535_v13  ;;  %v2990_v32 = vpop.permute.xlu0 %2989 }
0x175e   : > { %6549 = vmatprep.subr.msk.bf16.mxu0 %vm7499_vm15, %v6547_v29 }
0x175f   : > { %v2988_v31 = vpop.permute.xlu1 %2987 }
0x1764   : > { %6368 = vmatmul.mubr.msk.f32.vlgmr.msra.gmra.mrb[16].mxu0 %vm2427_vm14, %v2626_v30 }
0x1765   : > { %6552 = vmatpush3.bf16.xpose.msk.msra.mxu0 %vm7499_vm15, %v6547_v29  ;;  %6391 = vmatprep.mubr.msk.f32.mxu0 %vm2427_vm14, %v2988_v31 }
0x176c   : > { %6392 = vmatmul.mubr.msk.f32.vlgmr.msra.gmra.mrb[18].mxu0 %vm2427_vm14, %v2990_v32 }
0x17c1   : > { %v6355_v34 = vpop.f32.mrb[14].mxu0 }
0x17c2   : > { %v2506_v35 = vpop.f32.mrb[15].mxu0  ;;  %v2520_v36 = vsel %vm2519_vm4, %v6355_v34, -inf }
0x17c3   : > { %2521 = vmax.xlane.f32.xlu0 %v2520_v36  ;;  %v2516_v37 = vsel %vm2515_vm5, %v2506_v35, -inf }
0x17c4   : > { %2517 = vmax.xlane.f32.xlu1 %v2516_v37 }
0x1837   : > { %v6369_v38 = vpop.f32.mrb[16].mxu0 }
0x1838   : > { %v2705_v39 = vpop.f32.mrb[17].mxu0  ;;  %v2717_v40 = vsel %vm2519_vm4, %v6369_v38, -inf }
0x1839   : > { %2718 = vmax.xlane.f32.xlu1 %v2717_v40  ;;  %v2714_v41 = vsel %vm2515_vm5, %v2705_v39, -inf  ;;  %v2424_v40 = vld [vmem:[%s8159_s0 + $0x8] sm:$0xff] }
0x183a   : > { %2715 = vmax.xlane.f32.xlu0 %v2714_v41  ;;  %v2423_v41 = vld [vmem:[%s8159_s0] sm:$0xff] }
0x183f   : > { %v7555_v42 = vpop.f32.mrb[18].mxu0 }
0x1840   : > { %v7557_v19 = vpop.f32.mrb[19].mxu0 }
0x1850   : > { %v2522_v43 = vpop.xlane.xlu0 %2521 }
0x1851   : > { %v2524_v44 = vsub.f32 %v6355_v34, %v2522_v43  ;;  %v2518_v45 = vpop.xlane.xlu1 %2517 }
0x1852   : > { %v2523_v46 = vsub.f32 %v2506_v35, %v2518_v45 }
0x1853   : > { %v2527_v47 = vmul.f32 1.442695, %v2524_v44 }
0x1854   : > { %v2525_v48 = vmul.f32 1.442695, %v2523_v46 }
0x1855   : > { %7034 = vpow2.f32 %v2527_v47 }
0x1856   : > { %7036 = vpow2.f32 %v2525_v48 }
0x185f   : > { %v7035_v49 = vpop.eup %7034 }
0x1860   : > { %v7037_v50 = vpop.eup %7036  ;;  %v2532_v51 = vsel %vm2519_vm4, %v7035_v49, 0.0 }
0x1861   : > { %2533 = vadd.xlane.f32.xlu1 %v2532_v51  ;;  %v2529_v52 = vsel %vm2515_vm5, %v7037_v50, 0.0 }
0x1862   : > { %2530 = vadd.xlane.f32.xlu0 %v2529_v52 }
0x18c6   : > { %v2719_v53 = vpop.xlane.xlu1 %2718 }
0x18c7   : > { %v2721_v54 = vsub.f32 %v6369_v38, %v2719_v53  ;;  %v2716_v56 = vpop.xlane.xlu0 %2715 }
0x18c8   : > { %v2720_v57 = vsub.f32 %v2705_v39, %v2716_v56 }
0x18c9   : > { %v2724_v58 = vmul.f32 1.442695, %v2721_v54 }
0x18ca   : > { %v2722_v59 = vmul.f32 1.442695, %v2720_v57 }
0x18cb   : > { %7038 = vpow2.f32 %v2724_v58 }
0x18cc   : > { %7040 = vpow2.f32 %v2722_v59 }
0x18d5   : > { %v7039_v61 = vpop.eup %7038 }
0x18d6   : > { %v7041_v60 = vpop.eup %7040  ;;  %v2729_v62 = vsel %vm2519_vm4, %v7039_v61, 0.0 }
0x18d7   : > { %2730 = vadd.xlane.f32.xlu1 %v2729_v62  ;;  %v2726_v63 = vsel %vm2515_vm5, %v7041_v60, 0.0 }
0x18d8   : > { %2727 = vadd.xlane.f32.xlu0 %v2726_v63 }
0x18e8   : > { %6972 = vrot.lane.b32.xlu1 %v7507_v11, %s7121_s26  ;;  %v3081_v11 = vsel %vm2519_vm4, %v7555_v42, -inf }
0x18ec   : > { %3271 = vrot.lane.b32.xlu1 %v7495_v7, %s7121_s26  ;;  %v3078_v7 = vsel %vm2515_vm5, %v7557_v19, -inf }
0x18ee   : > { %v2534_v0 = vpop.xlane.xlu1 %2533  ;;  %6967 = vrot.lane.b32.xlu0 %v7529_v22, %s7118_s23  ;;  %s8166_s23 = sld [smem:[#allocation12_spill]] }
0x18ef   : > { %7042 = vrcp.f32 %v2534_v0  ;;  %v2531_v1 = vpop.xlane.xlu0 %2530 }
0x18f0   : > { %7044 = vrcp.f32 %v2531_v1 }
0x18f2   : > { %3273 = vrot.lane.b32.xlu0 %v7516_v15, %s7121_s26 }
0x18f9   : > { %v7043_v2 = vpop.eup %7042 }
0x18fa   : > { %v7045_v3 = vpop.eup %7044  ;;  %v2538_v12 = vmul.f32 %v7043_v2, %v7035_v49 }
0x18fb   : > { %v2537_v8 = vmul.f32 %v7045_v3, %v7037_v50 }
0x18fd   : > { %6360 = vmatprep.mubr.msk.f32.mxu1 %vm2515_vm5, %v2537_v8 }
0x18fe   : > { %6361 = vmatmul.mubr.msk.f32.vlgmr.msra.gmra.mrb[14].mxu1 %vm2515_vm5, %v2538_v12 }
0x1910   : > { %3079 = vmax.xlane.f32.xlu1 %v3078_v7 }
0x1911   : > { %3082 = vmax.xlane.f32.xlu0 %v3081_v11 }
0x1964   : > { %v2731_v14 = vpop.xlane.xlu1 %2730 }
0x1965   : > { %7046 = vrcp.f32 %v2731_v14  ;;  %v2728_v16 = vpop.xlane.xlu0 %2727 }
0x1966   : > { %7048 = vrcp.f32 %v2728_v16 }
0x1968   : > { %v6973_v15 = vpop.permute.xlu1 %6972 }
0x1969   : > { %v6975_v17 = vunpack.i.h.bf16 %v6973_v15  ;;  %v6974_v18 = vunpack.i.l.bf16 %v6973_v15  ;;  %v6968_v20 = vpop.permute.xlu0 %6967 }
0x196a   : > { %v6970_v5 = vunpack.i.h.bf16 %v6968_v20  ;;  %v6969_v23 = vunpack.i.l.bf16 %v6968_v20 }
0x196b   : > { %v6559_v24 = vpack.c.bf16 %v6975_v17, %v6974_v18 }
0x196c   : > { %v6541_v25 = vpack.c.bf16 %v6970_v5, %v6969_v23  ;;  %v3272_v10 = vpop.permute.xlu1 %3271  ;;  %v2426_v23 = vld [vmem:[%s8159_s0 + $0x18] sm:$0xff] }
0x196d   : > { %6561 = vmatprep.subr.msk.bf16.mxu0 %vm7499_vm15, %v6559_v24  ;;  %6410 = vmatprep.mubr.msk.f32.mxu0 %vm2427_vm14, %v3272_v10  ;;  %v3274_v29 = vpop.permute.xlu0 %3273 }
0x196e   : > { %6543 = vmatprep.subr.msk.bf16.mxu1 %vm7523_vm2, %v6541_v25  ;;  %6564 = vmatpush3.bf16.xpose.msk.msra.mxu0 %vm7499_vm15, %v6559_v24 }
0x196f   : > { %v7047_v26 = vpop.eup %7046  ;;  %6546 = vmatpush3.bf16.msk.msra.mxu1 %vm7523_vm2, %v6541_v25 }
0x1970   : > { %v7049_v13 = vpop.eup %7048  ;;  %v2735_v28 = vmul.f32 %v7047_v26, %v7039_v61  ;;  %6377 = vmatprep.subr.mxu1 %v2424_v40  ;;  %v2425_v61 = vld [vmem:[%s8159_s0 + $0x10] sm:$0xff] }
0x1971   : > { %v2734_v27 = vmul.f32 %v7049_v13, %v7041_v60 }
0x1973   : > { %6374 = vmatprep.mubr.msk.f32.mxu1 %vm2515_vm5, %v2734_v27  ;;  %v5761_v27 = vld [vmem:[%s8160_s20] ss:$0 sm:$0xff]  ;;  %s8169_s20 = sld [smem:[#allocation15_spill]] }
0x1974   : > { %6375 = vmatmul.mubr.msk.f32.vlgmr.msra.gmra.mrb[16].mxu1 %vm2515_vm5, %v2735_v28 }
0x1975   : > { %6411 = vmatmul.mubr.msk.f32.vlgmr.msra.gmra.mrb[20].mxu0 %vm2427_vm14, %v3274_v29  ;;  %6378 = vmatpush3.msra.mxu1 %v2424_v40 }
0x1976   : > { %3752 = vmatprep.mubr.f32.mxu0 %v7113_v6  ;;  %6382 = vmatprep.subr.mxu1 %v2423_v41 }
0x199d   : > { %v3080_v30 = vpop.xlane.xlu1 %3079 }
0x199e   : > { %v3084_v9 = vsub.f32 %v7557_v19, %v3080_v30  ;;  %v3083_v31 = vpop.xlane.xlu0 %3082 }
0x199f   : > { %v3085_v32 = vsub.f32 %v7555_v42, %v3083_v31 }
0x19a0   : > { %v3086_v34 = vmul.f32 1.442695, %v3084_v9 }
0x19a1   : > { %v3088_v35 = vmul.f32 1.442695, %v3085_v32 }
0x19a2   : > { %7050 = vpow2.f32 %v3086_v34 }
0x19a3   : > { %7052 = vpow2.f32 %v3088_v35 }
0x19ac   : > { %v7051_v36 = vpop.eup %7050 }
0x19ad   : > { %v7053_v37 = vpop.eup %7052  ;;  %v3090_v38 = vsel %vm2515_vm5, %v7051_v36, 0.0 }
0x19ae   : > { %3091 = vadd.xlane.f32.xlu0 %v3090_v38  ;;  %v3093_v39 = vsel %vm2519_vm4, %v7053_v37, 0.0 }
0x19af   : > { %3094 = vadd.xlane.f32.xlu1 %v3093_v39 }
0x19c4   : > { %6977 = vrot.lane.b32.xlu0 %v7529_v22, %s7119_s22  ;;  %s8167_s22 = sld [smem:[#allocation13_spill]] }
0x19d1   : > { %v6362_v42 = vpop.f32.mrb[14].mxu1 }
0x19d2   : > { %v2614_v19 = vpop.f32.mrb[15].mxu1 }
0x1a3b   : > { %v3092_v43 = vpop.xlane.xlu0 %3091 }
0x1a3c   : > { %7054 = vrcp.f32 %v3092_v43  ;;  %v3095_v45 = vpop.xlane.xlu1 %3094 }
0x1a3d   : > { %7056 = vrcp.f32 %v3095_v45 }
0x1a3f   : > { %v6978_v44 = vpop.permute.xlu0 %6977 }
0x1a40   : > { %v6980_v46 = vunpack.i.h.bf16 %v6978_v44  ;;  %v6979_v47 = vunpack.i.l.bf16 %v6978_v44 }
0x1a42   : > { %v6553_v52 = vpack.c.bf16 %v6980_v46, %v6979_v47 }
0x1a46   : > { %v7055_v54 = vpop.eup %7054 }
0x1a47   : > { %v6376_v48 = vpop.f32.mrb[16].mxu1  ;;  %v7057_v57 = vpop.eup %7056  ;;  %v3098_v58 = vmul.f32 %v7055_v54, %v7051_v36  ;;  %v3647_v54 = vld [vmem:[%s8163_s11 + $0x98] sm:$0xff] }
0x1a48   : > { %v2816_v49 = vpop.f32.mrb[17].mxu1  ;;  %v6412_v50 = vpop.f32.mrb[20].mxu0  ;;  %v3099_v59 = vmul.f32 %v7057_v57, %v7053_v37  ;;  %v3644_v57 = vld [vmem:[%s8163_s11 + $0x80] sm:$0xff] }
0x1a49   : > { %6379 = vmatprep.mubr.msk.f32.mxu1 %vm2427_vm14, %v2816_v49  ;;  %v3353_v51 = vpop.f32.mrb[21].mxu0  ;;  %v3365_v56 = vsel %vm2519_vm4, %v6412_v50, -inf  ;;  %v5762_v49 = vld [vmem:[%s8162_s10] ss:$0 sm:$0xff] }
0x1a4a   : > { %6380 = vmatmul.mubr.msk.f32.vlgmr.msra.gmra.mrb[18].mxu1 %vm2427_vm14, %v6376_v48  ;;  %v3362_v53 = vsel %vm2515_vm5, %v3353_v51, -inf  ;;  %v5763_v48 = vld [vmem:[%s8161_s2] ss:$0 sm:$0xff]  ;;  %s8170_s2 = sld [smem:[#allocation17_spill]] }
0x1a4b   : > { %6383 = vmatpush3.msra.mxu1 %v2423_v41  ;;  %6384 = vmatprep.mubr.msk.f32.mxu1 %vm2427_vm14, %v2614_v19 }
0x1a4c   : > { %6555 = vmatprep.subr.msk.bf16.mxu1 %vm7523_vm2, %v6553_v52  ;;  %3363 = vmax.xlane.f32.xlu1 %v3362_v53 }
0x1a50   : > { %3366 = vmax.xlane.f32.xlu1 %v3365_v56  ;;  %v3640_v56 = vld [vmem:[%s8163_s11] sm:$0xff] }
0x1a52   : > { %6385 = vmatmul.mubr.msk.f32.vlgmr.msra.gmra.mrb[18].mxu1 %vm2427_vm14, %v6362_v42 }
0x1a53   : > { %6558 = vmatpush3.bf16.msk.msra.mxu1 %vm7523_vm2, %v6553_v52  ;;  %6398 = vmatprep.mubr.msk.f32.mxu1 %vm2515_vm5, %v3098_v58  ;;  %v3643_v52 = vld [vmem:[%s8163_s11 + $0x18] sm:$0xff] }
0x1a54   : > { %6401 = vmatprep.subr.mxu1 %v2425_v61  ;;  %v6579_v58 = vpack.c.bf16 %v3647_v54, %v3643_v52  ;;  %v4131_v52 = vld [vmem:[%s8164_s16 + $0x288] sm:$0xff] }
0x1a55   : > { %v4163_v54 = vld [vmem:[%s8164_s16 + $0x388] sm:$0xff] }
0x1a56   : > { %6399 = vmatmul.mubr.msk.f32.vlgmr.msra.gmra.mrb[20].mxu1 %vm2515_vm5, %v3099_v59  ;;  %v6573_v59 = vpack.c.bf16 %v3644_v57, %v3640_v56 }
0x1a57   : > { %6402 = vmatpush3.msra.mxu1 %v2425_v61  ;;  %v3642_v61 = vld [vmem:[%s8163_s11 + $0x10] sm:$0xff] }
0x1ad9   : > { %v3364_v60 = vpop.xlane.xlu1 %3363 }
0x1ada   : > { %v3368_v62 = vsub.f32 %v3353_v51, %v3364_v60  ;;  %v3645_v51 = vld [vmem:[%s8163_s11 + $0x88] sm:$0xff]  ;;  %v3646_v60 = vld [vmem:[%s8163_s11 + $0x90] sm:$0xff] }
0x1adc   : > { %v3370_v1 = vmul.f32 1.442695, %v3368_v62  ;;  %v3649_v62 = vld [vmem:[%s8163_s11 + $0x108] sm:$0xff] }
0x1add   : > { %v3367_v63 = vpop.xlane.xlu1 %3366 }
0x1ade   : > { %v3369_v0 = vsub.f32 %v6412_v50, %v3367_v63  ;;  %v3641_v50 = vld [vmem:[%s8163_s11 + $0x8] sm:$0xff]  ;;  %v6581_v63 = vpack.c.bf16 %v3646_v60, %v3642_v61 }
0x1adf   : > { %v6571_v53 = vpack.c.bf16 %v3645_v51, %v3641_v50  ;;  %v4130_v51 = vld [vmem:[%s8164_s16 + $0x280] sm:$0xff] }
0x1ae0   : > { %v3372_v2 = vmul.f32 1.442695, %v3369_v0  ;;  %v3653_v0 = vld [vmem:[%s8163_s11 + $0x188] sm:$0xff]  ;;  %v6603_v60 = vpack.c.bf16 %v4131_v52, %v4130_v51 }
0x1ae1   : > { %6572 = vmatprep.subr.bf16.mxu0 %v6571_v53  ;;  %v4162_v53 = vld [vmem:[%s8164_s16 + $0x380] sm:$0xff]  ;;  %v4155_v51 = vld [vmem:[%s8164_s16 + $0x348] sm:$0xff] }
0x1ae2   : > { %7058 = vpow2.f32 %v3372_v2  ;;  %v3655_v2 = vld [vmem:[%s8163_s11 + $0x198] sm:$0xff]  ;;  %6574 = vmatpush1.bf16.msra.mxu0 %v6573_v59  ;;  %v4115_v59 = vld [vmem:[%s8164_s16 + $0x208] sm:$0xff] }
0x1ae3   : > { %7060 = vpow2.f32 %v3370_v1  ;;  %v3651_v1 = vld [vmem:[%s8163_s11 + $0x118] sm:$0xff] }
0x1aec   : > { %v7059_v3 = vpop.eup %7058 }
0x1aed   : > { %v3377_v8 = vsel %vm2519_vm4, %v7059_v3, 0.0  ;;  %v7061_v12 = vpop.eup %7060 }
0x1aee   : > { %3378 = vadd.xlane.f32.xlu1 %v3377_v8  ;;  %v3374_v7 = vsel %vm2515_vm5, %v7061_v12, 0.0  ;;  %v6583_v8 = vpack.c.bf16 %v3655_v2, %v3651_v1  ;;  %v4132_v1 = vld [vmem:[%s8164_s16 + $0x290] sm:$0xff]  ;;  %v4133_v2 = vld [vmem:[%s8164_s16 + $0x298] sm:$0xff] }
0x1af2   : > { %3375 = vadd.xlane.f32.xlu1 %v3374_v7  ;;  %v3652_v7 = vld [vmem:[%s8163_s11 + $0x180] sm:$0xff] }
0x1b03   : > { %6982 = vrot.lane.b32.xlu1 %v7529_v22, %s7121_s26  ;;  %s8168_s26 = sld [smem:[#allocation14_spill]] }
0x1b29   : > { %v6400_v11 = vpop.f32.mrb[20].mxu1 }
0x1b2a   : > { %v3179_v14 = vpop.f32.mrb[21].mxu1 }
0x1b2b   : > { %6403 = vmatprep.mubr.msk.f32.mxu1 %vm2427_vm14, %v3179_v14 }
0x1b2c   : > { %6404 = vmatmul.mubr.msk.f32.vlgmr.msra.gmra.mrb[18].mxu1 %vm2427_vm14, %v6400_v11  ;;  %v3650_v11 = vld [vmem:[%s8163_s11 + $0x110] sm:$0xff] }
0x1b7b   : > { %v3379_v16 = vpop.xlane.xlu1 %3378 }
0x1b7c   : > { %7062 = vrcp.f32 %v3379_v16  ;;  %v3654_v16 = vld [vmem:[%s8163_s11 + $0x190] sm:$0xff] }
0x1b7f   : > { %v3376_v15 = vpop.xlane.xlu1 %3375 }
0x1b80   : > { %7064 = vrcp.f32 %v3376_v15  ;;  %v6585_v15 = vpack.c.bf16 %v3654_v16, %v3650_v11  ;;  %v4116_v11 = vld [vmem:[%s8164_s16 + $0x210] sm:$0xff]  ;;  %v6607_v16 = vpack.c.bf16 %v4133_v2, %v4132_v1  ;;  %v4157_v2 = vld [vmem:[%s8164_s16 + $0x358] sm:$0xff] }
0x1b81   : > { %v4156_v1 = vld [vmem:[%s8164_s16 + $0x350] sm:$0xff] }
0x1b83   : > { %v6983_v17 = vpop.permute.xlu1 %6982 }
0x1b84   : > { %v6985_v18 = vunpack.i.h.bf16 %v6983_v17  ;;  %v6984_v20 = vunpack.i.l.bf16 %v6983_v17 }
0x1b86   : > { %v6565_v5 = vpack.c.bf16 %v6985_v18, %v6984_v20  ;;  %v7063_v22 = vpop.eup %7062 }
0x1b87   : > { %v3383_v10 = vmul.f32 %v7063_v22, %v7059_v3  ;;  %v6575_v3 = vpack.c.bf16 %v3653_v0, %v3649_v62  ;;  %v3915_v22 = vld [vmem:[%s8163_s11 + $0x28] sm:$0xff]  ;;  %v6635_v62 = vpack.c.bf16 %v4163_v54, %v4162_v53  ;;  %v4140_v54 = vld [vmem:[%s8164_s16 + $0x2d0] sm:$0xff] }
0x1b88   : > { %6567 = vmatprep.subr.msk.bf16.mxu1 %vm7523_vm2, %v6565_v5  ;;  %v4147_v0 = vld [vmem:[%s8164_s16 + $0x308] sm:$0xff] }
0x1b89   : > { %6570 = vmatpush3.bf16.msk.msra.mxu1 %vm7523_vm2, %v6565_v5  ;;  %6576 = vmatprep.subr.bf16.mxu0 %v6575_v3  ;;  %v4164_v3 = vld [vmem:[%s8164_s16 + $0x390] sm:$0xff] }
0x1b8a   : > { %v7065_v24 = vpop.eup %7064  ;;  %6420 = vmatprep.subr.mxu1 %v2426_v23 }
0x1b8b   : > { %v3382_v25 = vmul.f32 %v7065_v24, %v7061_v12  ;;  %v3648_v12 = vld [vmem:[%s8163_s11 + $0x100] sm:$0xff]  ;;  %v3919_v24 = vld [vmem:[%s8163_s11 + $0xa8] sm:$0xff] }
0x1b8c   : > { %v6577_v14 = vpack.c.bf16 %v3652_v7, %v3648_v12 }
0x1b8d   : > { %6417 = vmatprep.mubr.msk.f32.mxu1 %vm2515_vm5, %v3382_v25  ;;  %v3917_v25 = vld [vmem:[%s8163_s11 + $0x38] sm:$0xff] }
0x1b8e   : > { %6418 = vmatmul.mubr.msk.f32.vlgmr.msra.gmra.mrb[22].mxu1 %vm2515_vm5, %v3383_v10  ;;  %6578 = vmatpush1.bf16.msra.mxu0 %v6577_v14  ;;  %v4117_v14 = vld [vmem:[%s8164_s16 + $0x218] sm:$0xff] }
0x1b8f   : > { %6421 = vmatpush3.msra.mxu1 %v2426_v23 }
0x1b90   : > { %6580 = vmatprep.subr.bf16.mxu1 %v6579_v58  ;;  %v4114_v58 = vld [vmem:[%s8164_s16 + $0x200] sm:$0xff] }
0x1b91   : > { %v6605_v12 = vpack.c.bf16 %v4115_v59, %v4114_v58  ;;  %v4173_v59 = vld [vmem:[%s8164_s16 + $0x3d8] sm:$0xff] }
0x1c61   : > { %v6419_v26 = vpop.f32.mrb[22].mxu1 }
0x1c62   : > { %v3463_v13 = vpop.f32.mrb[23].mxu1 }
0x1c63   : > { %6422 = vmatprep.mubr.msk.f32.mxu1 %vm2427_vm14, %v3463_v13  ;;  %v3921_v13 = vld [vmem:[%s8163_s11 + $0xb8] sm:$0xff] }
0x1c64   : > { %6423 = vmatmul.mubr.msk.f32.vlgmr.msra.gmra.mrb[18].mxu1 %vm2427_vm14, %v6419_v26  ;;  %v6587_v26 = vpack.c.bf16 %v3919_v24, %v3915_v22  ;;  %v4167_v22 = vld [vmem:[%s8164_s16 + $0x3a8] sm:$0xff]  ;;  %v6609_v24 = vpack.c.bf16 %v4117_v14, %v4116_v11 }
0x1c65   : > { %3829 = vmatprep.mubr.f32.mxu1 %v7113_v6  ;;  %6582 = vmatpush1.bf16.msra.mxu1 %v6581_v63  ;;  %v4146_v63 = vld [vmem:[%s8164_s16 + $0x300] sm:$0xff]  ;;  %v4175_v14 = vld [vmem:[%s8164_s16 + $0x3e8] sm:$0xff] }
0x1c66   : > { %6584 = vmatprep.subr.bf16.mxu1 %v6583_v8  ;;  %6588 = vmatprep.subr.bf16.mxu0 %v6587_v26  ;;  %v4165_v8 = vld [vmem:[%s8164_s16 + $0x398] sm:$0xff]  ;;  %v6637_v7 = vpack.c.bf16 %v4147_v0, %v4146_v63  ;;  %v4119_v26 = vld [vmem:[%s8164_s16 + $0x228] sm:$0xff] }
0x1c69   : > { %6586 = vmatpush1.bf16.msra.mxu1 %v6585_v15  ;;  %v6639_v15 = vpack.c.bf16 %v4165_v8, %v4164_v3  ;;  %v6657_v3 = vpack.c.bf16 %v4157_v2, %v4156_v1  ;;  %v4142_v8 = vld [vmem:[%s8164_s16 + $0x2e0] sm:$0xff]  ;;  %v3868_v1 = vld [vmem:[%s8164_s16 + $0x90] sm:$0xff] }
0x1d37   : > { %v6424_v21 = vpop.f32.mrb[18].mxu1 }
0x1d38   : > { %v3544_v28 = vpop.f32.mrb[19].mxu1  ;;  %v3563_v30 = vadd.f32 %v6424_v21, %v5761_v27 }
0x1d39   : > { %v3562_v29 = vadd.f32 %v5761_v27, %v3544_v28  ;;  %v6595_v27 = vpack.c.bf16 %v3921_v13, %v3917_v25 }
0x1d3b   : > { %3566 = vrot.lane.b32.xlu0 %v3562_v29, %s7117_s15  ;;  %6596 = vmatprep.subr.bf16.mxu1 %v6595_v27 }
0x1d3f   : > { %3568 = vrot.lane.b32.xlu0 %v3563_v30, %s7117_s15 }
0x1dad   : > { %v3567_v9 = vpop.permute.xlu0 %3566 }
0x1dae   : > { %v3572_v31 = vadd.f32 %v3567_v9, %v7481_v55 }
0x1db0   : > { %3578 = vrot.lane.b32.xlu0 %v3572_v31, %s7116_s7 }
0x1db1   : > { %v3569_v32 = vpop.permute.xlu0 %3568 }
0x1db2   : > { %v3573_v34 = vadd.f32 %v3569_v32, %v7464_v33 }
0x1db4   : > { %3580 = vrot.lane.b32.xlu0 %v3573_v34, %s7116_s7 }
0x1e22   : > { %v3579_v35 = vpop.permute.xlu0 %3578 }
0x1e23   : > { %v3584_v36 = vsel %vm1091_vm3, %v3579_v35, 0.0 }
0x1e24   : > { %3585 = vadd.xlane.f32.xlu1 %v3584_v36 }
0x1e26   : > { %v3581_v37 = vpop.permute.xlu0 %3580 }
0x1e27   : > { %v3588_v38 = vsel %vm3587_vm6, %v3581_v37, 0.0  ;;  %v3914_v37 = vld [vmem:[%s8163_s11 + $0x20] sm:$0xff] }
0x1e28   : > { %3589 = vadd.xlane.f32.xlu0 %v3588_v38  ;;  %v3918_v38 = vld [vmem:[%s8163_s11 + $0xa0] sm:$0xff] }
0x1eb1   : > { %v3586_v39 = vpop.xlane.xlu1 %3585 }
0x1eb2   : > { %v3592_v40 = vmul.f32 0.03125, %v3586_v39  ;;  %v3916_v39 = vld [vmem:[%s8163_s11 + $0x30] sm:$0xff] }
0x1eb4   : > { %v7636_v55 = vsub.f32 %v3572_v31, %v3592_v40  ;;  %v3920_v40 = vld [vmem:[%s8163_s11 + $0xb0] sm:$0xff] }
0x1eb5   : > { %v3590_v41 = vpop.xlane.xlu0 %3589 }
0x1eb6   : > { %v3593_v42 = vmul.f32 0.03125, %v3590_v41  ;;  %v3596_v33 = vmul.f32 %v7636_v55, %v7636_v55  ;;  %v3927_v41 = vld [vmem:[%s8163_s11 + $0x1a8] sm:$0xff] }
0x1eb8   : > { %v7640_v19 = vsub.f32 %v3573_v34, %v3593_v42  ;;  %3600 = vrot.lane.b32.xlu0 %v3596_v33, %s7116_s7  ;;  %v3925_v42 = vld [vmem:[%s8163_s11 + $0x138] sm:$0xff] }
0x1eb9   : > { %v3929_v33 = vld [vmem:[%s8163_s11 + $0x1b8] sm:$0xff] }
0x1eba   : > { %v3597_v43 = vmul.f32 %v7640_v19, %v7640_v19  ;;  %v6599_v50 = vpack.c.bf16 %v3929_v33, %v3925_v42  ;;  %v4139_v42 = vld [vmem:[%s8164_s16 + $0x2c8] sm:$0xff]  ;;  %v4170_v33 = vld [vmem:[%s8164_s16 + $0x3c0] sm:$0xff] }
0x1ebc   : > { %3602 = vrot.lane.b32.xlu1 %v3597_v43, %s7116_s7  ;;  %v6597_v43 = vpack.c.bf16 %v3920_v40, %v3916_v39  ;;  %v4152_v40 = vld [vmem:[%s8164_s16 + $0x330] sm:$0xff] }
0x1f2a   : > { %v3601_v44 = vpop.permute.xlu0 %3600 }
0x1f2b   : > { %v3606_v45 = vsel %vm1091_vm3, %v3601_v44, 0.0  ;;  %v3922_v44 = vld [vmem:[%s8163_s11 + $0x120] sm:$0xff] }
0x1f2c   : > { %3607 = vadd.xlane.f32.xlu1 %v3606_v45  ;;  %v3926_v45 = vld [vmem:[%s8163_s11 + $0x1a0] sm:$0xff] }
0x1f2d   : > { %v6593_v56 = vpack.c.bf16 %v3926_v45, %v3922_v44  ;;  %v4122_v45 = vld [vmem:[%s8164_s16 + $0x240] sm:$0xff] }
0x1f2e   : > { %v3603_v46 = vpop.permute.xlu1 %3602 }
0x1f2f   : > { %v3609_v47 = vsel %vm3587_vm6, %v3603_v46, 0.0  ;;  %v3924_v46 = vld [vmem:[%s8163_s11 + $0x130] sm:$0xff] }
0x1f30   : > { %3610 = vadd.xlane.f32.xlu0 %v3609_v47  ;;  %v3928_v47 = vld [vmem:[%s8163_s11 + $0x1b0] sm:$0xff] }
0x1f31   : > { %v6601_v57 = vpack.c.bf16 %v3928_v47, %v3924_v46 }
0x1f3d   : > { %3635 = vrot.lane.b32.xlu1 %v5763_v48, %s7117_s15 }
0x1f46   : > { %3625 = vrot.lane.b32.xlu0 %v5762_v49, %s7117_s15 }
0x1fb9   : > { %v3608_v17 = vpop.xlane.xlu1 %3607 }
0x1fba   : > { %v3612_v18 = vmul.f32 0.03125, %v3608_v17  ;;  %v4148_v17 = vld [vmem:[%s8164_s16 + $0x310] sm:$0xff] }
0x1fbc   : > { %v3614_v20 = vadd.f32 1e-05, %v3612_v18  ;;  %v4149_v18 = vld [vmem:[%s8164_s16 + $0x318] sm:$0xff] }
0x1fbd   : > { %v3611_v5 = vpop.xlane.xlu0 %3610  ;;  %v3636_v30 = vpop.permute.xlu1 %3635  ;;  %v6641_v25 = vpack.c.bf16 %v4149_v18, %v4148_v17 }
0x1fbe   : > { %7066 = vrsqrt.f32 %v3614_v20  ;;  %v3613_v23 = vmul.f32 0.03125, %v3611_v5  ;;  %v4134_v20 = vld [vmem:[%s8164_s16 + $0x2a0] sm:$0xff]  ;;  %v4135_v5 = vld [vmem:[%s8164_s16 + $0x2a8] sm:$0xff] }
0x1fbf   : > { %v6611_v13 = vpack.c.bf16 %v4135_v5, %v4134_v20  ;;  %v4158_v20 = vld [vmem:[%s8164_s16 + $0x360] sm:$0xff]  ;;  %v4159_v5 = vld [vmem:[%s8164_s16 + $0x368] sm:$0xff] }
0x1fc0   : > { %v3615_v10 = vadd.f32 1e-05, %v3613_v23  ;;  %v4166_v23 = vld [vmem:[%s8164_s16 + $0x3a0] sm:$0xff] }
0x1fc1   : > { %v3626_v28 = vpop.permute.xlu0 %3625  ;;  %v6643_v27 = vpack.c.bf16 %v4167_v22, %v4166_v23  ;;  %v6661_v23 = vpack.c.bf16 %v4159_v5, %v4158_v20  ;;  %v4144_v22 = vld [vmem:[%s8164_s16 + $0x2f0] sm:$0xff] }
0x1fc2   : > { %7068 = vrsqrt.f32 %v3615_v10  ;;  %v4118_v10 = vld [vmem:[%s8164_s16 + $0x220] sm:$0xff] }
0x1fc8   : > { %v7067_v21 = vpop.eup %7066 }
0x1fc9   : > { %v3618_v29 = vmul.f32 %v7067_v21, %v7636_v55  ;;  %v3923_v55 = vld [vmem:[%s8163_s11 + $0x128] sm:$0xff]  ;;  %v4150_v21 = vld [vmem:[%s8164_s16 + $0x320] sm:$0xff] }
0x1fca   : > { %v6591_v49 = vpack.c.bf16 %v3927_v41, %v3923_v55  ;;  %v4153_v55 = vld [vmem:[%s8164_s16 + $0x338] sm:$0xff]  ;;  %v4138_v41 = vld [vmem:[%s8164_s16 + $0x2c0] sm:$0xff] }
0x1fcb   : > { %v3628_v9 = vmul.f32 %v3626_v28, %v3618_v29  ;;  %v4136_v29 = vld [vmem:[%s8164_s16 + $0x2b0] sm:$0xff]  ;;  %v6649_v44 = vpack.c.bf16 %v4153_v55, %v4152_v40  ;;  %v6619_v46 = vpack.c.bf16 %v4139_v42, %v4138_v41 }
0x1fcc   : > { %v7069_v31 = vpop.eup %7068 }
0x1fcd   : > { %v3619_v32 = vmul.f32 %v7069_v31, %v7640_v19  ;;  %v3638_v34 = vadd.f32 %v3636_v30, %v3628_v9  ;;  %v6589_v19 = vpack.c.bf16 %v3918_v38, %v3914_v37  ;;  %v4168_v9 = vld [vmem:[%s8164_s16 + $0x3b0] sm:$0xff]  ;;  %v4169_v31 = vld [vmem:[%s8164_s16 + $0x3b8] sm:$0xff] }
0x1fce   : > { %v4121_v37 = vld [vmem:[%s8164_s16 + $0x238] sm:$0xff]  ;;  %v6647_v39 = vpack.c.bf16 %v4169_v31, %v4168_v9  ;;  %v3866_v31 = vld [vmem:[%s8164_s16 + $0x80] sm:$0xff] }
0x1fcf   : > { %v3629_v35 = vmul.f32 %v3626_v28, %v3619_v32  ;;  %3680 = vrot.lane.b32.xlu1 %v3638_v34, %s7116_s7  ;;  %v4151_v28 = vld [vmem:[%s8164_s16 + $0x328] sm:$0xff]  ;;  %v6613_v32 = vpack.c.bf16 %v4119_v26, %v4118_v10  ;;  %v4177_v26 = vld [vmem:[%s8164_s16 + $0x3f8] sm:$0xff] }
0x1fd0   : > { %v6645_v34 = vpack.c.bf16 %v4151_v28, %v4150_v21 }
0x1fd1   : > { %v7675_v36 = vadd.f32 %v3636_v30, %v3629_v35  ;;  %v4137_v30 = vld [vmem:[%s8164_s16 + $0x2b8] sm:$0xff]  ;;  %v4120_v35 = vld [vmem:[%s8164_s16 + $0x230] sm:$0xff] }
0x1fd2   : > { %v6615_v38 = vpack.c.bf16 %v4137_v30, %v4136_v29  ;;  %v4160_v29 = vld [vmem:[%s8164_s16 + $0x370] sm:$0xff]  ;;  %v4161_v30 = vld [vmem:[%s8164_s16 + $0x378] sm:$0xff] }
0x1fd3   : > { %3682 = vrot.lane.b32.xlu0 %v7675_v36, %s7116_s7  ;;  %v6665_v9 = vpack.c.bf16 %v4161_v30, %v4160_v29 }
0x2041   : > { %v7691_v48 = vpop.permute.xlu1 %3680 }
0x2042   : > { %5764 = vmatmul.mubr.msk.f32.vlgmr.msra.gmra.mrb[22].mxu0 %vm1091_vm3, %v7691_v48  ;;  %5766 = vmatmul.mubr.msk.f32.vlgmr.msra.gmra.mrb[24].mxu1 %vm1091_vm3, %v7691_v48 }
0x2043   : > { %6590 = vmatpush1.bf16.msra.mxu0 %v6589_v19  ;;  %6598 = vmatpush1.bf16.msra.mxu1 %v6597_v43  ;;  %v4171_v19 = vld [vmem:[%s8164_s16 + $0x3c8] sm:$0xff]  ;;  %v6617_v43 = vpack.c.bf16 %v4121_v37, %v4120_v35 }
0x2044   : > { %3758 = vmatprep.mubr.f32.mxu0 %v7113_v6  ;;  %3835 = vmatprep.mubr.f32.mxu1 %v7113_v6  ;;  %v6651_v47 = vpack.c.bf16 %v4171_v19, %v4170_v33  ;;  %v3899_v37 = vld [vmem:[%s8164_s16 + $0x188] sm:$0xff]  ;;  %v3930_v19 = vld [vmem:[%s8165_s18 + $0x4] sm:$0xf] }
0x2045   : > { %v7705_v61 = vpop.permute.xlu0 %3682  ;;  %6592 = vmatprep.subr.bf16.mxu0 %v6591_v49  ;;  %6600 = vmatprep.subr.bf16.mxu1 %v6599_v50  ;;  %v4123_v49 = vld [vmem:[%s8164_s16 + $0x248] sm:$0xff]  ;;  %v4154_v50 = vld [vmem:[%s8164_s16 + $0x340] sm:$0xff] }
0x2046   : > { %5765 = vmatmul.mubr.msk.f32.gmra.mrb[24].mxu0 %vm1091_vm3, %v7705_v61  ;;  %5767 = vmatmul.mubr.msk.f32.gmra.mrb[26].mxu1 %vm1091_vm3, %v7705_v61  ;;  %v6621_v52 = vpack.c.bf16 %v4123_v49, %v4122_v45  ;;  %v6653_v53 = vpack.c.bf16 %v4155_v51, %v4154_v50 }
0x2047   : > { %6594 = vmatpush1.bf16.msra.mxu0 %v6593_v56  ;;  %6602 = vmatpush1.bf16.msra.mxu1 %v6601_v57  ;;  %v4141_v56 = vld [vmem:[%s8164_s16 + $0x2d8] sm:$0xff]  ;;  %v4172_v57 = vld [vmem:[%s8164_s16 + $0x3d0] sm:$0xff] }
0x2048   : > { %4016 = vmatprep.mubr.f32.mxu0 %v7113_v6  ;;  %4093 = vmatprep.mubr.f32.mxu1 %v7113_v6  ;;  %v6623_v58 = vpack.c.bf16 %v4141_v56, %v4140_v54  ;;  %v6655_v63 = vpack.c.bf16 %v4173_v59, %v4172_v57  ;;  %v7811_v57 = vld [vmem:[%s8165_s18] sm:$0xf]  ;;  %v3851_v59 = vld [vmem:[%s8164_s16 + $0x8] sm:$0xff] }
0x2049   : > { %6604 = vmatprep.subr.bf16.mxu0 %v6603_v60  ;;  %6636 = vmatprep.subr.bf16.mxu1 %v6635_v62  ;;  %v4124_v60 = vld [vmem:[%s8164_s16 + $0x250] sm:$0xff]  ;;  %v4125_v62 = vld [vmem:[%s8164_s16 + $0x258] sm:$0xff] }
0x204a   : > { %5768 = vmatmul.mubr.msk.f32.vlgmr.msra.gmra.mrb[26].mxu0 %vm1091_vm3, %v7691_v48  ;;  %5770 = vmatmul.mubr.msk.f32.vlgmr.msra.gmra.mrb[28].mxu1 %vm1091_vm3, %v7691_v48  ;;  %v6625_v0 = vpack.c.bf16 %v4125_v62, %v4124_v60 }
0x204b   : > { %4022 = vmatprep.mubr.f32.mxu0 %v7113_v6  ;;  %4099 = vmatprep.mubr.f32.mxu1 %v7113_v6 }
0x204c   : > { %6606 = vmatpush3.bf16.msra.mxu0 %v6605_v12  ;;  %6638 = vmatpush3.bf16.msra.mxu1 %v6637_v7  ;;  %v4143_v12 = vld [vmem:[%s8164_s16 + $0x2e8] sm:$0xff]  ;;  %v4174_v7 = vld [vmem:[%s8164_s16 + $0x3e0] sm:$0xff] }
0x204d   : > { %6608 = vmatprep.subr.bf16.mxu0 %v6607_v16  ;;  %6640 = vmatprep.subr.bf16.mxu1 %v6639_v15  ;;  %v6627_v11 = vpack.c.bf16 %v4143_v12, %v4142_v8  ;;  %v4126_v16 = vld [vmem:[%s8164_s16 + $0x260] sm:$0xff]  ;;  %v4127_v15 = vld [vmem:[%s8164_s16 + $0x268] sm:$0xff]  ;;  %v6659_v17 = vpack.c.bf16 %v4175_v14, %v4174_v7  ;;  %v3869_v7 = vld [vmem:[%s8164_s16 + $0x98] sm:$0xff] }
0x204e   : > { %5769 = vmatmul.mubr.msk.f32.gmra.mrb[28].mxu0 %vm1091_vm3, %v7705_v61  ;;  %5771 = vmatmul.mubr.msk.f32.gmra.mrb[30].mxu1 %vm1091_vm3, %v7705_v61  ;;  %v6629_v18 = vpack.c.bf16 %v4127_v15, %v4126_v16  ;;  %v3901_v14 = vld [vmem:[%s8164_s16 + $0x198] sm:$0xff] }
0x2050   : > { %6610 = vmatpush3.bf16.msra.mxu0 %v6609_v24  ;;  %6642 = vmatpush3.bf16.msra.mxu1 %v6641_v25  ;;  %v4145_v24 = vld [vmem:[%s8164_s16 + $0x2f8] sm:$0xff]  ;;  %v4176_v25 = vld [vmem:[%s8164_s16 + $0x3f0] sm:$0xff] }
0x2051   : > { %6612 = vmatprep.subr.bf16.mxu0 %v6611_v13  ;;  %6644 = vmatprep.subr.bf16.mxu1 %v6643_v27  ;;  %v6631_v10 = vpack.c.bf16 %v4145_v24, %v4144_v22  ;;  %v4128_v13 = vld [vmem:[%s8164_s16 + $0x270] sm:$0xff]  ;;  %v4129_v27 = vld [vmem:[%s8164_s16 + $0x278] sm:$0xff]  ;;  %v6663_v21 = vpack.c.bf16 %v4177_v26, %v4176_v25 }
0x2052   : > { %v6633_v28 = vpack.c.bf16 %v4129_v27, %v4128_v13  ;;  %v3852_v13 = vld [vmem:[%s8164_s16 + $0x10] sm:$0xff]  ;;  %v3853_v27 = vld [vmem:[%s8164_s16 + $0x18] sm:$0xff] }
0x2054   : > { %6614 = vmatpush3.bf16.msra.mxu0 %v6613_v32  ;;  %6646 = vmatpush3.bf16.msra.mxu1 %v6645_v34  ;;  %v3867_v32 = vld [vmem:[%s8164_s16 + $0x88] sm:$0xff]  ;;  %v3898_v34 = vld [vmem:[%s8164_s16 + $0x180] sm:$0xff] }
0x2055   : > { %6616 = vmatprep.subr.bf16.mxu0 %v6615_v38  ;;  %6648 = vmatprep.subr.bf16.mxu1 %v6647_v39  ;;  %v6667_v35 = vpack.c.bf16 %v3867_v32, %v3866_v31  ;;  %v6699_v38 = vpack.c.bf16 %v3899_v37, %v3898_v34  ;;  %v3658_v39 = vlaneseq  ;;  %v3884_v32 = vld [vmem:[%s8164_s16 + $0x110] sm:$0xff]  ;;  %v3885_v34 = vld [vmem:[%s8164_s16 + $0x118] sm:$0xff] }
0x2057   : > { %v3659_v40 = vshrl.u32 %v3658_v39, 7 }
0x2058   : > { %6618 = vmatpush3.bf16.msra.mxu0 %v6617_v43  ;;  %6650 = vmatpush3.bf16.msra.mxu1 %v6649_v44 }
0x2059   : > { %6620 = vmatprep.subr.bf16.mxu0 %v6619_v46  ;;  %6652 = vmatprep.subr.bf16.mxu1 %v6651_v47  ;;  %v7790_v43 = vsub.s32 0, %v3659_v40  ;;  %v7792_v44 = vsub.s32 2, %v3659_v40  ;;  %v7794_v45 = vsub.s32 1, %v3659_v40  ;;  %v7796_v46 = vsub.s32 3, %v3659_v40 }
0x205b   : > { %v3939_v54 = vrot.slane %v3930_v19, %v7794_v45  ;;  %v3947_v56 = vrot.slane %v3930_v19, %v7796_v46 }
0x205c   : > { %6622 = vmatpush3.bf16.msra.mxu0 %v6621_v52  ;;  %6654 = vmatpush3.bf16.msra.mxu1 %v6653_v53  ;;  %v3935_v52 = vrot.slane %v3930_v19, %v7790_v43  ;;  %v3943_v53 = vrot.slane %v3930_v19, %v7792_v44  ;;  %v3871_v19 = vld [vmem:[%s8164_s16 + $0xa8] sm:$0xff] }
0x205d   : > { %6624 = vmatprep.subr.bf16.mxu0 %v6623_v58  ;;  %6656 = vmatprep.subr.bf16.mxu1 %v6655_v63  ;;  %v3850_v58 = vld [vmem:[%s8164_s16] sm:$0xff] }
0x205e   : > { %v3882_v63 = vld [vmem:[%s8164_s16 + $0x100] sm:$0xff]  ;;  %v6669_v20 = vpack.c.bf16 %v3851_v59, %v3850_v58  ;;  %v6705_v59 = vpack.c.bf16 %v3885_v34, %v3884_v32  ;;  %v3891_v34 = vld [vmem:[%s8164_s16 + $0x148] sm:$0xff] }
0x205f   : > { %v3890_v32 = vld [vmem:[%s8164_s16 + $0x140] sm:$0xff] }
0x2060   : > { %6626 = vmatpush3.bf16.msra.mxu0 %v6625_v0  ;;  %6658 = vmatpush3.bf16.msra.mxu1 %v6657_v3  ;;  %v3883_v0 = vld [vmem:[%s8164_s16 + $0x108] sm:$0xff] }
0x2061   : > { %6628 = vmatprep.subr.bf16.mxu0 %v6627_v11  ;;  %6660 = vmatprep.subr.bf16.mxu1 %v6659_v17  ;;  %v3900_v11 = vld [vmem:[%s8164_s16 + $0x190] sm:$0xff]  ;;  %v7823_v17 = vrot.slane %v7811_v57, %v7794_v45  ;;  %v6701_v5 = vpack.c.bf16 %v3883_v0, %v3882_v63  ;;  %v3886_v63 = vld [vmem:[%s8164_s16 + $0x120] sm:$0xff]  ;;  %v3887_v0 = vld [vmem:[%s8164_s16 + $0x128] sm:$0xff] }
0x2062   : > { %v6703_v26 = vpack.c.bf16 %v3901_v14, %v3900_v11 }
0x2064   : > { %6630 = vmatpush3.bf16.msra.mxu0 %v6629_v18  ;;  %6662 = vmatpush3.bf16.msra.mxu1 %v6661_v23  ;;  %v7827_v18 = vrot.slane %v7811_v57, %v7796_v46 }
0x2065   : > { %6632 = vmatprep.subr.bf16.mxu0 %v6631_v10  ;;  %6664 = vmatprep.subr.bf16.mxu1 %v6663_v21  ;;  %v6671_v10 = vpack.c.bf16 %v3869_v7, %v3868_v1  ;;  %v3872_v1 = vld [vmem:[%s8164_s16 + $0xb0] sm:$0xff]  ;;  %v3905_v7 = vld [vmem:[%s8164_s16 + $0x1b8] sm:$0xff] }
0x2068   : > { %6634 = vmatpush3.bf16.msra.mxu0 %v6633_v28  ;;  %6666 = vmatpush3.bf16.msra.mxu1 %v6665_v9 }
0x2069   : > { %6668 = vmatprep.subr.bf16.mxu0 %v6667_v35  ;;  %6700 = vmatprep.subr.bf16.mxu1 %v6699_v38  ;;  %v3870_v38 = vld [vmem:[%s8164_s16 + $0xa0] sm:$0xff] }
0x2115   : > { %v7785_v55 = vpop.f32.mrb[22].mxu0  ;;  %v7787_v41 = vpop.f32.mrb[24].mxu1 }
0x2116   : > { %v3756_v42 = vpop.f32.mrb[23].mxu0  ;;  %v3833_v33 = vpop.f32.mrb[25].mxu1 }
0x2117   : > { %v3757_v39 = vadd.f32 %v3756_v42, %v7823_v17  ;;  %v3834_v40 = vadd.f32 %v3833_v33, %v7827_v18  ;;  %v3854_v42 = vld [vmem:[%s8164_s16 + $0x20] sm:$0xff] }
0x2119   : > { %v7798_v47 = vpop.f32.mrb[24].mxu0  ;;  %v7800_v49 = vpop.f32.mrb[26].mxu1  ;;  %v3843_v11 = vmax.f32 %v3757_v39, 0.0  ;;  %v3845_v14 = vmax.f32 %v3834_v40, 0.0  ;;  %v3909_v39 = vld [vmem:[%s8164_s16 + $0x1d8] sm:$0xff] }
0x211a   : > { %v7802_v50 = vpop.f32.mrb[25].mxu0  ;;  %v7804_v51 = vpop.f32.mrb[27].mxu1 }
0x211d   : > { %v4018_v60 = vpop.f32.mrb[26].mxu0  ;;  %v4095_v62 = vpop.f32.mrb[28].mxu1 }
0x211e   : > { %v4019_v2 = vadd.f32 %v4018_v60, %v3935_v52  ;;  %v4096_v3 = vadd.f32 %v4095_v62, %v3943_v53  ;;  %v4020_v8 = vpop.f32.mrb[27].mxu0  ;;  %v4097_v12 = vpop.f32.mrb[29].mxu1  ;;  %v3855_v60 = vld [vmem:[%s8164_s16 + $0x28] sm:$0xff] }
0x211f   : > { %v4021_v16 = vadd.f32 %v4020_v8, %v3939_v54  ;;  %v4098_v15 = vadd.f32 %v4097_v12, %v3947_v56  ;;  %v3873_v8 = vld [vmem:[%s8164_s16 + $0xb8] sm:$0xff]  ;;  %v3904_v12 = vld [vmem:[%s8164_s16 + $0x1b0] sm:$0xff] }
0x2120   : > { %v4106_v21 = vmax.f32 %v4019_v2, 0.0  ;;  %v4108_v28 = vmax.f32 %v4096_v3, 0.0  ;;  %v6675_v2 = vpack.c.bf16 %v3871_v19, %v3870_v38  ;;  %v3908_v38 = vld [vmem:[%s8164_s16 + $0x1d0] sm:$0xff]  ;;  %v6717_v19 = vpack.c.bf16 %v3891_v34, %v3890_v32  ;;  %v4474_v32 = vld [vmem:[%s8163_s11 + $0x40] sm:$0xff] }
0x2121   : > { %v4107_v23 = vmax.f32 %v4021_v16, 0.0  ;;  %v4109_v22 = vmax.f32 %v4098_v15, 0.0  ;;  %v4024_v24 = vpop.f32.mrb[28].mxu0  ;;  %v4101_v25 = vpop.f32.mrb[30].mxu1  ;;  %v6677_v16 = vpack.c.bf16 %v3855_v60, %v3854_v42  ;;  %v6709_v15 = vpack.c.bf16 %v3887_v0, %v3886_v63  ;;  %v3878_v42 = vld [vmem:[%s8164_s16 + $0xe0] sm:$0xff]  ;;  %v3879_v60 = vld [vmem:[%s8164_s16 + $0xe8] sm:$0xff] }
0x2122   : > { %v4025_v29 = vadd.f32 %v4024_v24, %v3935_v52  ;;  %v4102_v30 = vadd.f32 %v4101_v25, %v3943_v53  ;;  %v4026_v9 = vpop.f32.mrb[29].mxu0  ;;  %v4103_v31 = vpop.f32.mrb[31].mxu1  ;;  %v3902_v52 = vld [vmem:[%s8164_s16 + $0x1a0] sm:$0xff]  ;;  %v3903_v53 = vld [vmem:[%s8164_s16 + $0x1a8] sm:$0xff]  ;;  %v3888_v24 = vld [vmem:[%s8164_s16 + $0x130] sm:$0xff] }
0x2123   : > { %v4027_v35 = vadd.f32 %v4026_v9, %v3939_v54  ;;  %v4104_v37 = vadd.f32 %v4103_v31, %v3947_v56  ;;  %4242 = vmatprep.mubr.f32.mxu0 %v4107_v23  ;;  %4316 = vmatprep.mubr.f32.mxu1 %v4109_v22  ;;  %v6673_v56 = vpack.c.bf16 %v3853_v27, %v3852_v13  ;;  %v3889_v25 = vld [vmem:[%s8164_s16 + $0x138] sm:$0xff]  ;;  %v3906_v13 = vld [vmem:[%s8164_s16 + $0x1c0] sm:$0xff]  ;;  %v3907_v27 = vld [vmem:[%s8164_s16 + $0x1c8] sm:$0xff] }
0x2124   : > { %4243 = vmatmul.mubr.f32.vlgmr.msra.gmra.mrb[30].mxu0 %v4106_v21  ;;  %4317 = vmatmul.mubr.f32.vlgmr.msra.gmra.mrb[32].mxu1 %v4108_v28  ;;  %v4110_v33 = vmax.f32 %v4025_v29, 0.0  ;;  %v4112_v62 = vmax.f32 %v4102_v30, 0.0  ;;  %v6707_v3 = vpack.c.bf16 %v3903_v53, %v3902_v52  ;;  %v6679_v23 = vpack.c.bf16 %v3873_v8, %v3872_v1  ;;  %v3858_v29 = vld [vmem:[%s8164_s16 + $0x40] sm:$0xff]  ;;  %v3859_v30 = vld [vmem:[%s8164_s16 + $0x48] sm:$0xff]  ;;  %v3860_v52 = vld [vmem:[%s8164_s16 + $0x50] sm:$0xff] }
0x2125   : > { %v4111_v58 = vmax.f32 %v4027_v35, 0.0  ;;  %v4113_v54 = vmax.f32 %v4104_v37, 0.0  ;;  %6670 = vmatpush3.bf16.msra.mxu0 %v6669_v20  ;;  %6702 = vmatpush3.bf16.msra.mxu1 %v6701_v5  ;;  %v3856_v20 = vld [vmem:[%s8164_s16 + $0x30] sm:$0xff]  ;;  %v3857_v5 = vld [vmem:[%s8164_s16 + $0x38] sm:$0xff]  ;;  %v6711_v22 = vpack.c.bf16 %v3905_v7, %v3904_v12  ;;  %v6713_v28 = vpack.c.bf16 %v3889_v25, %v3888_v24  ;;  %v3862_v1 = vld [vmem:[%s8164_s16 + $0x60] sm:$0xff] }
0x2126   : > { %6672 = vmatprep.subr.bf16.mxu0 %v6671_v10  ;;  %6704 = vmatprep.subr.bf16.mxu1 %v6703_v26  ;;  %v3874_v10 = vld [vmem:[%s8164_s16 + $0xc0] sm:$0xff]  ;;  %v3875_v26 = vld [vmem:[%s8164_s16 + $0xc8] sm:$0xff]  ;;  %v6681_v21 = vpack.c.bf16 %v3857_v5, %v3856_v20  ;;  %v6715_v31 = vpack.c.bf16 %v3907_v27, %v3906_v13  ;;  %v3876_v35 = vld [vmem:[%s8164_s16 + $0xd0] sm:$0xff]  ;;  %v6685_v40 = vpack.c.bf16 %v3859_v30, %v3858_v29 }
0x2127   : > { %4246 = vmatprep.mubr.f32.mxu0 %v4111_v58  ;;  %4320 = vmatprep.mubr.f32.mxu1 %v4113_v54  ;;  %v6683_v9 = vpack.c.bf16 %v3875_v26, %v3874_v10  ;;  %v3877_v37 = vld [vmem:[%s8164_s16 + $0xd8] sm:$0xff]  ;;  %v6719_v54 = vpack.c.bf16 %v3909_v39, %v3908_v38  ;;  %v3894_v12 = vld [vmem:[%s8164_s16 + $0x160] sm:$0xff]  ;;  %v3895_v7 = vld [vmem:[%s8164_s16 + $0x168] sm:$0xff]  ;;  %v3661_v20 = vrot.slane %v7811_v57, %v7790_v43 }
0x2128   : > { %4247 = vmatmul.mubr.f32.gmra.mrb[32].mxu0 %v4110_v33  ;;  %4321 = vmatmul.mubr.f32.gmra.mrb[34].mxu1 %v4112_v62  ;;  %v3861_v53 = vld [vmem:[%s8164_s16 + $0x58] sm:$0xff]  ;;  %v6687_v58 = vpack.c.bf16 %v3877_v37, %v3876_v35  ;;  %v3910_v33 = vld [vmem:[%s8164_s16 + $0x1e0] sm:$0xff]  ;;  %v3911_v62 = vld [vmem:[%s8164_s16 + $0x1e8] sm:$0xff]  ;;  %v3669_v10 = vrot.slane %v7811_v57, %v7792_v44 }
0x2129   : > { %6674 = vmatpush3.bf16.msra.mxu0 %v6673_v56  ;;  %6706 = vmatpush3.bf16.msra.mxu1 %v6705_v59  ;;  %v3892_v56 = vld [vmem:[%s8164_s16 + $0x150] sm:$0xff]  ;;  %v3893_v59 = vld [vmem:[%s8164_s16 + $0x158] sm:$0xff]  ;;  %v6689_v63 = vpack.c.bf16 %v3861_v53, %v3860_v52  ;;  %v6723_v8 = vpack.c.bf16 %v3911_v62, %v3910_v33  ;;  %v3755_v34 = vadd.f32 %v7785_v55, %v3661_v20  ;;  %v4478_v38 = vld [vmem:[%s8163_s11 + $0xc0] sm:$0xff] }
0x212a   : > { %4390 = vmatprep.mubr.f32.mxu0 %v3843_v11  ;;  %4464 = vmatprep.mubr.f32.mxu1 %v3845_v14  ;;  %v6721_v0 = vpack.c.bf16 %v3893_v59, %v3892_v56  ;;  %v3880_v11 = vld [vmem:[%s8164_s16 + $0xf0] sm:$0xff]  ;;  %v3881_v14 = vld [vmem:[%s8164_s16 + $0xf8] sm:$0xff]  ;;  %v3832_v35 = vadd.f32 %v7787_v41, %v3669_v10  ;;  %v3840_v52 = vadd.f32 %v7804_v51, %v7827_v18  ;;  %v4483_v53 = vld [vmem:[%s8163_s11 + $0x148] sm:$0xff] }
0x212b   : > { %6676 = vmatprep.subr.bf16.mxu0 %v6675_v2  ;;  %6708 = vmatprep.subr.bf16.mxu1 %v6707_v3  ;;  %v3863_v2 = vld [vmem:[%s8164_s16 + $0x68] sm:$0xff]  ;;  %v6691_v3 = vpack.c.bf16 %v3879_v60, %v3878_v42  ;;  %v3865_v24 = vld [vmem:[%s8164_s16 + $0x78] sm:$0xff]  ;;  %v3896_v25 = vld [vmem:[%s8164_s16 + $0x170] sm:$0xff]  ;;  %v6695_v26 = vpack.c.bf16 %v3881_v14, %v3880_v11  ;;  %v6733_v55 = vpack.c.bf16 %v4478_v38, %v4474_v32  ;;  %v3842_v59 = vmax.f32 %v3755_v34, 0.0 }
0x212c   : > { %v6693_v5 = vpack.c.bf16 %v3863_v2, %v3862_v1  ;;  %v3897_v27 = vld [vmem:[%s8164_s16 + $0x178] sm:$0xff]  ;;  %v4476_v39 = vld [vmem:[%s8163_s11 + $0x50] sm:$0xff]  ;;  %v3844_v42 = vmax.f32 %v3832_v35, 0.0  ;;  %v3761_v60 = vadd.f32 %v7798_v47, %v3661_v20  ;;  %v4482_v51 = vld [vmem:[%s8163_s11 + $0x140] sm:$0xff]  ;;  %v3849_v18 = vmax.f32 %v3840_v52, 0.0 }
0x212d   : > { %6678 = vmatpush3.bf16.msra.mxu0 %v6677_v16  ;;  %6710 = vmatpush3.bf16.msra.mxu1 %v6709_v15  ;;  %v3912_v16 = vld [vmem:[%s8164_s16 + $0x1f0] sm:$0xff]  ;;  %v3913_v15 = vld [vmem:[%s8164_s16 + $0x1f8] sm:$0xff]  ;;  %v4723_v14 = vld [vmem:[%s8164_s16 + $0x588] sm:$0xff] }
0x212e   : > { %6680 = vmatprep.subr.bf16.mxu0 %v6679_v23  ;;  %6712 = vmatprep.subr.bf16.mxu1 %v6711_v22  ;;  %v6725_v23 = vpack.c.bf16 %v3895_v7, %v3894_v12  ;;  %v3864_v22 = vld [vmem:[%s8164_s16 + $0x70] sm:$0xff]  ;;  %v6727_v13 = vpack.c.bf16 %v3913_v15, %v3912_v16  ;;  %v4477_v29 = vld [vmem:[%s8163_s11 + $0x58] sm:$0xff]  ;;  %v3846_v2 = vmax.f32 %v3761_v60, 0.0  ;;  %v4691_v12 = vld [vmem:[%s8164_s16 + $0x488] sm:$0xff] }
0x212f   : > { %v4481_v30 = vld [vmem:[%s8163_s11 + $0xd8] sm:$0xff]  ;;  %v4488_v1 = vld [vmem:[%s8163_s11 + $0x1d0] sm:$0xff]  ;;  %v4722_v7 = vld [vmem:[%s8164_s16 + $0x580] sm:$0xff] }
0x2130   : > { %v6739_v37 = vpack.c.bf16 %v4481_v30, %v4477_v29  ;;  %v4489_v56 = vld [vmem:[%s8163_s11 + $0x1d8] sm:$0xff]  ;;  %v4674_v16 = vld [vmem:[%s8164_s16 + $0x400] sm:$0xff]  ;;  %v4675_v15 = vld [vmem:[%s8164_s16 + $0x408] sm:$0xff]  ;;  %v6779_v20 = vpack.c.bf16 %v4723_v14, %v4722_v7 }
0x2131   : > { %6682 = vmatpush3.bf16.msra.mxu0 %v6681_v21  ;;  %6714 = vmatpush3.bf16.msra.mxu1 %v6713_v28  ;;  %v4475_v21 = vld [vmem:[%s8163_s11 + $0x48] sm:$0xff]  ;;  %v4677_v29 = vld [vmem:[%s8164_s16 + $0x418] sm:$0xff]  ;;  %v4708_v30 = vld [vmem:[%s8164_s16 + $0x510] sm:$0xff] }
0x2132   : > { %6684 = vmatprep.subr.bf16.mxu0 %v6683_v9  ;;  %6716 = vmatprep.subr.bf16.mxu1 %v6715_v31  ;;  %v4479_v28 = vld [vmem:[%s8163_s11 + $0xc8] sm:$0xff]  ;;  %v6697_v9 = vpack.c.bf16 %v3865_v24, %v3864_v22  ;;  %v6729_v31 = vpack.c.bf16 %v3897_v27, %v3896_v25  ;;  %v4692_v24 = vld [vmem:[%s8164_s16 + $0x490] sm:$0xff]  ;;  %v4710_v52 = vld [vmem:[%s8164_s16 + $0x520] sm:$0xff] }
0x2133   : > { %v6731_v57 = vpack.c.bf16 %v4479_v28, %v4475_v21  ;;  %v4707_v22 = vld [vmem:[%s8164_s16 + $0x508] sm:$0xff]  ;;  %v4676_v28 = vld [vmem:[%s8164_s16 + $0x410] sm:$0xff] }
0x2134   : > { %v4695_v32 = vld [vmem:[%s8164_s16 + $0x4a8] sm:$0xff]  ;;  %v4680_v60 = vld [vmem:[%s8164_s16 + $0x430] sm:$0xff] }
0x2135   : > { %6686 = vmatpush3.bf16.msra.mxu0 %v6685_v40  ;;  %6718 = vmatpush3.bf16.msra.mxu1 %v6717_v19  ;;  %v4480_v40 = vld [vmem:[%s8163_s11 + $0xd0] sm:$0xff]  ;;  %v3763_v19 = vadd.f32 %v7802_v50, %v7823_v17  ;;  %v3838_v50 = vadd.f32 %v7800_v49, %v3669_v10  ;;  %v4693_v10 = vld [vmem:[%s8164_s16 + $0x498] sm:$0xff]  ;;  %v4727_v38 = vld [vmem:[%s8164_s16 + $0x5a8] sm:$0xff] }
0x2136   : > { %6688 = vmatprep.subr.bf16.mxu0 %v6687_v58  ;;  %6720 = vmatprep.subr.bf16.mxu1 %v6719_v54  ;;  %v4487_v58 = vld [vmem:[%s8163_s11 + $0x1c8] sm:$0xff]  ;;  %v4485_v54 = vld [vmem:[%s8163_s11 + $0x158] sm:$0xff]  ;;  %v6741_v41 = vpack.c.bf16 %v4480_v40, %v4476_v39  ;;  %v6751_v27 = vpack.c.bf16 %v4693_v10, %v4692_v24  ;;  %v4678_v39 = vld [vmem:[%s8164_s16 + $0x420] sm:$0xff] }
0x2137   : > { %v3847_v17 = vmax.f32 %v3763_v19, 0.0  ;;  %v6735_v33 = vpack.c.bf16 %v4487_v58, %v4483_v53  ;;  %v6743_v62 = vpack.c.bf16 %v4489_v56, %v4485_v54  ;;  %v4679_v19 = vld [vmem:[%s8164_s16 + $0x428] sm:$0xff]  ;;  %v4696_v54 = vld [vmem:[%s8164_s16 + $0x4b0] sm:$0xff]  ;;  %v4697_v56 = vld [vmem:[%s8164_s16 + $0x4b8] sm:$0xff] }
0x2138   : > { %v4711_v53 = vld [vmem:[%s8164_s16 + $0x528] sm:$0xff]  ;;  %v6757_v58 = vpack.c.bf16 %v4679_v19, %v4678_v39  ;;  %v4685_v24 = vld [vmem:[%s8164_s16 + $0x458] sm:$0xff]  ;;  %v4704_v39 = vld [vmem:[%s8164_s16 + $0x4f0] sm:$0xff] }
0x2139   : > { %6690 = vmatpush3.bf16.msra.mxu0 %v6689_v63  ;;  %6722 = vmatpush3.bf16.msra.mxu1 %v6721_v0  ;;  %v4486_v63 = vld [vmem:[%s8163_s11 + $0x1c0] sm:$0xff]  ;;  %v4484_v0 = vld [vmem:[%s8163_s11 + $0x150] sm:$0xff] }
0x213a   : > { %6692 = vmatprep.subr.bf16.mxu0 %v6691_v3  ;;  %6724 = vmatprep.subr.bf16.mxu1 %v6723_v8  ;;  %v3848_v3 = vmax.f32 %v3838_v50, 0.0  ;;  %v6737_v47 = vpack.c.bf16 %v4486_v63, %v4482_v51  ;;  %v6745_v49 = vpack.c.bf16 %v4488_v1, %v4484_v0  ;;  %v4690_v8 = vld [vmem:[%s8164_s16 + $0x480] sm:$0xff]  ;;  %v4681_v50 = vld [vmem:[%s8164_s16 + $0x438] sm:$0xff]  ;;  %v4731_v0 = vld [vmem:[%s8164_s16 + $0x5c8] sm:$0xff] }
0x213b   : > { %v6747_v11 = vpack.c.bf16 %v4691_v12, %v4690_v8  ;;  %v4730_v63 = vld [vmem:[%s8164_s16 + $0x5c0] sm:$0xff]  ;;  %v6761_v1 = vpack.c.bf16 %v4681_v50, %v4680_v60  ;;  %v4683_v8 = vld [vmem:[%s8164_s16 + $0x448] sm:$0xff]  ;;  %v4736_v19 = vld [vmem:[%s8164_s16 + $0x5f0] sm:$0xff] }
0x213c   : > { %v4714_v12 = vld [vmem:[%s8164_s16 + $0x540] sm:$0xff]  ;;  %v4888_v60 = vld [vmem:[%s8163_s11 + $0x68] sm:$0xff] }
0x213d   : > { %6694 = vmatpush3.bf16.msra.mxu0 %v6693_v5  ;;  %6726 = vmatpush3.bf16.msra.mxu1 %v6725_v23  ;;  %v6749_v5 = vpack.c.bf16 %v4675_v15, %v4674_v16  ;;  %v4706_v23 = vld [vmem:[%s8164_s16 + $0x500] sm:$0xff]  ;;  %v4700_v16 = vld [vmem:[%s8164_s16 + $0x4d0] sm:$0xff]  ;;  %v4701_v15 = vld [vmem:[%s8164_s16 + $0x4d8] sm:$0xff] }
0x213e   : > { %6696 = vmatprep.subr.bf16.mxu0 %v6695_v26  ;;  %6728 = vmatprep.subr.bf16.mxu1 %v6727_v13  ;;  %v6781_v25 = vpack.c.bf16 %v4707_v22, %v4706_v23  ;;  %v4724_v26 = vld [vmem:[%s8164_s16 + $0x590] sm:$0xff]  ;;  %v4725_v13 = vld [vmem:[%s8164_s16 + $0x598] sm:$0xff]  ;;  %v4892_v50 = vld [vmem:[%s8163_s11 + $0xe8] sm:$0xff] }
0x213f   : > { %v6783_v21 = vpack.c.bf16 %v4725_v13, %v4724_v26  ;;  %v4733_v23 = vld [vmem:[%s8164_s16 + $0x5d8] sm:$0xff]  ;;  %v4684_v22 = vld [vmem:[%s8164_s16 + $0x450] sm:$0xff] }
0x2140   : > { %v6769_v10 = vpack.c.bf16 %v4685_v24, %v4684_v22  ;;  %v4716_v26 = vld [vmem:[%s8164_s16 + $0x550] sm:$0xff]  ;;  %v4717_v13 = vld [vmem:[%s8164_s16 + $0x558] sm:$0xff] }
0x2141   : > { %6698 = vmatpush3.bf16.msra.mxu0 %v6697_v9  ;;  %6730 = vmatpush3.bf16.msra.mxu1 %v6729_v31  ;;  %v6753_v9 = vpack.c.bf16 %v4677_v29, %v4676_v28  ;;  %v4709_v31 = vld [vmem:[%s8164_s16 + $0x518] sm:$0xff]  ;;  %v4703_v28 = vld [vmem:[%s8164_s16 + $0x4e8] sm:$0xff]  ;;  %v4734_v29 = vld [vmem:[%s8164_s16 + $0x5e0] sm:$0xff] }
0x2142   : > { %6732 = vmatprep.subr.bf16.mxu0 %v6731_v57  ;;  %6740 = vmatprep.subr.bf16.mxu1 %v6739_v37  ;;  %v4694_v57 = vld [vmem:[%s8164_s16 + $0x4a0] sm:$0xff]  ;;  %v6785_v34 = vpack.c.bf16 %v4709_v31, %v4708_v30 }
0x2143   : > { %v6755_v35 = vpack.c.bf16 %v4695_v32, %v4694_v57  ;;  %v4726_v37 = vld [vmem:[%s8164_s16 + $0x5a0] sm:$0xff]  ;;  %v4687_v57 = vld [vmem:[%s8164_s16 + $0x468] sm:$0xff] }
0x2144   : > { %4391 = vmatmul.mubr.f32.vlgmr.msra.gmra.mrb[34].mxu0 %v3842_v59  ;;  %4465 = vmatmul.mubr.f32.vlgmr.msra.gmra.mrb[36].mxu1 %v3844_v42  ;;  %v6787_v40 = vpack.c.bf16 %v4727_v38, %v4726_v37  ;;  %v6759_v59 = vpack.c.bf16 %v4697_v56, %v4696_v54  ;;  %v4729_v42 = vld [vmem:[%s8164_s16 + $0x5b8] sm:$0xff]  ;;  %v4686_v31 = vld [vmem:[%s8164_s16 + $0x460] sm:$0xff]  ;;  %v4719_v37 = vld [vmem:[%s8164_s16 + $0x568] sm:$0xff] }
0x2145   : > { %4394 = vmatprep.mubr.f32.mxu0 %v3847_v17  ;;  %4468 = vmatprep.mubr.f32.mxu1 %v3849_v18  ;;  %v4712_v17 = vld [vmem:[%s8164_s16 + $0x530] sm:$0xff]  ;;  %v4713_v18 = vld [vmem:[%s8164_s16 + $0x538] sm:$0xff] }
0x2146   : > { %6734 = vmatpush1.bf16.msra.mxu0 %v6733_v55  ;;  %6742 = vmatpush1.bf16.msra.mxu1 %v6741_v41  ;;  %v4728_v55 = vld [vmem:[%s8164_s16 + $0x5b0] sm:$0xff]  ;;  %v6789_v41 = vpack.c.bf16 %v4711_v53, %v4710_v52  ;;  %v4737_v53 = vld [vmem:[%s8164_s16 + $0x5f8] sm:$0xff] }
0x2147   : > { %6736 = vmatprep.subr.bf16.mxu0 %v6735_v33  ;;  %6744 = vmatprep.subr.bf16.mxu1 %v6743_v62  ;;  %v6791_v51 = vpack.c.bf16 %v4729_v42, %v4728_v55  ;;  %v4698_v33 = vld [vmem:[%s8164_s16 + $0x4c0] sm:$0xff]  ;;  %v4699_v62 = vld [vmem:[%s8164_s16 + $0x4c8] sm:$0xff]  ;;  %v4689_v54 = vld [vmem:[%s8164_s16 + $0x478] sm:$0xff]  ;;  %v6807_v56 = vpack.c.bf16 %v4737_v53, %v4736_v19 }
0x2148   : > { %4395 = vmatmul.mubr.f32.gmra.mrb[36].mxu0 %v3846_v2  ;;  %4469 = vmatmul.mubr.f32.gmra.mrb[38].mxu1 %v3848_v3  ;;  %v6793_v2 = vpack.c.bf16 %v4713_v18, %v4712_v17  ;;  %v6763_v3 = vpack.c.bf16 %v4699_v62, %v4698_v33  ;;  %v6811_v17 = vpack.c.bf16 %v4892_v50, %v4888_v60  ;;  %v4894_v18 = vld [vmem:[%s8163_s11 + $0xf8] sm:$0xff]  ;;  %v4900_v19 = vld [vmem:[%s8163_s11 + $0x1e8] sm:$0xff] }
0x2149   : > { %4576 = vmatprep.mubr.f32.mxu0 %v7113_v6  ;;  %4653 = vmatprep.mubr.f32.mxu1 %v7113_v6  ;;  %v4902_v53 = vld [vmem:[%s8163_s11 + $0x1f8] sm:$0xff] }
0x214a   : > { %6738 = vmatpush1.bf16.msra.mxu0 %v6737_v47  ;;  %6746 = vmatpush1.bf16.msra.mxu1 %v6745_v49  ;;  %v6795_v47 = vpack.c.bf16 %v4731_v0, %v4730_v63  ;;  %v4682_v49 = vld [vmem:[%s8164_s16 + $0x440] sm:$0xff] }
0x214b   : > { %6748 = vmatprep.subr.bf16.mxu0 %v6747_v11  ;;  %6780 = vmatprep.subr.bf16.mxu1 %v6779_v20  ;;  %v6765_v7 = vpack.c.bf16 %v4683_v8, %v4682_v49  ;;  %v4715_v11 = vld [vmem:[%s8164_s16 + $0x548] sm:$0xff]  ;;  %v4732_v20 = vld [vmem:[%s8164_s16 + $0x5d0] sm:$0xff] }
0x214c   : > { %v6797_v14 = vpack.c.bf16 %v4715_v11, %v4714_v12 }
0x214d   : > { %5772 = vmatmul.mubr.msk.f32.vlgmr.msra.gmra.mrb[38].mxu0 %vm1091_vm3, %v7691_v48  ;;  %5774 = vmatmul.mubr.msk.f32.vlgmr.msra.gmra.mrb[40].mxu1 %vm1091_vm3, %v7691_v48 }
0x214e   : > { %4582 = vmatprep.mubr.f32.mxu0 %v7113_v6  ;;  %4659 = vmatprep.mubr.f32.mxu1 %v7113_v6 }
0x214f   : > { %6750 = vmatpush3.bf16.msra.mxu0 %v6749_v5  ;;  %6782 = vmatpush3.bf16.msra.mxu1 %v6781_v25  ;;  %v6767_v5 = vpack.c.bf16 %v4701_v15, %v4700_v16  ;;  %v6799_v25 = vpack.c.bf16 %v4733_v23, %v4732_v20  ;;  %v4490_v20 = vld [vmem:[%s8165_s18 + $0x8] sm:$0xf] }
0x2150   : > { %6752 = vmatprep.subr.bf16.mxu0 %v6751_v27  ;;  %6784 = vmatprep.subr.bf16.mxu1 %v6783_v21  ;;  %v6801_v27 = vpack.c.bf16 %v4717_v13, %v4716_v26  ;;  %v4702_v21 = vld [vmem:[%s8164_s16 + $0x4e0] sm:$0xff]  ;;  %v4495_v26 = vrot.slane %v4490_v20, %v7790_v43  ;;  %v4503_v13 = vrot.slane %v4490_v20, %v7792_v44 }
0x2151   : > { %5773 = vmatmul.mubr.msk.f32.gmra.mrb[40].mxu0 %vm1091_vm3, %v7705_v61  ;;  %5775 = vmatmul.mubr.msk.f32.gmra.mrb[42].mxu1 %vm1091_vm3, %v7705_v61  ;;  %v6771_v30 = vpack.c.bf16 %v4703_v28, %v4702_v21  ;;  %v4507_v21 = vrot.slane %v4490_v20, %v7796_v46 }
0x2153   : > { %6754 = vmatpush3.bf16.msra.mxu0 %v6753_v9  ;;  %6786 = vmatpush3.bf16.msra.mxu1 %v6785_v34  ;;  %v4735_v9 = vld [vmem:[%s8164_s16 + $0x5e8] sm:$0xff]  ;;  %v6773_v34 = vpack.c.bf16 %v4687_v57, %v4686_v31  ;;  %v4889_v57 = vld [vmem:[%s8163_s11 + $0x70] sm:$0xff] }
0x2154   : > { %6756 = vmatprep.subr.bf16.mxu0 %v6755_v35  ;;  %6788 = vmatprep.subr.bf16.mxu1 %v6787_v40  ;;  %v6803_v32 = vpack.c.bf16 %v4735_v9, %v4734_v29  ;;  %v4718_v35 = vld [vmem:[%s8164_s16 + $0x560] sm:$0xff]  ;;  %v4705_v40 = vld [vmem:[%s8164_s16 + $0x4f8] sm:$0xff] }
0x2155   : > { %v6805_v38 = vpack.c.bf16 %v4719_v37, %v4718_v35  ;;  %v6775_v52 = vpack.c.bf16 %v4705_v40, %v4704_v39  ;;  %v4887_v29 = vld [vmem:[%s8163_s11 + $0x60] sm:$0xff] }
0x2157   : > { %6758 = vmatpush3.bf16.msra.mxu0 %v6757_v58  ;;  %6790 = vmatpush3.bf16.msra.mxu1 %v6789_v41  ;;  %v4688_v58 = vld [vmem:[%s8164_s16 + $0x470] sm:$0xff] }
0x2158   : > { %6760 = vmatprep.subr.bf16.mxu0 %v6759_v59  ;;  %6792 = vmatprep.subr.bf16.mxu1 %v6791_v51  ;;  %v6777_v55 = vpack.c.bf16 %v4689_v54, %v4688_v58  ;;  %v4720_v41 = vld [vmem:[%s8164_s16 + $0x570] sm:$0xff]  ;;  %v4721_v59 = vld [vmem:[%s8164_s16 + $0x578] sm:$0xff] }
0x2159   : > { %v6809_v42 = vpack.c.bf16 %v4721_v59, %v4720_v41  ;;  %v4890_v51 = vld [vmem:[%s8163_s11 + $0x78] sm:$0xff] }
0x215a   : > { %v6819_v33 = vpack.c.bf16 %v4894_v18, %v4890_v51  ;;  %v4899_v18 = vld [vmem:[%s8163_s11 + $0x1e0] sm:$0xff] }
0x215b   : > { %6762 = vmatpush3.bf16.msra.mxu0 %v6761_v1  ;;  %6794 = vmatpush3.bf16.msra.mxu1 %v6793_v2 }
0x215c   : > { %6764 = vmatprep.subr.bf16.mxu0 %v6763_v3  ;;  %6796 = vmatprep.subr.bf16.mxu1 %v6795_v47 }
0x215f   : > { %6766 = vmatpush3.bf16.msra.mxu0 %v6765_v7  ;;  %6798 = vmatpush3.bf16.msra.mxu1 %v6797_v14 }
0x2160   : > { %6768 = vmatprep.subr.bf16.mxu0 %v6767_v5  ;;  %6800 = vmatprep.subr.bf16.mxu1 %v6799_v25 }
0x2163   : > { %6770 = vmatpush3.bf16.msra.mxu0 %v6769_v10  ;;  %6802 = vmatpush3.bf16.msra.mxu1 %v6801_v27  ;;  %v4499_v27 = vrot.slane %v4490_v20, %v7794_v45 }
0x2164   : > { %6772 = vmatprep.subr.bf16.mxu0 %v6771_v30  ;;  %6804 = vmatprep.subr.bf16.mxu1 %v6803_v32  ;;  %v4891_v30 = vld [vmem:[%s8163_s11 + $0xe0] sm:$0xff]  ;;  %v4893_v32 = vld [vmem:[%s8163_s11 + $0xf0] sm:$0xff] }
0x2167   : > { %6774 = vmatpush3.bf16.msra.mxu0 %v6773_v34  ;;  %6806 = vmatpush3.bf16.msra.mxu1 %v6805_v38  ;;  %v4896_v34 = vld [vmem:[%s8163_s11 + $0x168] sm:$0xff] }
0x2168   : > { %6776 = vmatprep.subr.bf16.mxu0 %v6775_v52  ;;  %6808 = vmatprep.subr.bf16.mxu1 %v6807_v56  ;;  %v4898_v52 = vld [vmem:[%s8163_s11 + $0x178] sm:$0xff]  ;;  %v6813_v56 = vpack.c.bf16 %v4891_v30, %v4887_v29  ;;  %v6815_v50 = vpack.c.bf16 %v4900_v19, %v4896_v34  ;;  %v5137_v29 = vld [vmem:[%s8164_s16 + $0x790] sm:$0xff]  ;;  %v5108_v19 = vld [vmem:[%s8164_s16 + $0x6a8] sm:$0xff] }
0x2169   : > { %v6823_v51 = vpack.c.bf16 %v4902_v53, %v4898_v52  ;;  %v5138_v30 = vld [vmem:[%s8164_s16 + $0x798] sm:$0xff]  ;;  %v5139_v52 = vld [vmem:[%s8164_s16 + $0x7a0] sm:$0xff]  ;;  %v5140_v53 = vld [vmem:[%s8164_s16 + $0x7a8] sm:$0xff] }
0x216b   : > { %6778 = vmatpush3.bf16.msra.mxu0 %v6777_v55  ;;  %6810 = vmatpush3.bf16.msra.mxu1 %v6809_v42  ;;  %v6821_v55 = vpack.c.bf16 %v4893_v32, %v4889_v57  ;;  %v5089_v57 = vld [vmem:[%s8164_s16 + $0x610] sm:$0xff]  ;;  %v5090_v32 = vld [vmem:[%s8164_s16 + $0x618] sm:$0xff] }
0x216c   : > { %6812 = vmatprep.subr.bf16.mxu0 %v6811_v17  ;;  %6820 = vmatprep.subr.bf16.mxu1 %v6819_v33  ;;  %v4895_v17 = vld [vmem:[%s8163_s11 + $0x160] sm:$0xff] }
0x216d   : > { %v6817_v20 = vpack.c.bf16 %v4899_v18, %v4895_v17  ;;  %v5142_v17 = vld [vmem:[%s8164_s16 + $0x7b8] sm:$0xff] }
0x21f7   : > { %v5929_v62 = vpop.f32.mrb[30].mxu0  ;;  %v5967_v63 = vpop.f32.mrb[32].mxu1 }
0x21f8   : > { %v5930_v0 = vpop.f32.mrb[31].mxu0  ;;  %v5968_v1 = vpop.f32.mrb[33].mxu1 }
0x21fb   : > { %v5932_v2 = vpop.f32.mrb[32].mxu0  ;;  %v5970_v3 = vpop.f32.mrb[34].mxu1 }
0x21fc   : > { %v5933_v47 = vpop.f32.mrb[33].mxu0  ;;  %v5971_v49 = vpop.f32.mrb[35].mxu1 }
0x21fd   : > { %v5934_v8 = vadd.f32 %v5933_v47, %v5932_v2  ;;  %v5972_v12 = vadd.f32 %v5971_v49, %v5970_v3  ;;  %v4897_v3 = vld [vmem:[%s8163_s11 + $0x170] sm:$0xff] }
0x21fe   : > { %v4901_v47 = vld [vmem:[%s8163_s11 + $0x1f0] sm:$0xff] }
0x21ff   : > { %v4323_v7 = vadd.f32 %v5972_v12, %v5934_v8  ;;  %v5103_v12 = vld [vmem:[%s8164_s16 + $0x680] sm:$0xff] }
0x2217   : > { %v6005_v11 = vpop.f32.mrb[34].mxu0  ;;  %v6043_v14 = vpop.f32.mrb[36].mxu1 }
0x2218   : > { %v6006_v16 = vpop.f32.mrb[35].mxu0  ;;  %v6044_v15 = vpop.f32.mrb[37].mxu1  ;;  %v5135_v11 = vld [vmem:[%s8164_s16 + $0x780] sm:$0xff]  ;;  %v5136_v14 = vld [vmem:[%s8164_s16 + $0x788] sm:$0xff] }
0x221b   : > { %v6008_v5 = vpop.f32.mrb[36].mxu0  ;;  %v6046_v23 = vpop.f32.mrb[38].mxu1 }
0x221c   : > { %v6009_v22 = vpop.f32.mrb[37].mxu0  ;;  %v6047_v24 = vpop.f32.mrb[39].mxu1 }
0x221d   : > { %v6010_v25 = vadd.f32 %v6009_v22, %v6008_v5  ;;  %v6048_v10 = vadd.f32 %v6047_v24, %v6046_v23  ;;  %v6825_v5 = vpack.c.bf16 %v4901_v47, %v4897_v3  ;;  %v5087_v24 = vld [vmem:[%s8164_s16 + $0x600] sm:$0xff]  ;;  %v5126_v3 = vld [vmem:[%s8164_s16 + $0x738] sm:$0xff]  ;;  %v5112_v47 = vld [vmem:[%s8164_s16 + $0x6c8] sm:$0xff] }
0x221f   : > { %v4397_v28 = vadd.f32 %v6010_v25, %v4323_v7  ;;  %v5104_v7 = vld [vmem:[%s8164_s16 + $0x688] sm:$0xff] }
0x2220   : > { %v4578_v9 = vpop.f32.mrb[38].mxu0  ;;  %v4655_v31 = vpop.f32.mrb[40].mxu1  ;;  %v5088_v25 = vld [vmem:[%s8164_s16 + $0x608] sm:$0xff] }
0x2221   : > { %v8001_v35 = vadd.f32 %v6048_v10, %v4397_v28  ;;  %v4579_v37 = vadd.f32 %v4578_v9, %v4495_v26  ;;  %v4656_v38 = vadd.f32 %v4655_v31, %v4503_v13  ;;  %v4580_v39 = vpop.f32.mrb[39].mxu0  ;;  %v4657_v40 = vpop.f32.mrb[41].mxu1  ;;  %v6827_v10 = vpack.c.bf16 %v5104_v7, %v5103_v12  ;;  %v5106_v28 = vld [vmem:[%s8164_s16 + $0x698] sm:$0xff] }
0x2222   : > { %v4581_v58 = vadd.f32 %v4580_v39, %v4499_v27  ;;  %v4658_v54 = vadd.f32 %v4657_v40, %v4507_v21  ;;  %v6829_v9 = vpack.c.bf16 %v5088_v25, %v5087_v24  ;;  %v5122_v39 = vld [vmem:[%s8164_s16 + $0x718] sm:$0xff]  ;;  %v5107_v40 = vld [vmem:[%s8164_s16 + $0x6a0] sm:$0xff]  ;;  %v5113_v24 = vld [vmem:[%s8164_s16 + $0x6d0] sm:$0xff] }
0x2223   : > { %v4666_v33 = vmax.f32 %v4579_v37, 0.0  ;;  %v4668_v62 = vmax.f32 %v4656_v38, 0.0  ;;  %v6863_v37 = vpack.c.bf16 %v5138_v30, %v5137_v29  ;;  %v5121_v38 = vld [vmem:[%s8164_s16 + $0x710] sm:$0xff]  ;;  %v5114_v25 = vld [vmem:[%s8164_s16 + $0x6d8] sm:$0xff] }
0x2224   : > { %v4667_v41 = vmax.f32 %v4581_v58, 0.0  ;;  %v4669_v59 = vmax.f32 %v4658_v54, 0.0  ;;  %v4584_v42 = vpop.f32.mrb[40].mxu0  ;;  %v4661_v60 = vpop.f32.mrb[42].mxu1  ;;  %v6833_v58 = vpack.c.bf16 %v5090_v32, %v5089_v57  ;;  %v6865_v54 = vpack.c.bf16 %v5122_v39, %v5121_v38  ;;  %v5129_v30 = vld [vmem:[%s8164_s16 + $0x750] sm:$0xff]  ;;  %v5115_v57 = vld [vmem:[%s8164_s16 + $0x6e0] sm:$0xff] }
0x2225   : > { %v4585_v63 = vadd.f32 %v4584_v42, %v4495_v26  ;;  %v4662_v0 = vadd.f32 %v4661_v60, %v4503_v13  ;;  %v4586_v1 = vpop.f32.mrb[41].mxu0  ;;  %v4663_v2 = vpop.f32.mrb[43].mxu1  ;;  %v6859_v26 = vpack.c.bf16 %v5136_v14, %v5135_v11  ;;  %v5119_v13 = vld [vmem:[%s8164_s16 + $0x700] sm:$0xff]  ;;  %v5124_v42 = vld [vmem:[%s8164_s16 + $0x728] sm:$0xff]  ;;  %v5109_v60 = vld [vmem:[%s8164_s16 + $0x6b0] sm:$0xff] }
0x2226   : > { %v4587_v49 = vadd.f32 %v4586_v1, %v4499_v27  ;;  %v4664_v8 = vadd.f32 %v4663_v2, %v4507_v21  ;;  %4802 = vmatprep.mubr.f32.mxu0 %v4667_v41  ;;  %4876 = vmatprep.mubr.f32.mxu1 %v4669_v59  ;;  %v5120_v27 = vld [vmem:[%s8164_s16 + $0x708] sm:$0xff]  ;;  %v5105_v21 = vld [vmem:[%s8164_s16 + $0x690] sm:$0xff]  ;;  %v6867_v41 = vpack.c.bf16 %v5140_v53, %v5139_v52  ;;  %v5123_v59 = vld [vmem:[%s8164_s16 + $0x720] sm:$0xff] }
0x2227   : > { %4803 = vmatmul.mubr.f32.vlgmr.msra.gmra.mrb[42].mxu0 %v4666_v33  ;;  %4877 = vmatmul.mubr.f32.vlgmr.msra.gmra.mrb[44].mxu1 %v4668_v62  ;;  %v4670_v23 = vmax.f32 %v4585_v63, 0.0  ;;  %v4672_v22 = vmax.f32 %v4662_v0, 0.0  ;;  %v6861_v31 = vpack.c.bf16 %v5120_v27, %v5119_v13  ;;  %v6831_v34 = vpack.c.bf16 %v5106_v28, %v5105_v21  ;;  %v5093_v62 = vld [vmem:[%s8164_s16 + $0x630] sm:$0xff]  ;;  %v5094_v63 = vld [vmem:[%s8164_s16 + $0x638] sm:$0xff]  ;;  %v5116_v32 = vld [vmem:[%s8164_s16 + $0x6e8] sm:$0xff] }
0x2228   : > { %v4671_v16 = vmax.f32 %v4587_v49, 0.0  ;;  %v4673_v15 = vmax.f32 %v4664_v8, 0.0  ;;  %6814 = vmatpush1.bf16.msra.mxu0 %v6813_v56  ;;  %6822 = vmatpush1.bf16.msra.mxu1 %v6821_v55  ;;  %v5091_v56 = vld [vmem:[%s8164_s16 + $0x620] sm:$0xff]  ;;  %v5092_v55 = vld [vmem:[%s8164_s16 + $0x628] sm:$0xff]  ;;  %v6869_v33 = vpack.c.bf16 %v5124_v42, %v5123_v59  ;;  %v5125_v2 = vld [vmem:[%s8164_s16 + $0x730] sm:$0xff]  ;;  %v6841_v12 = vpack.c.bf16 %v5094_v63, %v5093_v62 }
0x2229   : > { %6816 = vmatprep.subr.bf16.mxu0 %v6815_v50  ;;  %6824 = vmatprep.subr.bf16.mxu1 %v6823_v51  ;;  %v5110_v50 = vld [vmem:[%s8164_s16 + $0x6b8] sm:$0xff]  ;;  %v5141_v51 = vld [vmem:[%s8164_s16 + $0x7b0] sm:$0xff]  ;;  %v6837_v18 = vpack.c.bf16 %v5092_v55, %v5091_v56  ;;  %v5143_v49 = vld [vmem:[%s8164_s16 + $0x7c0] sm:$0xff]  ;;  %v6873_v7 = vpack.c.bf16 %v5126_v3, %v5125_v2 }
0x222a   : > { %4806 = vmatprep.mubr.f32.mxu0 %v4671_v16  ;;  %4880 = vmatprep.mubr.f32.mxu1 %v4673_v15  ;;  %v6839_v0 = vpack.c.bf16 %v5110_v50, %v5109_v60  ;;  %v6871_v1 = vpack.c.bf16 %v5142_v17, %v5141_v51  ;;  %v5144_v8 = vld [vmem:[%s8164_s16 + $0x7c8] sm:$0xff]  ;;  %v5095_v16 = vld [vmem:[%s8164_s16 + $0x640] sm:$0xff]  ;;  %v5146_v13 = vld [vmem:[%s8164_s16 + $0x7d8] sm:$0xff] }
0x222b   : > { %4807 = vmatmul.mubr.f32.gmra.mrb[44].mxu0 %v4670_v23  ;;  %4881 = vmatmul.mubr.f32.gmra.mrb[46].mxu1 %v4672_v22  ;;  %v6875_v14 = vpack.c.bf16 %v5144_v8, %v5143_v49  ;;  %v5096_v15 = vld [vmem:[%s8164_s16 + $0x648] sm:$0xff]  ;;  %v5097_v27 = vld [vmem:[%s8164_s16 + $0x650] sm:$0xff]  ;;  %v5098_v21 = vld [vmem:[%s8164_s16 + $0x658] sm:$0xff] }
0x222c   : > { %6818 = vmatpush1.bf16.msra.mxu0 %v6817_v20  ;;  %6826 = vmatpush1.bf16.msra.mxu1 %v6825_v5  ;;  %v5127_v20 = vld [vmem:[%s8164_s16 + $0x740] sm:$0xff]  ;;  %v6845_v5 = vpack.c.bf16 %v5096_v15, %v5095_v16  ;;  %v5128_v23 = vld [vmem:[%s8164_s16 + $0x748] sm:$0xff]  ;;  %v6849_v29 = vpack.c.bf16 %v5098_v21, %v5097_v27  ;;  %v5117_v56 = vld [vmem:[%s8164_s16 + $0x6f0] sm:$0xff] }
0x222d   : > { %4989 = vmatprep.mubr.f32.mxu0 %v7113_v6  ;;  %5066 = vmatprep.mubr.f32.mxu1 %v7113_v6  ;;  %v6877_v22 = vpack.c.bf16 %v5128_v23, %v5127_v20  ;;  %v5148_v38 = vld [vmem:[%s8164_s16 + $0x7e8] sm:$0xff]  ;;  %v5099_v39 = vld [vmem:[%s8164_s16 + $0x660] sm:$0xff]  ;;  %v5118_v55 = vld [vmem:[%s8164_s16 + $0x6f8] sm:$0xff] }
0x222e   : > { %6828 = vmatprep.subr.bf16.mxu0 %v6827_v10  ;;  %6860 = vmatprep.subr.bf16.mxu1 %v6859_v26  ;;  %v5145_v10 = vld [vmem:[%s8164_s16 + $0x7d0] sm:$0xff]  ;;  %v6847_v26 = vpack.c.bf16 %v5114_v25, %v5113_v24  ;;  %v5131_v53 = vld [vmem:[%s8164_s16 + $0x760] sm:$0xff]  ;;  %v5150_v59 = vld [vmem:[%s8164_s16 + $0x7f8] sm:$0xff] }
0x222f   : > { %5776 = vmatmul.mubr.msk.f32.vlgmr.msra.gmra.mrb[46].mxu0 %vm1091_vm3, %v7691_v48  ;;  %5778 = vmatmul.mubr.msk.f32.vlgmr.msra.gmra.mrb[48].mxu1 %vm1091_vm3, %v7691_v48  ;;  %v6835_v48 = vpack.c.bf16 %v5108_v19, %v5107_v40  ;;  %v6879_v28 = vpack.c.bf16 %v5146_v13, %v5145_v10  ;;  %v5100_v40 = vld [vmem:[%s8164_s16 + $0x668] sm:$0xff]  ;;  %v5101_v42 = vld [vmem:[%s8164_s16 + $0x670] sm:$0xff]  ;;  %v5102_v60 = vld [vmem:[%s8164_s16 + $0x678] sm:$0xff] }
0x2230   : > { %4995 = vmatprep.mubr.f32.mxu0 %v7113_v6  ;;  %5072 = vmatprep.mubr.f32.mxu1 %v7113_v6  ;;  %v6853_v52 = vpack.c.bf16 %v5100_v40, %v5099_v39  ;;  %v6857_v51 = vpack.c.bf16 %v5102_v60, %v5101_v42  ;;  %v5133_v17 = vld [vmem:[%s8164_s16 + $0x770] sm:$0xff]  ;;  %v4903_v2 = vld [vmem:[%s8165_s18 + $0xc] sm:$0xf] }
0x2231   : > { %6830 = vmatpush3.bf16.msra.mxu0 %v6829_v9  ;;  %6862 = vmatpush3.bf16.msra.mxu1 %v6861_v31  ;;  %v5130_v9 = vld [vmem:[%s8164_s16 + $0x758] sm:$0xff]  ;;  %v4908_v8 = vrot.slane %v4903_v2, %v7790_v43  ;;  %v4920_v16 = vrot.slane %v4903_v2, %v7796_v46 }
0x2232   : > { %6832 = vmatprep.subr.bf16.mxu0 %v6831_v34  ;;  %6864 = vmatprep.subr.bf16.mxu1 %v6863_v37  ;;  %v6881_v31 = vpack.c.bf16 %v5130_v9, %v5129_v30  ;;  %v5147_v34 = vld [vmem:[%s8164_s16 + $0x7e0] sm:$0xff]  ;;  %v6851_v37 = vpack.c.bf16 %v5116_v32, %v5115_v57 }
0x2233   : > { %5777 = vmatmul.mubr.msk.f32.gmra.mrb[48].mxu0 %vm1091_vm3, %v7705_v61  ;;  %5779 = vmatmul.mubr.msk.f32.gmra.mrb[50].mxu1 %vm1091_vm3, %v7705_v61  ;;  %v5111_v61 = vld [vmem:[%s8164_s16 + $0x6c0] sm:$0xff]  ;;  %v6883_v19 = vpack.c.bf16 %v5148_v38, %v5147_v34 }
0x2234   : > { %v6843_v11 = vpack.c.bf16 %v5112_v47, %v5111_v61 }
0x2235   : > { %6834 = vmatpush3.bf16.msra.mxu0 %v6833_v58  ;;  %6866 = vmatpush3.bf16.msra.mxu1 %v6865_v54  ;;  %v5132_v58 = vld [vmem:[%s8164_s16 + $0x768] sm:$0xff] }
0x2236   : > { %6836 = vmatprep.subr.bf16.mxu0 %v6835_v48  ;;  %6868 = vmatprep.subr.bf16.mxu1 %v6867_v41  ;;  %v6885_v54 = vpack.c.bf16 %v5132_v58, %v5131_v53  ;;  %v5149_v48 = vld [vmem:[%s8164_s16 + $0x7f0] sm:$0xff]  ;;  %v6855_v41 = vpack.c.bf16 %v5118_v55, %v5117_v56 }
0x2237   : > { %v6887_v50 = vpack.c.bf16 %v5150_v59, %v5149_v48 }
0x2239   : > { %6838 = vmatpush3.bf16.msra.mxu0 %v6837_v18  ;;  %6870 = vmatpush3.bf16.msra.mxu1 %v6869_v33  ;;  %v5134_v18 = vld [vmem:[%s8164_s16 + $0x778] sm:$0xff] }
0x223a   : > { %6840 = vmatprep.subr.bf16.mxu0 %v6839_v0  ;;  %6872 = vmatprep.subr.bf16.mxu1 %v6871_v1  ;;  %v6889_v33 = vpack.c.bf16 %v5134_v18, %v5133_v17  ;;  %v5781_v18 = vld [vmem:[%s8167_s22] ss:$0 sm:$0xff] }
0x223d   : > { %6842 = vmatpush3.bf16.msra.mxu0 %v6841_v12  ;;  %6874 = vmatpush3.bf16.msra.mxu1 %v6873_v7  ;;  %v4916_v12 = vrot.slane %v4903_v2, %v7792_v44 }
0x223e   : > { %6844 = vmatprep.subr.bf16.mxu0 %v6843_v11  ;;  %6876 = vmatprep.subr.bf16.mxu1 %v6875_v14  ;;  %v4912_v14 = vrot.slane %v4903_v2, %v7794_v45  ;;  %v5782_v2 = vld [vmem:[%s8168_s26] ss:$0 sm:$0xff] }
0x2241   : > { %6846 = vmatpush3.bf16.msra.mxu0 %v6845_v5  ;;  %6878 = vmatpush3.bf16.msra.mxu1 %v6877_v22 }
0x2242   : > { %6848 = vmatprep.subr.bf16.mxu0 %v6847_v26  ;;  %6880 = vmatprep.subr.bf16.mxu1 %v6879_v28 }
0x2245   : > { %6850 = vmatpush3.bf16.msra.mxu0 %v6849_v29  ;;  %6882 = vmatpush3.bf16.msra.mxu1 %v6881_v31 }
0x2246   : > { %6852 = vmatprep.subr.bf16.mxu0 %v6851_v37  ;;  %6884 = vmatprep.subr.bf16.mxu1 %v6883_v19 }
0x2249   : > { %6854 = vmatpush3.bf16.msra.mxu0 %v6853_v52  ;;  %6886 = vmatpush3.bf16.msra.mxu1 %v6885_v54 }
0x224a   : > { %6856 = vmatprep.subr.bf16.mxu0 %v6855_v41  ;;  %6888 = vmatprep.subr.bf16.mxu1 %v6887_v50  ;;  %v5780_v41 = vld [vmem:[%s8166_s23] ss:$0 sm:$0xff] }
0x224d   : > { %6858 = vmatpush3.bf16.msra.mxu0 %v6857_v51  ;;  %6890 = vmatpush3.bf16.msra.mxu1 %v6889_v33 }
0x224e   : > { %6891 = vmatprep.subr.bf16.mxu0 %v7112_v4  ;;  %6443 = vmatprep.subr.mxu1 %v7113_v6 }
0x22fa   : > { %v6081_v62 = vpop.f32.mrb[42].mxu0  ;;  %v6119_v63 = vpop.f32.mrb[44].mxu1 }
0x22fb   : > { %v6082_v0 = vpop.f32.mrb[43].mxu0  ;;  %v6120_v1 = vpop.f32.mrb[45].mxu1 }
0x22fe   : > { %v6084_v3 = vpop.f32.mrb[44].mxu0  ;;  %v6122_v61 = vpop.f32.mrb[46].mxu1 }
0x22ff   : > { %v6085_v47 = vpop.f32.mrb[45].mxu0  ;;  %v6123_v49 = vpop.f32.mrb[47].mxu1 }
0x2300   : > { %v6086_v7 = vadd.f32 %v6085_v47, %v6084_v3  ;;  %v6124_v11 = vadd.f32 %v6123_v49, %v6122_v61  ;;  %v5354_v3 = vld [vmem:[%s8169_s20] sm:$0xff]  ;;  %v5355_v61 = vld [vmem:[%s8169_s20 + $0x8] sm:$0xff]  ;;  %v5356_v47 = vld [vmem:[%s8169_s20 + $0x10] sm:$0xff] }
0x2301   : > { %v6892_v49 = vpack.c.bf16 %v5355_v61, %v5354_v3 }
0x2302   : > { %v4883_v15 = vadd.f32 %v6124_v11, %v6086_v7  ;;  %v4991_v20 = vpop.f32.mrb[46].mxu0  ;;  %v5068_v5 = vpop.f32.mrb[48].mxu1 }
0x2303   : > { %v4992_v23 = vadd.f32 %v4991_v20, %v4908_v8  ;;  %v5069_v22 = vadd.f32 %v5068_v5, %v4916_v12  ;;  %v4993_v24 = vpop.f32.mrb[47].mxu0  ;;  %v5070_v25 = vpop.f32.mrb[49].mxu1 }
0x2304   : > { %v4886_v10 = vadd.f32 %v4883_v15, %v8001_v35  ;;  %v4994_v26 = vadd.f32 %v4993_v24, %v4912_v14  ;;  %v5071_v13 = vadd.f32 %v5070_v25, %v4920_v16 }
0x2305   : > { %v5079_v28 = vmax.f32 %v4992_v23, 0.0  ;;  %v5081_v29 = vmax.f32 %v5069_v22, 0.0 }
0x2306   : > { %v5080_v43 = vmax.f32 %v4994_v26, 0.0  ;;  %v5082_v27 = vmax.f32 %v5071_v13, 0.0  ;;  %v4997_v44 = vpop.f32.mrb[48].mxu0  ;;  %v5074_v21 = vpop.f32.mrb[50].mxu1  ;;  %v5517_v13 = vld [vmem:[%s7280_s24] sm:$0xff] }
0x2307   : > { %v4998_v45 = vadd.f32 %v4997_v44, %v4908_v8  ;;  %v5075_v30 = vadd.f32 %v5074_v21, %v4916_v12  ;;  %v4999_v46 = vpop.f32.mrb[49].mxu0  ;;  %v5076_v9 = vpop.f32.mrb[51].mxu1  ;;  %v5357_v8 = vld [vmem:[%s8169_s20 + $0x18] sm:$0xff] }
0x2308   : > { %v5000_v31 = vadd.f32 %v4999_v46, %v4912_v14  ;;  %v5077_v57 = vadd.f32 %v5076_v9, %v4920_v16  ;;  %5215 = vmatprep.mubr.f32.mxu0 %v5080_v43  ;;  %5289 = vmatprep.mubr.f32.mxu1 %v5082_v27  ;;  %v6895_v12 = vpack.c.bf16 %v5357_v8, %v5356_v47 }
0x2309   : > { %5216 = vmatmul.mubr.f32.vlgmr.msra.gmra.mrb[50].mxu0 %v5079_v28  ;;  %5290 = vmatmul.mubr.f32.vlgmr.msra.gmra.mrb[52].mxu1 %v5081_v29  ;;  %v5083_v34 = vmax.f32 %v4998_v45, 0.0  ;;  %v5085_v37 = vmax.f32 %v5075_v30, 0.0  ;;  %v5440_v45 = vld [vmem:[%s7275_s4] sm:$0x1] }
0x230a   : > { %v5084_v32 = vmax.f32 %v5000_v31, 0.0  ;;  %v5086_v35 = vmax.f32 %v5077_v57, 0.0  ;;  %6893 = vmatpush3.bf16.msra.mxu0 %v6892_v49  ;;  %6444 = vmatpush3.msra.mxu1 %v5517_v13  ;;  %v5518_v57 = vld [vmem:[#allocation2] sm:$0x1] }
0x230b   : > { %6894 = vmatprep.subr.bf16.mxu0 %v7112_v4 }
0x230c   : > { %5219 = vmatprep.mubr.f32.mxu0 %v5084_v32  ;;  %5293 = vmatprep.mubr.f32.mxu1 %v5086_v35 }
0x230d   : > { %5220 = vmatmul.mubr.f32.gmra.mrb[52].mxu0 %v5083_v34  ;;  %5294 = vmatmul.mubr.f32.gmra.mrb[54].mxu1 %v5085_v37 }
0x230e   : > { %6433 = vmatprep.mubr.msk.f32.mxu0 %vm7114_vm1, %v7113_v6  ;;  %6445 = vmatprep.mubr.msk.f32.mxu1 %vm7114_vm1, %v7113_v6 }
0x230f   : > { %6896 = vmatpush3.bf16.msra.mxu0 %v6895_v12 }
0x2310   : > { %6897 = vmatprep.subr.bf16.mxu0 %v7112_v4  ;;  %v5438_v4 = vld [vmem:[%s8170_s2] sm:$0xff] }
0x23dc   : > { %v6157_v38 = vpop.f32.mrb[50].mxu0  ;;  %v6195_v39 = vpop.f32.mrb[52].mxu1 }
0x23dd   : > { %v6158_v40 = vpop.f32.mrb[51].mxu0  ;;  %v6196_v19 = vpop.f32.mrb[53].mxu1 }
0x23e0   : > { %v6160_v52 = vpop.f32.mrb[52].mxu0  ;;  %v6198_v53 = vpop.f32.mrb[54].mxu1 }
0x23e1   : > { %v6161_v58 = vpop.f32.mrb[53].mxu0  ;;  %v6199_v54 = vpop.f32.mrb[55].mxu1 }
0x23e2   : > { %v6162_v56 = vadd.f32 %v6161_v58, %v6160_v52  ;;  %v6200_v55 = vadd.f32 %v6199_v54, %v6198_v53 }
0x23e4   : > { %v5296_v48 = vadd.f32 %v6200_v55, %v6162_v56 }
0x23e6   : > { %v5299_v59 = vadd.f32 %v5296_v48, %v4886_v10  ;;  %v5439_v10 = vld [vmem:[%s8170_s2 + $0x8] sm:$0xff] }
0x23e7   : > { %v6898_v26 = vpack.c.bf16 %v5439_v10, %v5438_v4 }
0x23e8   : > { %v5307_v42 = vadd.f32 %v5780_v41, %v5299_v59 }
0x23ea   : > { %5309 = vrot.lane.b32.xlu1 %v5307_v42, %s7117_s15 }
0x245c   : > { %v5310_v60 = vpop.permute.xlu1 %5309 }
0x245d   : > { %v5312_v50 = vadd.f32 %v5310_v60, %v7675_v36 }
0x245f   : > { %5316 = vrot.lane.b32.xlu0 %v5312_v50, %s7116_s7 }
0x24d1   : > { %v5317_v51 = vpop.permute.xlu0 %5316 }
0x24d2   : > { %v5319_v17 = vsel %vm3587_vm6, %v5317_v51, 0.0 }
0x24d3   : > { %5320 = vadd.xlane.f32.xlu1 %v5319_v17 }
0x24e4   : > { %5341 = vrot.lane.b32.xlu1 %v5781_v18, %s7117_s15 }
0x2560   : > { %v5321_v33 = vpop.xlane.xlu1 %5320 }
0x2561   : > { %v5322_v62 = vmul.f32 0.03125, %v5321_v33 }
0x2563   : > { %v5323_v63 = vsub.f32 %v5312_v50, %v5322_v62 }
0x2564   : > { %v5342_v15 = vpop.permute.xlu1 %5341 }
0x2565   : > { %v5324_v0 = vmul.f32 %v5323_v63, %v5323_v63 }
0x2567   : > { %5326 = vrot.lane.b32.xlu0 %v5324_v0, %s7116_s7 }
0x25d9   : > { %v5327_v36 = vpop.permute.xlu0 %5326 }
0x25da   : > { %v5329_v1 = vsel %vm3587_vm6, %v5327_v36, 0.0 }
0x25db   : > { %5330 = vadd.xlane.f32.xlu0 %v5329_v1 }
0x25f1   : > { %5350 = vrot.lane.b32.xlu0 %v5782_v2, %s7117_s15  ;;  %s8171_s15 = sld [smem:[#allocation16_spill]] }
0x25f7   : > { %v5358_v43 = vld [vmem:[%s8171_s15] sm:$0x1] }
0x2668   : > { %v5331_v7 = vpop.xlane.xlu0 %5330 }
0x2669   : > { %v5332_v11 = vmul.f32 0.03125, %v5331_v7 }
0x266b   : > { %v5333_v14 = vadd.f32 1e-05, %v5332_v11 }
0x266c   : > { %v5351_v5 = vpop.permute.xlu0 %5350 }
0x266d   : > { %7070 = vrsqrt.f32 %v5333_v14 }
0x2677   : > { %v7071_v16 = vpop.eup %7070 }
0x2678   : > { %v5335_v20 = vmul.f32 %v7071_v16, %v5323_v63 }
0x267a   : > { %v5344_v23 = vmul.f32 %v5342_v15, %v5335_v20 }
0x267c   : > { %v5353_v22 = vadd.f32 %v5351_v5, %v5344_v23 }
0x267e   : > { %v5360_v24 = vrot.slane %v5353_v22, 4 }
0x2680   : > { %5361 = vrot.lane.b32.xlu1 %v5360_v24, %s7116_s7  ;;  %s998_s7 = scalar_lea.vmem %s7288_s27, %s8173_s1 }
0x26f2   : > { %v5362_v25 = vpop.permute.xlu1 %5361 }
0x26f3   : > { %6434 = vmatmul.mubr.msk.f32.vlgmr.msra.gmra.mrb[54].mxu0 %vm1091_vm3, %v5362_v25  ;;  %vm5592_vm3 = vcmask 0  }
0x26f4   : > { %6440 = vmatprep.mubr.msk.f32.mxu0 %vm7114_vm1, %v7113_v6  ;;  %6899 = vmatpush3.bf16.msra.mxu0 %v6898_v26 }
0x27c6   : > { %v5431_v27 = vpop.f32.mrb[54].mxu0 }
0x27c7   : > { %v5432_v44 = vadd.f32 %v5431_v27, %v5358_v43  ;;  %v6435_v21 = vpop.f32.mrb[55].mxu0 }
0x27c9   : > { %vm5435_vm7 = vcmp.ge.f32.partialorder %v5432_v44, 0.0  ;;  %v5436_v28 = vmul.f32 0.01, %v5432_v44 }
0x27cb   : > { %v5437_v29 = vsel %vm5435_vm7, %v5432_v44, %v5436_v28 }
0x27cc   : > { %6441 = vmatmul.mubr.msk.f32.vlgmr.msra.gmra.mrb[56].mxu0 %vm2073_vm11, %v5437_v29 }
0x289f   : > { %v5510_v30 = vpop.f32.mrb[56].mxu0 }
0x28a0   : > { %v5511_v6 = vadd.f32 %v5510_v30, %v5440_v45  ;;  %v6442_v46 = vpop.f32.mrb[57].mxu0 }
0x28a2   : > { %vm5514_vm1 = vcmp.ge.f32.partialorder %v5511_v6, 0.0  ;;  %v5515_v9 = vmul.f32 0.01, %v5511_v6 }
0x28a4   : > { %v5516_v31 = vsel %vm5514_vm1, %v5511_v6, %v5515_v9 }
0x28a5   : > { %6446 = vmatmul.mubr.msk.f32.vlgmr.msra.gmra.mrb[56].mxu1 %vm2427_vm14, %v5516_v31 }
0x2978   : > { %v5588_v32 = vpop.f32.mrb[56].mxu1 }
0x2979   : > { %v5589_v35 = vadd.f32 %v5588_v32, %v5518_v57  ;;  %v6447_v34 = vpop.f32.mrb[57].mxu1 }
0x297b   : > { %5593 = vst.msk [vmem:[%s998_s7] sm:$0x1] %vm5592_vm3, %v5589_v35 }
0x297c PF: > { %s77_s28 = sadd.s32 1, %s7078_s28  }
0x297d   : > { %p74_p4 = scmp.ge.s32.totalorder %s77_s28, 4  }
0x297f   :  { %76 = sbr.rel (!%p74_p4) target bundleno = 58 (0x3a), region = 213 }

</bundles_post_ra>
